<compile_context>
chip_gen: v6e
topology: v6e:2x2x1
jax: 0.10.0
libtpu: 0.0.40
codegen_flags: <defaults>
</compile_context>

<pallas_src>
import jax
import jax.numpy as jnp
from jax.experimental import pallas as pl
from jax.experimental.pallas import tpu as pltpu

EPS = 1e-5  # nn.LayerNorm default eps


# --------------------------------- kernel ---------------------------------
def _critic_kernel(obs_ref, h0_ref, masks_ref,
                   obs_ln_ref, Wb1_ref, Wstk_ref, Wgru_ref,
                   gains_ref, betas_ref, biases_ref, vhead_ref,
                   values_ref, hout_ref):
    f32 = jnp.float32
    bf16 = jnp.bfloat16
    H = hout_ref.shape[-1]

    def ln(x, g, b):
        # single-pass variance: the two lane reductions are independent (overlap on XLU)
        m1 = jnp.mean(x, axis=-1, keepdims=True)
        m2 = jnp.mean(x * x, axis=-1, keepdims=True)
        return (x - m1) * jax.lax.rsqrt(m2 - m1 * m1 + EPS) * g + b

    def lnp(x, row):
        return ln(x, gains_ref[row:row + 1, :], betas_ref[row:row + 1, :])

    def mm(x, w):
        # bf16 MXU matmul, f32 accumulation
        return jnp.dot(x.astype(bf16), w, preferred_element_type=f32)

    def sig(x):
        # sigmoid via a single EUP tanh (instead of exp + reciprocal)
        return 0.5 * jnp.tanh(0.5 * x) + 0.5

    # ---------------- MLPBase ----------------
    x = ln(obs_ref[...], obs_ln_ref[0:1, :], obs_ln_ref[1:2, :])           # feature_norm
    x = jnp.maximum(mm(x, Wb1_ref[...]) + biases_ref[0:1, :], 0.0)
    x = lnp(x, 0)                                                          # fc1
    x = jnp.maximum(mm(x, Wstk_ref[0:H, :]) + biases_ref[1:2, :], 0.0)
    x = lnp(x, 1)                                                          # fc2[0] (layer_N=1)

    # ---------------- RNNLayer: masked hidden, single-step GRU, output LayerNorm ----------------
    h = h0_ref[...] * masks_ref[...]                                       # hxs * masks
    gx = mm(x, Wgru_ref[0:H, :])                                           # (bt, 3H): [r|z|n] input terms
    gh = mm(h, Wgru_ref[H:2 * H, :])                                       # (bt, 3H): [r|z|n] hidden terms
    r = sig(gx[:, 0:H] + gh[:, 0:H] + biases_ref[4:5, :])
    z = sig(gx[:, H:2 * H] + gh[:, H:2 * H] + biases_ref[5:6, :])
    n = jnp.tanh(gx[:, 2 * H:3 * H] + biases_ref[6:7, :]
                 + r * (gh[:, 2 * H:3 * H] + biases_ref[7:8, :]))
    h_new = (1.0 - z) * n + z * h
    hout_ref[...] = h_new
    x = lnp(h_new, 2)                                                      # rnn.norm

    # ---------------- Encoder (dp_array[act_inx]) ----------------
    x = lnp(x, 3)                                                          # feature_norm
    x = jnp.maximum(mm(x, Wstk_ref[H:2 * H, :]) + biases_ref[2:3, :], 0.0)
    x = lnp(x, 4)
    x = jnp.maximum(mm(x, Wstk_ref[2 * H:3 * H, :]) + biases_ref[3:4, :], 0.0)
    x = lnp(x, 5)                                                          # dp_layer_N=1

    # ---------------- v_out[act_inx]: 1-wide head as a lane reduction (f32) ----------------
    values_ref[...] = (jnp.sum(x * vhead_ref[0:1, :], axis=-1, keepdims=True)
                       + vhead_ref[1:2, 0:1])


# --------------------------------- parameter packing ---------------------------------
def _pack_params(p, act_inx):
    """Pack/cast module parameters into the kernel's VMEM-resident layout."""
    H = p["hidden_size"]
    enc = p["encoders"][act_inx]
    vout = p["v_outs"][act_inx]
    bf16 = jnp.bfloat16

    obs_ln = jnp.concatenate([p["g_obs"], p["be_obs"]], axis=0)            # (2, obs_dim)
    Wb1 = p["Wb1"].astype(bf16)                                            # (obs_dim, H)
    Wstk = jnp.concatenate([p["Wb2"], enc["We1"], enc["We2"]],
                           axis=0).astype(bf16)                            # (3H, H)
    Wgru = jnp.concatenate([p["Wih"], p["Whh"]], axis=0).astype(bf16)      # (2H, 3H), gates [r|z|n]

    gains = jnp.concatenate([p["gb1"], p["gb2"], p["grnn"],
                             enc["gef"], enc["ge1"], enc["ge2"]], axis=0)  # (6, H)
    betas = jnp.concatenate([p["beb1"], p["beb2"], p["bernn"],
                             enc["beef"], enc["bee1"], enc["bee2"]], axis=0)  # (6, H)

    bih, bhh = p["bih"], p["bhh"]                                          # (1, 3H) each
    biases = jnp.concatenate([
        p["bb1"], p["bb2"], enc["be1"], enc["be2"],                        # linear biases
        bih[:, 0:H] + bhh[:, 0:H],                                         # b_r  (pre-summed)
        bih[:, H:2 * H] + bhh[:, H:2 * H],                                 # b_z  (pre-summed)
        bih[:, 2 * H:3 * H],                                               # b_in (n, input part)
        bhh[:, 2 * H:3 * H],                                               # b_hn (n, hidden part, inside r*)
    ], axis=0)                                                             # (8, H)

    vhead = jnp.concatenate([vout["Wv"].T,
                             jnp.broadcast_to(vout["bv"], (1, H))], axis=0)  # (2, H)

    return dict(obs_ln=obs_ln, Wb1=Wb1, Wstk=Wstk, Wgru=Wgru,
                gains=gains, betas=betas, biases=biases, vhead=vhead)


# --------------------------------- tile selection ---------------------------------
def _pick_tile(B, block_b, min_tiles=2):
    """Pick a batch tile size: 128-multiple, divides B when possible (no padding),
    >= min_tiles tiles when B allows (v7x megacore), as large as block_b otherwise."""
    cap = max(1, min(block_b, B))
    divisors = [d for d in range(128, cap + 1, 128) if B % d == 0]
    if divisors:
        multi = [d for d in divisors if B // d >= min_tiles]
        return (max(multi) if multi else max(divisors)), B
    # ragged B: pad up to a whole number of aligned tiles; prefer >= min_tiles tiles.
    if B >= 2 * 128:
        cap = min(cap, -(-B // min_tiles))
    if cap >= 128:
        bt = (cap // 128) * 128          # lane-aligned
    else:
        bt = -(-cap // 16) * 16          # bf16 MXU row-packing multiple (never 8)
    Bp = -(-B // bt) * bt
    return bt, Bp


# --------------------------------- wrapper ---------------------------------
def r_critic_share_forward(cent_obs, rnn_states, masks, params, act_inx, *, block_b=2048):
    """values, rnn_states_out = R_Critic_share.forward(cent_obs, rnn_states, masks, act_inx)"""
    B, obs_dim = cent_obs.shape
    H = params["hidden_size"]
    w = _pack_params(params, act_inx)      # act_inx selects the Encoder / v_out submodule (static)

    bt, Bp = _pick_tile(B, block_b)
    grid = (Bp // bt,)

    obs = cent_obs.astype(jnp.float32)
    h0 = rnn_states[:, 0, :].astype(jnp.float32)   # recurrent_N = 1
    msk = masks.astype(jnp.float32)
    if Bp != B:                                    # only when no aligned tile divides B exactly
        pad = lambda a: jnp.pad(a, ((0, Bp - B), (0, 0)))
        obs, h0, msk = pad(obs), pad(h0), pad(msk)

    def row_spec(feat):
        return pl.BlockSpec((bt, feat), lambda i: (i, 0))

    def const_spec(arr):
        return pl.BlockSpec(arr.shape, lambda i: (0, 0))   # VMEM-resident across all tiles

    inputs = (obs, h0, msk,
              w["obs_ln"], w["Wb1"], w["Wstk"], w["Wgru"],
              w["gains"], w["betas"], w["biases"], w["vhead"])
    in_specs = [row_spec(obs_dim), row_spec(H), row_spec(1)] + \
               [const_spec(a) for a in inputs[3:]]

    values, h_new = pl.pallas_call(
        _critic_kernel,
        grid=grid,
        out_shape=(jax.ShapeDtypeStruct((Bp, 1), jnp.float32),
                   jax.ShapeDtypeStruct((Bp, H), jnp.float32)),
        in_specs=in_specs,
        out_specs=(row_spec(1), row_spec(H)),
        input_output_aliases={1: 1},   # donate the h0 temporary buffer to the hidden-state output
        compiler_params=pltpu.CompilerParams(
            dimension_semantics=("parallel",),             # megacore sharding on v7x, no-op elsewhere
            vmem_limit_bytes=32 * 1024 * 1024),
    )(*inputs)

    if Bp != B:
        values, h_new = values[:B], h_new[:B]
    return values, h_new[:, None, :]                       # back to (B, recurrent_N=1, H)


# ------------------------- deterministic synthetic parameters -------------------------
def _init_params(key, obs_dim, hidden, population_size):
    ks = iter(jax.random.split(key, 64))

    def lin(kin, kout):
        w = jax.random.normal(next(ks), (kin, kout), jnp.float32) * 0.1
        b = jax.random.normal(next(ks), (1, kout), jnp.float32) * 0.01
        return w, b

    def ln_params(d):
        return jnp.ones((1, d), jnp.float32), jnp.zeros((1, d), jnp.float32)

    p = {"hidden_size": hidden}
    p["g_obs"], p["be_obs"] = ln_params(obs_dim)
    p["Wb1"], p["bb1"] = lin(obs_dim, hidden)
    p["gb1"], p["beb1"] = ln_params(hidden)
    p["Wb2"], p["bb2"] = lin(hidden, hidden)
    p["gb2"], p["beb2"] = ln_params(hidden)
    p["Wih"], p["bih"] = lin(hidden, 3 * hidden)   # GRU gate order [r, z, n]
    p["Whh"], p["bhh"] = lin(hidden, 3 * hidden)
    p["grnn"], p["bernn"] = ln_params(hidden)

    encs, vouts = [], []
    for _ in range(population_size - 1):
        e = {}
        e["gef"], e["beef"] = ln_params(hidden)
        e["We1"], e["be1"] = lin(hidden, hidden)
        e["ge1"], e["bee1"] = ln_params(hidden)
        e["We2"], e["be2"] = lin(hidden, hidden)
        e["ge2"], e["bee2"] = ln_params(hidden)
        encs.append(e)
        wv, bv = lin(hidden, 1)
        vouts.append({"Wv": wv, "bv": bv})
    p["encoders"], p["v_outs"] = encs, vouts
    return p


# ------------------------- pure-JAX f32 reference (module semantics) -------------------------
def _ln_ref(x, g, b):
    mu = jnp.mean(x, axis=-1, keepdims=True)
    var = jnp.mean((x - mu) ** 2, axis=-1, keepdims=True)
    return (x - mu) * jax.lax.rsqrt(var + EPS) * g + b


def _reference(cent_obs, rnn_states, masks, p, act_inx):
    H = p["hidden_size"]
    e, v = p["encoders"][act_inx], p["v_outs"][act_inx]
    x = _ln_ref(cent_obs, p["g_obs"], p["be_obs"])
    x = _ln_ref(jnp.maximum(x @ p["Wb1"] + p["bb1"], 0.0), p["gb1"], p["beb1"])
    x = _ln_ref(jnp.maximum(x @ p["Wb2"] + p["bb2"], 0.0), p["gb2"], p["beb2"])
    h = rnn_states[:, 0, :] * masks
    gi = x @ p["Wih"] + p["bih"]
    gh = h @ p["Whh"] + p["bhh"]
    r = jax.nn.sigmoid(gi[:, :H] + gh[:, :H])
    z = jax.nn.sigmoid(gi[:, H:2 * H] + gh[:, H:2 * H])
    n = jnp.tanh(gi[:, 2 * H:] + r * gh[:, 2 * H:])
    h_new = (1.0 - z) * n + z * h
    x = _ln_ref(h_new, p["grnn"], p["bernn"])
    x = _ln_ref(x, e["gef"], e["beef"])
    x = _ln_ref(jnp.maximum(x @ e["We1"] + e["be1"], 0.0), e["ge1"], e["bee1"])
    x = _ln_ref(jnp.maximum(x @ e["We2"] + e["be2"], 0.0), e["ge2"], e["bee2"])
    return x @ v["Wv"] + v["bv"], h_new[:, None, :]


if __name__ == "__main__":
    # hidden=128 keeps the GRU gate slices and all feature dims lane-dense (128-lane tiles).
    B, OBS_DIM, HIDDEN = 256, 84, 128
    RECURRENT_N, POPULATION_SIZE, ACT_INX = 1, 3, 1

    key = jax.random.PRNGKey(0)
    k_obs, k_h, k_m, k_p = jax.random.split(key, 4)
    cent_obs = jax.random.normal(k_obs, (B, OBS_DIM), jnp.float32)
    rnn_states = jax.random.normal(k_h, (B, RECURRENT_N, HIDDEN), jnp.float32)
    masks = (jax.random.uniform(k_m, (B, 1)) > 0.2).astype(jnp.float32)
    params = _init_params(k_p, OBS_DIM, HIDDEN, POPULATION_SIZE)

    # tile picker -> bt=128, grid=(2,), no padding/slicing (B divides exactly; 2 tiles feed
    # both TensorCores on v7x and are harmless on v5e/v6e).
    values, new_rnn_states = r_critic_share_forward(
        cent_obs, rnn_states, masks, params, ACT_INX)
    jax.block_until_ready((values, new_rnn_states))

    ref_v, ref_h = _reference(cent_obs, rnn_states, masks, params, ACT_INX)
    assert values.shape == (B, 1) and new_rnn_states.shape == (B, RECURRENT_N, HIDDEN)
    # Tolerance loosened vs the f32 reference because matmuls run on the MXU in bf16.
    assert jnp.allclose(values, ref_v, atol=1e-1, rtol=1e-1), \
        float(jnp.max(jnp.abs(values - ref_v)))
    assert jnp.allclose(new_rnn_states, ref_h, atol=1e-1, rtol=1e-1), \
        float(jnp.max(jnp.abs(new_rnn_states - ref_h)))

    print("KERNEL_OK")
</pallas_src>

<mosaic_0001>
module attributes {stable_mosaic.version = 11 : i64} {
  func.func @_critic_kernel(%arg0: i32, %arg1: memref<128x84xf32, #tpu.memory_space<vmem>>, %arg2: memref<128x128xf32, #tpu.memory_space<vmem>>, %arg3: memref<128x1xf32, #tpu.memory_space<vmem>>, %arg4: memref<2x84xf32, #tpu.memory_space<vmem>>, %arg5: memref<84x128xbf16, #tpu.memory_space<vmem>>, %arg6: memref<384x128xbf16, #tpu.memory_space<vmem>>, %arg7: memref<256x384xbf16, #tpu.memory_space<vmem>>, %arg8: memref<6x128xf32, #tpu.memory_space<vmem>>, %arg9: memref<6x128xf32, #tpu.memory_space<vmem>>, %arg10: memref<8x128xf32, #tpu.memory_space<vmem>>, %arg11: memref<2x128xf32, #tpu.memory_space<vmem>>, %arg12: memref<128x1xf32, #tpu.memory_space<vmem>>, %arg13: memref<128x128xf32, #tpu.memory_space<vmem>>) attributes {dimension_semantics = [#tpu.dimension_semantics<parallel>], iteration_bounds = array<i64: 2>, scalar_prefetch = 0 : i64, scratch_operands = 0 : i64, tpu.core_type = #tpu.core_type<tc>, window_params = [{transform_indices = @transform_0, window_bounds = array<i64: 128, 84>}, {transform_indices = @transform_1, window_bounds = array<i64: 128, 128>}, {transform_indices = @transform_2, window_bounds = array<i64: 128, 1>}, {pipeline_mode = #tpu.pipeline_mode<synchronous>, transform_indices = @transform_3, window_bounds = array<i64: 2, 84>}, {pipeline_mode = #tpu.pipeline_mode<synchronous>, transform_indices = @transform_4, window_bounds = array<i64: 84, 128>}, {pipeline_mode = #tpu.pipeline_mode<synchronous>, transform_indices = @transform_5, window_bounds = array<i64: 384, 128>}, {pipeline_mode = #tpu.pipeline_mode<synchronous>, transform_indices = @transform_6, window_bounds = array<i64: 256, 384>}, {pipeline_mode = #tpu.pipeline_mode<synchronous>, transform_indices = @transform_7, window_bounds = array<i64: 6, 128>}, {pipeline_mode = #tpu.pipeline_mode<synchronous>, transform_indices = @transform_8, window_bounds = array<i64: 6, 128>}, {pipeline_mode = #tpu.pipeline_mode<synchronous>, transform_indices = @transform_9, window_bounds = array<i64: 8, 128>}, {pipeline_mode = #tpu.pipeline_mode<synchronous>, transform_indices = @transform_10, window_bounds = array<i64: 2, 128>}, {transform_indices = @transform_11, window_bounds = array<i64: 128, 1>}, {transform_indices = @transform_12, window_bounds = array<i64: 128, 128>}]} {
    %c0 = arith.constant 0 : index
    %c0_0 = arith.constant 0 : index
    %0 = vector.load %arg1[%c0, %c0_0] : memref<128x84xf32, #tpu.memory_space<vmem>>, vector<128x84xf32>
    %c0_1 = arith.constant 0 : index
    %c0_2 = arith.constant 0 : index
    %1 = vector.load %arg4[%c0_1, %c0_2] : memref<2x84xf32, #tpu.memory_space<vmem>>, vector<1x84xf32>
    %c1 = arith.constant 1 : index
    %c0_3 = arith.constant 0 : index
    %2 = vector.load %arg4[%c1, %c0_3] : memref<2x84xf32, #tpu.memory_space<vmem>>, vector<1x84xf32>
    %cst = arith.constant dense<0.000000e+00> : vector<128xf32>
    %3 = vector.multi_reduction <add>, %0, %cst [1] : vector<128x84xf32> to vector<128xf32>
    %4 = vector.shape_cast %3 : vector<128xf32> to vector<128x1xf32>
    %cst_4 = arith.constant 8.400000e+01 : f32
    %5 = vector.broadcast %cst_4 : f32 to vector<128x1xf32>
    %6 = arith.divf %4, %5 : vector<128x1xf32>
    %7 = arith.mulf %0, %0 : vector<128x84xf32>
    %cst_5 = arith.constant dense<0.000000e+00> : vector<128xf32>
    %8 = vector.multi_reduction <add>, %7, %cst_5 [1] : vector<128x84xf32> to vector<128xf32>
    %9 = vector.shape_cast %8 : vector<128xf32> to vector<128x1xf32>
    %cst_6 = arith.constant 8.400000e+01 : f32
    %10 = vector.broadcast %cst_6 : f32 to vector<128x1xf32>
    %11 = arith.divf %9, %10 : vector<128x1xf32>
    %12 = vector.broadcast %6 : vector<128x1xf32> to vector<128x84xf32>
    %13 = arith.subf %0, %12 : vector<128x84xf32>
    %14 = arith.mulf %6, %6 : vector<128x1xf32>
    %15 = arith.subf %11, %14 : vector<128x1xf32>
    %cst_7 = arith.constant 9.99999974E-6 : f32
    %16 = vector.broadcast %cst_7 : f32 to vector<128x1xf32>
    %17 = arith.addf %15, %16 : vector<128x1xf32>
    %18 = math.rsqrt %17 : vector<128x1xf32>
    %19 = vector.broadcast %18 : vector<128x1xf32> to vector<128x84xf32>
    %20 = arith.mulf %13, %19 : vector<128x84xf32>
    %21 = vector.broadcast %1 : vector<1x84xf32> to vector<128x84xf32>
    %22 = arith.mulf %20, %21 : vector<128x84xf32>
    %23 = vector.broadcast %2 : vector<1x84xf32> to vector<128x84xf32>
    %24 = arith.addf %22, %23 : vector<128x84xf32>
    %c0_8 = arith.constant 0 : index
    %c0_9 = arith.constant 0 : index
    %25 = vector.load %arg5[%c0_8, %c0_9] : memref<84x128xbf16, #tpu.memory_space<vmem>>, vector<84x128xbf16>
    %26 = arith.truncf %24 : vector<128x84xf32> to vector<128x84xbf16>
    %cst_10 = arith.constant dense<0.000000e+00> : vector<128x128xf32>
    %27 = tpu.matmul %26, %25, %cst_10 {dimension_numbers = #tpu.dot_dimension_numbers<[1], [0], [0], [1], [0, 0, 1, 1], [], []>} : vector<128x84xbf16>, vector<84x128xbf16>, vector<128x128xf32> -> vector<128x128xf32>
    %c0_11 = arith.constant 0 : index
    %c0_12 = arith.constant 0 : index
    %28 = vector.load %arg10[%c0_11, %c0_12] : memref<8x128xf32, #tpu.memory_space<vmem>>, vector<1x128xf32>
    %29 = vector.broadcast %28 : vector<1x128xf32> to vector<128x128xf32>
    %30 = arith.addf %27, %29 : vector<128x128xf32>
    %cst_13 = arith.constant 0.000000e+00 : f32
    %31 = vector.broadcast %cst_13 : f32 to vector<128x128xf32>
    %32 = arith.maximumf %30, %31 : vector<128x128xf32>
    %c0_14 = arith.constant 0 : index
    %c0_15 = arith.constant 0 : index
    %33 = vector.load %arg8[%c0_14, %c0_15] : memref<6x128xf32, #tpu.memory_space<vmem>>, vector<1x128xf32>
    %c0_16 = arith.constant 0 : index
    %c0_17 = arith.constant 0 : index
    %34 = vector.load %arg9[%c0_16, %c0_17] : memref<6x128xf32, #tpu.memory_space<vmem>>, vector<1x128xf32>
    %cst_18 = arith.constant dense<0.000000e+00> : vector<128xf32>
    %35 = vector.multi_reduction <add>, %32, %cst_18 [1] : vector<128x128xf32> to vector<128xf32>
    %36 = vector.shape_cast %35 : vector<128xf32> to vector<128x1xf32>
    %cst_19 = arith.constant 1.280000e+02 : f32
    %37 = vector.broadcast %cst_19 : f32 to vector<128x1xf32>
    %38 = arith.divf %36, %37 : vector<128x1xf32>
    %39 = arith.mulf %32, %32 : vector<128x128xf32>
    %cst_20 = arith.constant dense<0.000000e+00> : vector<128xf32>
    %40 = vector.multi_reduction <add>, %39, %cst_20 [1] : vector<128x128xf32> to vector<128xf32>
    %41 = vector.shape_cast %40 : vector<128xf32> to vector<128x1xf32>
    %cst_21 = arith.constant 1.280000e+02 : f32
    %42 = vector.broadcast %cst_21 : f32 to vector<128x1xf32>
    %43 = arith.divf %41, %42 : vector<128x1xf32>
    %44 = vector.broadcast %38 : vector<128x1xf32> to vector<128x128xf32>
    %45 = arith.subf %32, %44 : vector<128x128xf32>
    %46 = arith.mulf %38, %38 : vector<128x1xf32>
    %47 = arith.subf %43, %46 : vector<128x1xf32>
    %cst_22 = arith.constant 9.99999974E-6 : f32
    %48 = vector.broadcast %cst_22 : f32 to vector<128x1xf32>
    %49 = arith.addf %47, %48 : vector<128x1xf32>
    %50 = math.rsqrt %49 : vector<128x1xf32>
    %51 = vector.broadcast %50 : vector<128x1xf32> to vector<128x128xf32>
    %52 = arith.mulf %45, %51 : vector<128x128xf32>
    %53 = vector.broadcast %33 : vector<1x128xf32> to vector<128x128xf32>
    %54 = arith.mulf %52, %53 : vector<128x128xf32>
    %55 = vector.broadcast %34 : vector<1x128xf32> to vector<128x128xf32>
    %56 = arith.addf %54, %55 : vector<128x128xf32>
    %c0_23 = arith.constant 0 : index
    %c0_24 = arith.constant 0 : index
    %57 = vector.load %arg6[%c0_23, %c0_24] : memref<384x128xbf16, #tpu.memory_space<vmem>>, vector<128x128xbf16>
    %58 = arith.truncf %56 : vector<128x128xf32> to vector<128x128xbf16>
    %cst_25 = arith.constant dense<0.000000e+00> : vector<128x128xf32>
    %59 = tpu.matmul %58, %57, %cst_25 {dimension_numbers = #tpu.dot_dimension_numbers<[1], [0], [0], [1], [0, 0, 1, 1], [], []>} : vector<128x128xbf16>, vector<128x128xbf16>, vector<128x128xf32> -> vector<128x128xf32>
    %c1_26 = arith.constant 1 : index
    %c0_27 = arith.constant 0 : index
    %60 = vector.load %arg10[%c1_26, %c0_27] : memref<8x128xf32, #tpu.memory_space<vmem>>, vector<1x128xf32>
    %61 = vector.broadcast %60 : vector<1x128xf32> to vector<128x128xf32>
    %62 = arith.addf %59, %61 : vector<128x128xf32>
    %cst_28 = arith.constant 0.000000e+00 : f32
    %63 = vector.broadcast %cst_28 : f32 to vector<128x128xf32>
    %64 = arith.maximumf %62, %63 : vector<128x128xf32>
    %c1_29 = arith.constant 1 : index
    %c0_30 = arith.constant 0 : index
    %65 = vector.load %arg8[%c1_29, %c0_30] : memref<6x128xf32, #tpu.memory_space<vmem>>, vector<1x128xf32>
    %c1_31 = arith.constant 1 : index
    %c0_32 = arith.constant 0 : index
    %66 = vector.load %arg9[%c1_31, %c0_32] : memref<6x128xf32, #tpu.memory_space<vmem>>, vector<1x128xf32>
    %cst_33 = arith.constant dense<0.000000e+00> : vector<128xf32>
    %67 = vector.multi_reduction <add>, %64, %cst_33 [1] : vector<128x128xf32> to vector<128xf32>
    %68 = vector.shape_cast %67 : vector<128xf32> to vector<128x1xf32>
    %cst_34 = arith.constant 1.280000e+02 : f32
    %69 = vector.broadcast %cst_34 : f32 to vector<128x1xf32>
    %70 = arith.divf %68, %69 : vector<128x1xf32>
    %71 = arith.mulf %64, %64 : vector<128x128xf32>
    %cst_35 = arith.constant dense<0.000000e+00> : vector<128xf32>
    %72 = vector.multi_reduction <add>, %71, %cst_35 [1] : vector<128x128xf32> to vector<128xf32>
    %73 = vector.shape_cast %72 : vector<128xf32> to vector<128x1xf32>
    %cst_36 = arith.constant 1.280000e+02 : f32
    %74 = vector.broadcast %cst_36 : f32 to vector<128x1xf32>
    %75 = arith.divf %73, %74 : vector<128x1xf32>
    %76 = vector.broadcast %70 : vector<128x1xf32> to vector<128x128xf32>
    %77 = arith.subf %64, %76 : vector<128x128xf32>
    %78 = arith.mulf %70, %70 : vector<128x1xf32>
    %79 = arith.subf %75, %78 : vector<128x1xf32>
    %cst_37 = arith.constant 9.99999974E-6 : f32
    %80 = vector.broadcast %cst_37 : f32 to vector<128x1xf32>
    %81 = arith.addf %79, %80 : vector<128x1xf32>
    %82 = math.rsqrt %81 : vector<128x1xf32>
    %83 = vector.broadcast %82 : vector<128x1xf32> to vector<128x128xf32>
    %84 = arith.mulf %77, %83 : vector<128x128xf32>
    %85 = vector.broadcast %65 : vector<1x128xf32> to vector<128x128xf32>
    %86 = arith.mulf %84, %85 : vector<128x128xf32>
    %87 = vector.broadcast %66 : vector<1x128xf32> to vector<128x128xf32>
    %88 = arith.addf %86, %87 : vector<128x128xf32>
    %c0_38 = arith.constant 0 : index
    %c0_39 = arith.constant 0 : index
    %89 = vector.load %arg2[%c0_38, %c0_39] : memref<128x128xf32, #tpu.memory_space<vmem>>, vector<128x128xf32>
    %c0_40 = arith.constant 0 : index
    %c0_41 = arith.constant 0 : index
    %90 = vector.load %arg3[%c0_40, %c0_41] : memref<128x1xf32, #tpu.memory_space<vmem>>, vector<128x1xf32>
    %91 = vector.broadcast %90 : vector<128x1xf32> to vector<128x128xf32>
    %92 = arith.mulf %89, %91 : vector<128x128xf32>
    %c0_42 = arith.constant 0 : index
    %c0_43 = arith.constant 0 : index
    %93 = vector.load %arg7[%c0_42, %c0_43] : memref<256x384xbf16, #tpu.memory_space<vmem>>, vector<128x384xbf16>
    %94 = arith.truncf %88 : vector<128x128xf32> to vector<128x128xbf16>
    %cst_44 = arith.constant dense<0.000000e+00> : vector<128x384xf32>
    %95 = tpu.matmul %94, %93, %cst_44 {dimension_numbers = #tpu.dot_dimension_numbers<[1], [0], [0], [1], [0, 0, 1, 1], [], []>} : vector<128x128xbf16>, vector<128x384xbf16>, vector<128x384xf32> -> vector<128x384xf32>
    %c128 = arith.constant 128 : index
    %c0_45 = arith.constant 0 : index
    %96 = vector.load %arg7[%c128, %c0_45] : memref<256x384xbf16, #tpu.memory_space<vmem>>, vector<128x384xbf16>
    %97 = arith.truncf %92 : vector<128x128xf32> to vector<128x128xbf16>
    %cst_46 = arith.constant dense<0.000000e+00> : vector<128x384xf32>
    %98 = tpu.matmul %97, %96, %cst_46 {dimension_numbers = #tpu.dot_dimension_numbers<[1], [0], [0], [1], [0, 0, 1, 1], [], []>} : vector<128x128xbf16>, vector<128x384xbf16>, vector<128x384xf32> -> vector<128x384xf32>
    %99 = vector.extract_strided_slice %95 {offsets = [0, 0], sizes = [128, 128], strides = [1, 1]} : vector<128x384xf32> to vector<128x128xf32>
    %100 = vector.extract_strided_slice %98 {offsets = [0, 0], sizes = [128, 128], strides = [1, 1]} : vector<128x384xf32> to vector<128x128xf32>
    %101 = arith.addf %99, %100 : vector<128x128xf32>
    %c4 = arith.constant 4 : index
    %c0_47 = arith.constant 0 : index
    %102 = vector.load %arg10[%c4, %c0_47] : memref<8x128xf32, #tpu.memory_space<vmem>>, vector<1x128xf32>
    %103 = vector.broadcast %102 : vector<1x128xf32> to vector<128x128xf32>
    %104 = arith.addf %101, %103 : vector<128x128xf32>
    %cst_48 = arith.constant 5.000000e-01 : f32
    %105 = vector.broadcast %cst_48 : f32 to vector<128x128xf32>
    %106 = arith.mulf %105, %104 : vector<128x128xf32>
    %107 = math.tanh %106 : vector<128x128xf32>
    %cst_49 = arith.constant 5.000000e-01 : f32
    %108 = vector.broadcast %cst_49 : f32 to vector<128x128xf32>
    %109 = arith.mulf %108, %107 : vector<128x128xf32>
    %cst_50 = arith.constant 5.000000e-01 : f32
    %110 = vector.broadcast %cst_50 : f32 to vector<128x128xf32>
    %111 = arith.addf %109, %110 : vector<128x128xf32>
    %112 = vector.extract_strided_slice %95 {offsets = [0, 128], sizes = [128, 128], strides = [1, 1]} : vector<128x384xf32> to vector<128x128xf32>
    %113 = vector.extract_strided_slice %98 {offsets = [0, 128], sizes = [128, 128], strides = [1, 1]} : vector<128x384xf32> to vector<128x128xf32>
    %114 = arith.addf %112, %113 : vector<128x128xf32>
    %c5 = arith.constant 5 : index
    %c0_51 = arith.constant 0 : index
    %115 = vector.load %arg10[%c5, %c0_51] : memref<8x128xf32, #tpu.memory_space<vmem>>, vector<1x128xf32>
    %116 = vector.broadcast %115 : vector<1x128xf32> to vector<128x128xf32>
    %117 = arith.addf %114, %116 : vector<128x128xf32>
    %cst_52 = arith.constant 5.000000e-01 : f32
    %118 = vector.broadcast %cst_52 : f32 to vector<128x128xf32>
    %119 = arith.mulf %118, %117 : vector<128x128xf32>
    %120 = math.tanh %119 : vector<128x128xf32>
    %cst_53 = arith.constant 5.000000e-01 : f32
    %121 = vector.broadcast %cst_53 : f32 to vector<128x128xf32>
    %122 = arith.mulf %121, %120 : vector<128x128xf32>
    %cst_54 = arith.constant 5.000000e-01 : f32
    %123 = vector.broadcast %cst_54 : f32 to vector<128x128xf32>
    %124 = arith.addf %122, %123 : vector<128x128xf32>
    %125 = vector.extract_strided_slice %95 {offsets = [0, 256], sizes = [128, 128], strides = [1, 1]} : vector<128x384xf32> to vector<128x128xf32>
    %c6 = arith.constant 6 : index
    %c0_55 = arith.constant 0 : index
    %126 = vector.load %arg10[%c6, %c0_55] : memref<8x128xf32, #tpu.memory_space<vmem>>, vector<1x128xf32>
    %127 = vector.broadcast %126 : vector<1x128xf32> to vector<128x128xf32>
    %128 = arith.addf %125, %127 : vector<128x128xf32>
    %129 = vector.extract_strided_slice %98 {offsets = [0, 256], sizes = [128, 128], strides = [1, 1]} : vector<128x384xf32> to vector<128x128xf32>
    %c7 = arith.constant 7 : index
    %c0_56 = arith.constant 0 : index
    %130 = vector.load %arg10[%c7, %c0_56] : memref<8x128xf32, #tpu.memory_space<vmem>>, vector<1x128xf32>
    %131 = vector.broadcast %130 : vector<1x128xf32> to vector<128x128xf32>
    %132 = arith.addf %129, %131 : vector<128x128xf32>
    %133 = arith.mulf %111, %132 : vector<128x128xf32>
    %134 = arith.addf %128, %133 : vector<128x128xf32>
    %135 = math.tanh %134 : vector<128x128xf32>
    %cst_57 = arith.constant 1.000000e+00 : f32
    %136 = vector.broadcast %cst_57 : f32 to vector<128x128xf32>
    %137 = arith.subf %136, %124 : vector<128x128xf32>
    %138 = arith.mulf %137, %135 : vector<128x128xf32>
    %139 = arith.mulf %124, %92 : vector<128x128xf32>
    %140 = arith.addf %138, %139 : vector<128x128xf32>
    %c0_58 = arith.constant 0 : index
    %c0_59 = arith.constant 0 : index
    %141 = vector.load %arg13[%c0_58, %c0_59] : memref<128x128xf32, #tpu.memory_space<vmem>>, vector<128x128xf32>
    tpu.vector_store %arg13[%c0_58, %c0_59], %140 {strides = array<i32>} : memref<128x128xf32, #tpu.memory_space<vmem>>, vector<128x128xf32>,
    %c2 = arith.constant 2 : index
    %c0_60 = arith.constant 0 : index
    %142 = vector.load %arg8[%c2, %c0_60] : memref<6x128xf32, #tpu.memory_space<vmem>>, vector<1x128xf32>
    %c2_61 = arith.constant 2 : index
    %c0_62 = arith.constant 0 : index
    %143 = vector.load %arg9[%c2_61, %c0_62] : memref<6x128xf32, #tpu.memory_space<vmem>>, vector<1x128xf32>
    %cst_63 = arith.constant dense<0.000000e+00> : vector<128xf32>
    %144 = vector.multi_reduction <add>, %140, %cst_63 [1] : vector<128x128xf32> to vector<128xf32>
    %145 = vector.shape_cast %144 : vector<128xf32> to vector<128x1xf32>
    %cst_64 = arith.constant 1.280000e+02 : f32
    %146 = vector.broadcast %cst_64 : f32 to vector<128x1xf32>
    %147 = arith.divf %145, %146 : vector<128x1xf32>
    %148 = arith.mulf %140, %140 : vector<128x128xf32>
    %cst_65 = arith.constant dense<0.000000e+00> : vector<128xf32>
    %149 = vector.multi_reduction <add>, %148, %cst_65 [1] : vector<128x128xf32> to vector<128xf32>
    %150 = vector.shape_cast %149 : vector<128xf32> to vector<128x1xf32>
    %cst_66 = arith.constant 1.280000e+02 : f32
    %151 = vector.broadcast %cst_66 : f32 to vector<128x1xf32>
    %152 = arith.divf %150, %151 : vector<128x1xf32>
    %153 = vector.broadcast %147 : vector<128x1xf32> to vector<128x128xf32>
    %154 = arith.subf %140, %153 : vector<128x128xf32>
    %155 = arith.mulf %147, %147 : vector<128x1xf32>
    %156 = arith.subf %152, %155 : vector<128x1xf32>
    %cst_67 = arith.constant 9.99999974E-6 : f32
    %157 = vector.broadcast %cst_67 : f32 to vector<128x1xf32>
    %158 = arith.addf %156, %157 : vector<128x1xf32>
    %159 = math.rsqrt %158 : vector<128x1xf32>
    %160 = vector.broadcast %159 : vector<128x1xf32> to vector<128x128xf32>
    %161 = arith.mulf %154, %160 : vector<128x128xf32>
    %162 = vector.broadcast %142 : vector<1x128xf32> to vector<128x128xf32>
    %163 = arith.mulf %161, %162 : vector<128x128xf32>
    %164 = vector.broadcast %143 : vector<1x128xf32> to vector<128x128xf32>
    %165 = arith.addf %163, %164 : vector<128x128xf32>
    %c3 = arith.constant 3 : index
    %c0_68 = arith.constant 0 : index
    %166 = vector.load %arg8[%c3, %c0_68] : memref<6x128xf32, #tpu.memory_space<vmem>>, vector<1x128xf32>
    %c3_69 = arith.constant 3 : index
    %c0_70 = arith.constant 0 : index
    %167 = vector.load %arg9[%c3_69, %c0_70] : memref<6x128xf32, #tpu.memory_space<vmem>>, vector<1x128xf32>
    %cst_71 = arith.constant dense<0.000000e+00> : vector<128xf32>
    %168 = vector.multi_reduction <add>, %165, %cst_71 [1] : vector<128x128xf32> to vector<128xf32>
    %169 = vector.shape_cast %168 : vector<128xf32> to vector<128x1xf32>
    %cst_72 = arith.constant 1.280000e+02 : f32
    %170 = vector.broadcast %cst_72 : f32 to vector<128x1xf32>
    %171 = arith.divf %169, %170 : vector<128x1xf32>
    %172 = arith.mulf %165, %165 : vector<128x128xf32>
    %cst_73 = arith.constant dense<0.000000e+00> : vector<128xf32>
    %173 = vector.multi_reduction <add>, %172, %cst_73 [1] : vector<128x128xf32> to vector<128xf32>
    %174 = vector.shape_cast %173 : vector<128xf32> to vector<128x1xf32>
    %cst_74 = arith.constant 1.280000e+02 : f32
    %175 = vector.broadcast %cst_74 : f32 to vector<128x1xf32>
    %176 = arith.divf %174, %175 : vector<128x1xf32>
    %177 = vector.broadcast %171 : vector<128x1xf32> to vector<128x128xf32>
    %178 = arith.subf %165, %177 : vector<128x128xf32>
    %179 = arith.mulf %171, %171 : vector<128x1xf32>
    %180 = arith.subf %176, %179 : vector<128x1xf32>
    %cst_75 = arith.constant 9.99999974E-6 : f32
    %181 = vector.broadcast %cst_75 : f32 to vector<128x1xf32>
    %182 = arith.addf %180, %181 : vector<128x1xf32>
    %183 = math.rsqrt %182 : vector<128x1xf32>
    %184 = vector.broadcast %183 : vector<128x1xf32> to vector<128x128xf32>
    %185 = arith.mulf %178, %184 : vector<128x128xf32>
    %186 = vector.broadcast %166 : vector<1x128xf32> to vector<128x128xf32>
    %187 = arith.mulf %185, %186 : vector<128x128xf32>
    %188 = vector.broadcast %167 : vector<1x128xf32> to vector<128x128xf32>
    %189 = arith.addf %187, %188 : vector<128x128xf32>
    %c128_76 = arith.constant 128 : index
    %c0_77 = arith.constant 0 : index
    %190 = vector.load %arg6[%c128_76, %c0_77] : memref<384x128xbf16, #tpu.memory_space<vmem>>, vector<128x128xbf16>
    %191 = arith.truncf %189 : vector<128x128xf32> to vector<128x128xbf16>
    %cst_78 = arith.constant dense<0.000000e+00> : vector<128x128xf32>
    %192 = tpu.matmul %191, %190, %cst_78 {dimension_numbers = #tpu.dot_dimension_numbers<[1], [0], [0], [1], [0, 0, 1, 1], [], []>} : vector<128x128xbf16>, vector<128x128xbf16>, vector<128x128xf32> -> vector<128x128xf32>
    %c2_79 = arith.constant 2 : index
    %c0_80 = arith.constant 0 : index
    %193 = vector.load %arg10[%c2_79, %c0_80] : memref<8x128xf32, #tpu.memory_space<vmem>>, vector<1x128xf32>
    %194 = vector.broadcast %193 : vector<1x128xf32> to vector<128x128xf32>
    %195 = arith.addf %192, %194 : vector<128x128xf32>
    %cst_81 = arith.constant 0.000000e+00 : f32
    %196 = vector.broadcast %cst_81 : f32 to vector<128x128xf32>
    %197 = arith.maximumf %195, %196 : vector<128x128xf32>
    %c4_82 = arith.constant 4 : index
    %c0_83 = arith.constant 0 : index
    %198 = vector.load %arg8[%c4_82, %c0_83] : memref<6x128xf32, #tpu.memory_space<vmem>>, vector<1x128xf32>
    %c4_84 = arith.constant 4 : index
    %c0_85 = arith.constant 0 : index
    %199 = vector.load %arg9[%c4_84, %c0_85] : memref<6x128xf32, #tpu.memory_space<vmem>>, vector<1x128xf32>
    %cst_86 = arith.constant dense<0.000000e+00> : vector<128xf32>
    %200 = vector.multi_reduction <add>, %197, %cst_86 [1] : vector<128x128xf32> to vector<128xf32>
    %201 = vector.shape_cast %200 : vector<128xf32> to vector<128x1xf32>
    %cst_87 = arith.constant 1.280000e+02 : f32
    %202 = vector.broadcast %cst_87 : f32 to vector<128x1xf32>
    %203 = arith.divf %201, %202 : vector<128x1xf32>
    %204 = arith.mulf %197, %197 : vector<128x128xf32>
    %cst_88 = arith.constant dense<0.000000e+00> : vector<128xf32>
    %205 = vector.multi_reduction <add>, %204, %cst_88 [1] : vector<128x128xf32> to vector<128xf32>
    %206 = vector.shape_cast %205 : vector<128xf32> to vector<128x1xf32>
    %cst_89 = arith.constant 1.280000e+02 : f32
    %207 = vector.broadcast %cst_89 : f32 to vector<128x1xf32>
    %208 = arith.divf %206, %207 : vector<128x1xf32>
    %209 = vector.broadcast %203 : vector<128x1xf32> to vector<128x128xf32>
    %210 = arith.subf %197, %209 : vector<128x128xf32>
    %211 = arith.mulf %203, %203 : vector<128x1xf32>
    %212 = arith.subf %208, %211 : vector<128x1xf32>
    %cst_90 = arith.constant 9.99999974E-6 : f32
    %213 = vector.broadcast %cst_90 : f32 to vector<128x1xf32>
    %214 = arith.addf %212, %213 : vector<128x1xf32>
    %215 = math.rsqrt %214 : vector<128x1xf32>
    %216 = vector.broadcast %215 : vector<128x1xf32> to vector<128x128xf32>
    %217 = arith.mulf %210, %216 : vector<128x128xf32>
    %218 = vector.broadcast %198 : vector<1x128xf32> to vector<128x128xf32>
    %219 = arith.mulf %217, %218 : vector<128x128xf32>
    %220 = vector.broadcast %199 : vector<1x128xf32> to vector<128x128xf32>
    %221 = arith.addf %219, %220 : vector<128x128xf32>
    %c256 = arith.constant 256 : index
    %c0_91 = arith.constant 0 : index
    %222 = vector.load %arg6[%c256, %c0_91] : memref<384x128xbf16, #tpu.memory_space<vmem>>, vector<128x128xbf16>
    %223 = arith.truncf %221 : vector<128x128xf32> to vector<128x128xbf16>
    %cst_92 = arith.constant dense<0.000000e+00> : vector<128x128xf32>
    %224 = tpu.matmul %223, %222, %cst_92 {dimension_numbers = #tpu.dot_dimension_numbers<[1], [0], [0], [1], [0, 0, 1, 1], [], []>} : vector<128x128xbf16>, vector<128x128xbf16>, vector<128x128xf32> -> vector<128x128xf32>
    %c3_93 = arith.constant 3 : index
    %c0_94 = arith.constant 0 : index
    %225 = vector.load %arg10[%c3_93, %c0_94] : memref<8x128xf32, #tpu.memory_space<vmem>>, vector<1x128xf32>
    %226 = vector.broadcast %225 : vector<1x128xf32> to vector<128x128xf32>
    %227 = arith.addf %224, %226 : vector<128x128xf32>
    %cst_95 = arith.constant 0.000000e+00 : f32
    %228 = vector.broadcast %cst_95 : f32 to vector<128x128xf32>
    %229 = arith.maximumf %227, %228 : vector<128x128xf32>
    %c5_96 = arith.constant 5 : index
    %c0_97 = arith.constant 0 : index
    %230 = vector.load %arg8[%c5_96, %c0_97] : memref<6x128xf32, #tpu.memory_space<vmem>>, vector<1x128xf32>
    %c5_98 = arith.constant 5 : index
    %c0_99 = arith.constant 0 : index
    %231 = vector.load %arg9[%c5_98, %c0_99] : memref<6x128xf32, #tpu.memory_space<vmem>>, vector<1x128xf32>
    %cst_100 = arith.constant dense<0.000000e+00> : vector<128xf32>
    %232 = vector.multi_reduction <add>, %229, %cst_100 [1] : vector<128x128xf32> to vector<128xf32>
    %233 = vector.shape_cast %232 : vector<128xf32> to vector<128x1xf32>
    %cst_101 = arith.constant 1.280000e+02 : f32
    %234 = vector.broadcast %cst_101 : f32 to vector<128x1xf32>
    %235 = arith.divf %233, %234 : vector<128x1xf32>
    %236 = arith.mulf %229, %229 : vector<128x128xf32>
    %cst_102 = arith.constant dense<0.000000e+00> : vector<128xf32>
    %237 = vector.multi_reduction <add>, %236, %cst_102 [1] : vector<128x128xf32> to vector<128xf32>
    %238 = vector.shape_cast %237 : vector<128xf32> to vector<128x1xf32>
    %cst_103 = arith.constant 1.280000e+02 : f32
    %239 = vector.broadcast %cst_103 : f32 to vector<128x1xf32>
    %240 = arith.divf %238, %239 : vector<128x1xf32>
    %241 = vector.broadcast %235 : vector<128x1xf32> to vector<128x128xf32>
    %242 = arith.subf %229, %241 : vector<128x128xf32>
    %243 = arith.mulf %235, %235 : vector<128x1xf32>
    %244 = arith.subf %240, %243 : vector<128x1xf32>
    %cst_104 = arith.constant 9.99999974E-6 : f32
    %245 = vector.broadcast %cst_104 : f32 to vector<128x1xf32>
    %246 = arith.addf %244, %245 : vector<128x1xf32>
    %247 = math.rsqrt %246 : vector<128x1xf32>
    %248 = vector.broadcast %247 : vector<128x1xf32> to vector<128x128xf32>
    %249 = arith.mulf %242, %248 : vector<128x128xf32>
    %250 = vector.broadcast %230 : vector<1x128xf32> to vector<128x128xf32>
    %251 = arith.mulf %249, %250 : vector<128x128xf32>
    %252 = vector.broadcast %231 : vector<1x128xf32> to vector<128x128xf32>
    %253 = arith.addf %251, %252 : vector<128x128xf32>
    %c0_105 = arith.constant 0 : index
    %c0_106 = arith.constant 0 : index
    %254 = vector.load %arg11[%c0_105, %c0_106] : memref<2x128xf32, #tpu.memory_space<vmem>>, vector<1x128xf32>
    %255 = vector.broadcast %254 : vector<1x128xf32> to vector<128x128xf32>
    %256 = arith.mulf %253, %255 : vector<128x128xf32>
    %cst_107 = arith.constant dense<0.000000e+00> : vector<128xf32>
    %257 = vector.multi_reduction <add>, %256, %cst_107 [1] : vector<128x128xf32> to vector<128xf32>
    %258 = vector.shape_cast %257 : vector<128xf32> to vector<128x1xf32>
    %c1_108 = arith.constant 1 : index
    %c0_109 = arith.constant 0 : index
    %259 = vector.load %arg11[%c1_108, %c0_109] : memref<2x128xf32, #tpu.memory_space<vmem>>, vector<1x1xf32>
    %260 = vector.broadcast %259 : vector<1x1xf32> to vector<128x1xf32>
    %261 = arith.addf %258, %260 : vector<128x1xf32>
    %c0_110 = arith.constant 0 : index
    %c0_111 = arith.constant 0 : index
    %262 = vector.load %arg12[%c0_110, %c0_111] : memref<128x1xf32, #tpu.memory_space<vmem>>, vector<128x1xf32>
    tpu.vector_store %arg12[%c0_110, %c0_111], %261 {strides = array<i32>} : memref<128x1xf32, #tpu.memory_space<vmem>>, vector<128x1xf32>,
    return
  }
  func.func @transform_0(%arg0: i32) -> (i32, i32) {
    %c0_i32 = arith.constant 0 : i32
    %c0_i32_0 = arith.constant 0 : i32
    return %arg0, %c0_i32 : i32, i32
  }
  func.func @transform_1(%arg0: i32) -> (i32, i32) {
    %c0_i32 = arith.constant 0 : i32
    %c0_i32_0 = arith.constant 0 : i32
    return %arg0, %c0_i32 : i32, i32
  }
  func.func @transform_2(%arg0: i32) -> (i32, i32) {
    %c0_i32 = arith.constant 0 : i32
    %c0_i32_0 = arith.constant 0 : i32
    return %arg0, %c0_i32 : i32, i32
  }
  func.func @transform_3(%arg0: i32) -> (i32, i32) {
    %c0_i32 = arith.constant 0 : i32
    %c0_i32_0 = arith.constant 0 : i32
    %c0_i32_1 = arith.constant 0 : i32
    return %c0_i32, %c0_i32_0 : i32, i32
  }
  func.func @transform_4(%arg0: i32) -> (i32, i32) {
    %c0_i32 = arith.constant 0 : i32
    %c0_i32_0 = arith.constant 0 : i32
    %c0_i32_1 = arith.constant 0 : i32
    return %c0_i32, %c0_i32_0 : i32, i32
  }
  func.func @transform_5(%arg0: i32) -> (i32, i32) {
    %c0_i32 = arith.constant 0 : i32
    %c0_i32_0 = arith.constant 0 : i32
    %c0_i32_1 = arith.constant 0 : i32
    return %c0_i32, %c0_i32_0 : i32, i32
  }
  func.func @transform_6(%arg0: i32) -> (i32, i32) {
    %c0_i32 = arith.constant 0 : i32
    %c0_i32_0 = arith.constant 0 : i32
    %c0_i32_1 = arith.constant 0 : i32
    return %c0_i32, %c0_i32_0 : i32, i32
  }
  func.func @transform_7(%arg0: i32) -> (i32, i32) {
    %c0_i32 = arith.constant 0 : i32
    %c0_i32_0 = arith.constant 0 : i32
    %c0_i32_1 = arith.constant 0 : i32
    return %c0_i32, %c0_i32_0 : i32, i32
  }
  func.func @transform_8(%arg0: i32) -> (i32, i32) {
    %c0_i32 = arith.constant 0 : i32
    %c0_i32_0 = arith.constant 0 : i32
    %c0_i32_1 = arith.constant 0 : i32
    return %c0_i32, %c0_i32_0 : i32, i32
  }
  func.func @transform_9(%arg0: i32) -> (i32, i32) {
    %c0_i32 = arith.constant 0 : i32
    %c0_i32_0 = arith.constant 0 : i32
    %c0_i32_1 = arith.constant 0 : i32
    return %c0_i32, %c0_i32_0 : i32, i32
  }
  func.func @transform_10(%arg0: i32) -> (i32, i32) {
    %c0_i32 = arith.constant 0 : i32
    %c0_i32_0 = arith.constant 0 : i32
    %c0_i32_1 = arith.constant 0 : i32
    return %c0_i32, %c0_i32_0 : i32, i32
  }
  func.func @transform_11(%arg0: i32) -> (i32, i32) {
    %c0_i32 = arith.constant 0 : i32
    %c0_i32_0 = arith.constant 0 : i32
    return %arg0, %c0_i32 : i32, i32
  }
  func.func @transform_12(%arg0: i32) -> (i32, i32) {
    %c0_i32 = arith.constant 0 : i32
    %c0_i32_0 = arith.constant 0 : i32
    return %arg0, %c0_i32 : i32, i32
  }
}

</mosaic_0001>

<bundles_post_ra>
// kernel: tpu_custom_call.1
= control target key start
LH: loop header
LB: loop body
LE: loop exit
PB: predicated region body
PF: predicated region fallthrough
CT: control target
= control target key end

     0   :  { %s5415_s21 = smov 0   ;;  %s7859_s0 = inlined_call_operand.vmem [shape: f32[256,84], index: 0, kind: input, shape index: {}]   ;;  %s7860_s1 = inlined_call_operand.vmem [shape: f32[256,128], index: 1, kind: input, shape index: {}, may-alias: {1,12}]   ;;  %s7861_s2 = inlined_call_operand.vmem [shape: f32[256,1], index: 2, kind: input, shape index: {}]   ;;  %s7862_s3 = inlined_call_operand.vmem [shape: f32[2,84], index: 3, kind: input, shape index: {}]   ;;  %s7863_s4 = inlined_call_operand.vmem [shape: bf16[84,128], index: 4, kind: input, shape index: {}]   ;;  %s7864_s5 = inlined_call_operand.vmem [shape: bf16[384,128], index: 5, kind: input, shape index: {}]   ;;  %s7865_s6 = inlined_call_operand.vmem [shape: bf16[256,384], index: 6, kind: input, shape index: {}]   ;;  %s7866_s7 = inlined_call_operand.vmem [shape: f32[6,128], index: 7, kind: input, shape index: {}]   ;;  %s7867_s8 = inlined_call_operand.vmem [shape: f32[6,128], index: 8, kind: input, shape index: {}]   ;;  %s7868_s9 = inlined_call_operand.vmem [shape: f32[8,128], index: 9, kind: input, shape index: {}]   ;;  %s7869_s10 = inlined_call_operand.vmem [shape: f32[2,128], index: 10, kind: input, shape index: {}]   ;;  %s7870_s11 = inlined_call_operand.vmem [shape: f32[256,1], index: 11, kind: output, shape index: {0}]   ;;  %s7871_s12 = inlined_call_operand.vmem [shape: f32[256,128], index: 12, kind: output, shape index: {1}, may-alias: {1,12}]  }
   0x1 LB: > { %s4506_s22 = sadd.s32 4294967295, %s5347_s21   ;;  %p4510_p0 = scmp.ge.s32.totalorder %s5347_s21, 1  ;;  %s5347_s21 = sphi %s5415_s21, %s23_s21  }
   0x2   : > { %p388_p1 = scmp.lt.s32.totalorder %s5347_s21, 3 }
   0x4   : > { %p389_p2 = pnand %p4510_p0, %p388_p1 }
   0x6   : > { %392 = sbr.rel (%p389_p2) target bundleno = 2571 (0xa0b), region = 64 }
   0xb   : > { %s4511_s23 = sshll.u32 %s4506_s22, 4  ;;  %vm494_vm0 = vcmask 687104   ;;  %v4927_v36 = vld [vmem:[%s7863_s4 + $0x28] ss:$0 sps:$4 sm:$0x33]   ;;  %vm857_vm1 = vcmask 1041408  }
   0xc   : > { %p446_p3 = scmp.lt.s32.totalorder %s4511_s23, 31  ;;  %4915 = vmatprep.subr.msk.bf16.mxu0 %vm857_vm1, %v4927_v36  ;;  %v859_v38 = vsel %vm857_vm1, %v4927_v36, 0  ;;  %v4928_v43 = vld [vmem:[%s7863_s4 + $0x20] sm:$0xff]   ;;  %v4929_v46 = vld [vmem:[%s7863_s4 + $0x18] sm:$0xff]   ;;  %v4930_v50 = vld [vmem:[%s7863_s4 + $0x10] sm:$0xff]   ;;  %vm4375_vm2 = vcmask 7168  }
   0xd   : > { %4728 = vmatpush3.bf16.msra.mxu0 %v859_v38  ;;  %v4931_v54 = vld [vmem:[%s7863_s4 + $0x8] sm:$0xff]   ;;  %v4932_v58 = vld [vmem:[%s7863_s4] sm:$0xff]  }
   0xe   : > { %s7937_s23 = smov (!%p446_p3, %s4511_s23), 31  ;;  %4729 = vmatprep.subr.bf16.mxu0 %v4928_v43 }
   0xf   : > { %s5423_s24 = sshll.u32 %s7937_s23, 3 }
  0x10   : > { %s5429_s27 = scalar_lea.vmem %s7859_s0, %s5423_s24  ;;  %s6146_s20 = scalar_lea.vmem %s7861_s2, %s5423_s24 }
  0x11   : > { %v5432_v0 = vld [vmem:[%s5429_s27 + $0x10] sm:$0xff]  ;;  %v5435_v1 = vld [vmem:[%s5429_s27] sm:$0xff]  ;;  %v5438_v2 = vld [vmem:[%s5429_s27 + $0x18] sm:$0xff]  ;;  %4730 = vmatpush3.bf16.msra.mxu0 %v4928_v43  ;;  %s6383_s29 = scalar_lea.vmem %s7860_s1, %s5423_s24  ;;  %s6758_s23 = scalar_lea.vmem %s7871_s12, %s5423_s24 }
  0x12   : > { %v501_v3 = vsel %vm494_vm0, %v5432_v0, 0.0  ;;  %v495_v4 = vsel %vm494_vm0, %v5435_v1, 0.0  ;;  %v5445_v5 = vld [vmem:[%s5429_s27 + $0x8] sm:$0xff]  ;;  %v504_v6 = vsel %vm494_vm0, %v5438_v2, 0.0  ;;  %v560_v9 = vmul.f32 %v5435_v1, %v5435_v1  ;;  %v5467_v17 = vld [vmem:[%s5429_s27 + $0x20] sm:$0xff]  ;;  %v5470_v18 = vld [vmem:[%s5429_s27 + $0x38] sm:$0xff]  ;;  %4731 = vmatprep.subr.bf16.mxu0 %v4929_v46  ;;  %s7822_s17 = scalar_lea.vmem %s7870_s11, %s5423_s24 }
  0x13   : > { %502 = vadd.xlane.f32.xlu1 %v501_v3  ;;  %496 = vadd.xlane.f32.xlu0 %v495_v4  ;;  %v498_v7 = vsel %vm494_vm0, %v5445_v5, 0.0  ;;  %v561_v8 = vmul.f32 %v5445_v5, %v5445_v5  ;;  %v563_v10 = vmul.f32 %v5438_v2, %v5438_v2  ;;  %v562_v11 = vmul.f32 %v5432_v0, %v5432_v0  ;;  %v5464_v16 = vld [vmem:[%s5429_s27 + $0x28] sm:$0xff]  ;;  %v5475_v20 = vld [vmem:[%s5429_s27 + $0x30] sm:$0xff]  ;;  %v5497_v31 = vld [vmem:[%s5429_s27 + $0x40] sm:$0xff] }
  0x14   : > { %v576_v13 = vsel %vm494_vm0, %v560_v9, 0.0  ;;  %v510_v19 = vsel %vm494_vm0, %v5464_v16, 0.0  ;;  %v507_v21 = vsel %vm494_vm0, %v5467_v17, 0.0  ;;  %v516_v22 = vsel %vm494_vm0, %v5470_v18, 0.0  ;;  %v5494_v30 = vld [vmem:[%s5429_s27 + $0x48] sm:$0xff]  ;;  %v5501_v33 = vld [vmem:[%s5429_s27 + $0x58] sm:$0xff] }
  0x15   : > { %v579_v12 = vsel %vm494_vm0, %v561_v8, 0.0  ;;  %v585_v14 = vsel %vm494_vm0, %v563_v10, 0.0  ;;  %v582_v15 = vsel %vm494_vm0, %v562_v11, 0.0  ;;  %v513_v23 = vsel %vm494_vm0, %v5475_v20, 0.0  ;;  %v5504_v34 = vld [vmem:[%s5429_s27 + $0x50] sm:$0xff]  ;;  %4732 = vmatpush3.bf16.msra.mxu0 %v4929_v46  ;;  %v5539_v52 = vld [vmem:[%s5429_s27 + $0x68] sm:$0xff] }
  0x16   : > { %v565_v24 = vmul.f32 %v5464_v16, %v5464_v16  ;;  %v564_v25 = vmul.f32 %v5467_v17, %v5467_v17  ;;  %v567_v26 = vmul.f32 %v5470_v18, %v5470_v18  ;;  %v566_v29 = vmul.f32 %v5475_v20, %v5475_v20  ;;  %4733 = vmatprep.subr.bf16.mxu0 %v4930_v50  ;;  %v5546_v55 = vld [vmem:[%s5429_s27 + $0x60] sm:$0xff]  ;;  %v5556_v59 = vld [vmem:[%s5429_s27 + $0x78] sm:$0xff]  ;;  %v5559_v60 = vld [vmem:[%s5429_s27 + $0x70] sm:$0xff] }
  0x17   : > { %505 = vadd.xlane.f32.xlu1 %v504_v6  ;;  %499 = vadd.xlane.f32.xlu0 %v498_v7  ;;  %v522_v37 = vsel %vm494_vm0, %v5494_v30, 0.0  ;;  %v519_v39 = vsel %vm494_vm0, %v5497_v31, 0.0  ;;  %v528_v40 = vsel %vm494_vm0, %v5501_v33, 0.0  ;;  %v525_v41 = vsel %vm494_vm0, %v5504_v34, 0.0 }
  0x18   : > { %v591_v27 = vsel %vm494_vm0, %v565_v24, 0.0  ;;  %v588_v28 = vsel %vm494_vm0, %v564_v25, 0.0  ;;  %v597_v32 = vsel %vm494_vm0, %v567_v26, 0.0  ;;  %v594_v35 = vsel %vm494_vm0, %v566_v29, 0.0 }
  0x19   : > { %v569_v42 = vmul.f32 %v5494_v30, %v5494_v30  ;;  %v568_v45 = vmul.f32 %v5497_v31, %v5497_v31  ;;  %v571_v47 = vmul.f32 %v5501_v33, %v5501_v33  ;;  %v570_v49 = vmul.f32 %v5504_v34, %v5504_v34  ;;  %4734 = vmatpush3.bf16.msra.mxu0 %v4930_v50 }
  0x1a   : > { %4735 = vmatprep.subr.bf16.mxu0 %v4931_v54  ;;  %v534_v56 = vsel %vm494_vm0, %v5539_v52, 0.0  ;;  %v531_v57 = vsel %vm494_vm0, %v5546_v55, 0.0  ;;  %v540_v61 = vsel %vm494_vm0, %v5556_v59, 0.0  ;;  %v537_v62 = vsel %vm494_vm0, %v5559_v60, 0.0 }
  0x1b   : > { %580 = vadd.xlane.f32.xlu1 %v579_v12  ;;  %577 = vadd.xlane.f32.xlu0 %v576_v13  ;;  %v603_v44 = vsel %vm494_vm0, %v569_v42, 0.0  ;;  %v600_v48 = vsel %vm494_vm0, %v568_v45, 0.0  ;;  %v609_v51 = vsel %vm494_vm0, %v571_v47, 0.0  ;;  %v606_v53 = vsel %vm494_vm0, %v570_v49, 0.0 }
  0x1c   : > { %v573_v63 = vmul.f32 %v5539_v52, %v5539_v52  ;;  %v572_v3 = vmul.f32 %v5546_v55, %v5546_v55  ;;  %v575_v7 = vmul.f32 %v5556_v59, %v5556_v59  ;;  %v574_v8 = vmul.f32 %v5559_v60, %v5559_v60 }
  0x1d   : > { %4736 = vmatpush3.bf16.msra.mxu0 %v4931_v54 }
  0x1e   : > { %4737 = vmatprep.subr.bf16.mxu0 %v4932_v58  ;;  %v615_v4 = vsel %vm494_vm0, %v573_v63, 0.0  ;;  %v612_v6 = vsel %vm494_vm0, %v572_v3, 0.0  ;;  %v621_v9 = vsel %vm494_vm0, %v575_v7, 0.0  ;;  %v618_v10 = vsel %vm494_vm0, %v574_v8, 0.0 }
  0x1f   : > { %586 = vadd.xlane.f32.xlu1 %v585_v14  ;;  %583 = vadd.xlane.f32.xlu0 %v582_v15 }
  0x21   : > { %4738 = vmatpush3.bf16.msra.mxu0 %v4932_v58 }
  0x23   : > { %511 = vadd.xlane.f32.xlu1 %v510_v19  ;;  %508 = vadd.xlane.f32.xlu0 %v507_v21 }
  0x27   : > { %517 = vadd.xlane.f32.xlu1 %v516_v22  ;;  %514 = vadd.xlane.f32.xlu0 %v513_v23 }
  0x2b   : > { %592 = vadd.xlane.f32.xlu1 %v591_v27  ;;  %589 = vadd.xlane.f32.xlu0 %v588_v28 }
  0x2f   : > { %598 = vadd.xlane.f32.xlu1 %v597_v32  ;;  %595 = vadd.xlane.f32.xlu0 %v594_v35 }
  0x33   : > { %523 = vadd.xlane.f32.xlu1 %v522_v37  ;;  %520 = vadd.xlane.f32.xlu0 %v519_v39 }
  0x37   : > { %529 = vadd.xlane.f32.xlu1 %v528_v40  ;;  %526 = vadd.xlane.f32.xlu0 %v525_v41 }
  0x3b   : > { %604 = vadd.xlane.f32.xlu1 %v603_v44  ;;  %601 = vadd.xlane.f32.xlu0 %v600_v48 }
  0x3f   : > { %610 = vadd.xlane.f32.xlu1 %v609_v51  ;;  %607 = vadd.xlane.f32.xlu0 %v606_v53 }
  0x43   : > { %535 = vadd.xlane.f32.xlu1 %v534_v56  ;;  %532 = vadd.xlane.f32.xlu0 %v531_v57 }
  0x47   : > { %541 = vadd.xlane.f32.xlu1 %v540_v61  ;;  %538 = vadd.xlane.f32.xlu0 %v537_v62 }
  0x4b   : > { %616 = vadd.xlane.f32.xlu1 %v615_v4  ;;  %613 = vadd.xlane.f32.xlu0 %v612_v6 }
  0x4f   : > { %622 = vadd.xlane.f32.xlu1 %v621_v9  ;;  %619 = vadd.xlane.f32.xlu0 %v618_v10 }
  0x9c   : > { %v503_v11 = vpop.xlane.xlu1 %502  ;;  %v497_v12 = vpop.xlane.xlu0 %496 }
  0x9d   : > { %v544_v13 = vmul.f32 0.011904762, %v497_v12  ;;  %v5579_v28 = vmul.f32 0.011904762, %v503_v11 }
  0x9f   : > { %v656_v21 = vmul.f32 %v544_v13, %v544_v13  ;;  %v658_v41 = vmul.f32 %v5579_v28, %v5579_v28  ;;  %v640_v9 = vsub.f32 %v5435_v1, %v544_v13  ;;  %v5611_v1 = vld [vmem:[%s7862_s3 + $0x1] ss:$0 sm:$0xff] }
  0xa0   : > { %v506_v14 = vpop.xlane.xlu1 %505  ;;  %v500_v15 = vpop.xlane.xlu0 %499 }
  0xa1   : > { %v545_v19 = vmul.f32 0.011904762, %v500_v15  ;;  %v5577_v24 = vmul.f32 0.011904762, %v506_v14  ;;  %v5604_v14 = vld [vmem:[%s7862_s3] ss:$0 sm:$0xff] }
  0xa3   : > { %v657_v25 = vmul.f32 %v545_v19, %v545_v19  ;;  %v659_v37 = vmul.f32 %v5577_v24, %v5577_v24  ;;  %v641_v4 = vsub.f32 %v5445_v5, %v545_v19 }
  0xa4   : > { %v581_v22 = vpop.xlane.xlu1 %580  ;;  %v578_v23 = vpop.xlane.xlu0 %577 }
  0xa5   : > { %v625_v26 = vmul.f32 0.011904762, %v581_v22  ;;  %v624_v27 = vmul.f32 0.011904762, %v578_v23 }
  0xa7   : > { %v673_v29 = vsub.f32 %v625_v26, %v657_v25  ;;  %v672_v32 = vsub.f32 %v624_v27, %v656_v21  ;;  %v642_v26 = vsub.f32 %v5432_v0, %v5579_v28 }
  0xa8   : > { %v587_v35 = vpop.xlane.xlu1 %586  ;;  %v584_v36 = vpop.xlane.xlu0 %583 }
  0xa9   : > { %v689_v38 = vadd.f32 1e-05, %v673_v29  ;;  %v688_v39 = vadd.f32 1e-05, %v672_v32  ;;  %v627_v40 = vmul.f32 0.011904762, %v587_v35  ;;  %v643_v35 = vsub.f32 %v5438_v2, %v5577_v24 }
  0xaa   : > { %v626_v42 = vmul.f32 0.011904762, %v584_v36 }
  0xab   : > { %5021 = vrsqrt.f32 %v689_v38  ;;  %v675_v43 = vsub.f32 %v627_v40, %v659_v37 }
  0xac   : > { %5023 = vrsqrt.f32 %v688_v39  ;;  %v674_v44 = vsub.f32 %v626_v42, %v658_v41  ;;  %v512_v45 = vpop.xlane.xlu1 %511  ;;  %v509_v46 = vpop.xlane.xlu0 %508 }
  0xad   : > { %v691_v47 = vadd.f32 1e-05, %v675_v43  ;;  %v5585_v51 = vmul.f32 0.011904762, %v512_v45  ;;  %v5587_v53 = vmul.f32 0.011904762, %v509_v46 }
  0xae   : > { %v690_v48 = vadd.f32 1e-05, %v674_v44 }
  0xaf   : > { %5025 = vrsqrt.f32 %v691_v47  ;;  %v661_v58 = vmul.f32 %v5585_v51, %v5585_v51  ;;  %v660_v61 = vmul.f32 %v5587_v53, %v5587_v53 }
  0xb0   : > { %5027 = vrsqrt.f32 %v690_v48  ;;  %v518_v49 = vpop.xlane.xlu1 %517  ;;  %v515_v50 = vpop.xlane.xlu0 %514 }
  0xb1   : > { %v5589_v54 = vmul.f32 0.011904762, %v518_v49  ;;  %v5595_v3 = vmul.f32 0.011904762, %v515_v50 }
  0xb3   : > { %v663_v10 = vmul.f32 %v5589_v54, %v5589_v54  ;;  %v662_v19 = vmul.f32 %v5595_v3, %v5595_v3 }
  0xb4   : > { %v593_v56 = vpop.xlane.xlu1 %592  ;;  %v590_v57 = vpop.xlane.xlu0 %589 }
  0xb5   : > { %v629_v62 = vmul.f32 0.011904762, %v593_v56  ;;  %v628_v63 = vmul.f32 0.011904762, %v590_v57 }
  0xb7   : > { %v677_v6 = vsub.f32 %v629_v62, %v661_v58  ;;  %v676_v7 = vsub.f32 %v628_v63, %v660_v61 }
  0xb8   : > { %v5022_v8 = vpop.eup %5021  ;;  %v599_v11 = vpop.xlane.xlu1 %598 }
  0xb9   : > { %v596_v12 = vpop.xlane.xlu0 %595  ;;  %v5024_v15 = vpop.eup %5023  ;;  %v693_v21 = vadd.f32 1e-05, %v677_v6  ;;  %v692_v22 = vadd.f32 1e-05, %v676_v7  ;;  %v631_v23 = vmul.f32 0.011904762, %v599_v11  ;;  %v721_v5 = vmul.f32 %v5022_v8, %v641_v4 }
  0xba   : > { %v630_v25 = vmul.f32 0.011904762, %v596_v12  ;;  %v720_v13 = vmul.f32 %v5024_v15, %v640_v9  ;;  %v645_v9 = vsub.f32 %v5464_v16, %v5585_v51  ;;  %v644_v15 = vsub.f32 %v5467_v17, %v5587_v53 }
  0xbb   : > { %5029 = vrsqrt.f32 %v693_v21  ;;  %v679_v27 = vsub.f32 %v631_v23, %v663_v10  ;;  %v741_v29 = vmul.f32 %v5604_v14, %v721_v5  ;;  %v647_v17 = vsub.f32 %v5470_v18, %v5589_v54 }
  0xbc   : > { %v5026_v32 = vpop.eup %5025  ;;  %5031 = vrsqrt.f32 %v692_v22  ;;  %v678_v36 = vsub.f32 %v630_v25, %v662_v19  ;;  %v524_v37 = vpop.xlane.xlu1 %523  ;;  %v740_v39 = vmul.f32 %v5604_v14, %v720_v13 }
  0xbd   : > { %v521_v38 = vpop.xlane.xlu0 %520  ;;  %v5028_v40 = vpop.eup %5027  ;;  %v695_v41 = vadd.f32 1e-05, %v679_v27  ;;  %v761_v42 = vadd.f32 %v5611_v1, %v741_v29  ;;  %v723_v44 = vmul.f32 %v5026_v32, %v643_v35  ;;  %v5622_v47 = vmul.f32 0.011904762, %v524_v37 }
  0xbe   : > { %v694_v43 = vadd.f32 1e-05, %v678_v36  ;;  %v760_v0 = vadd.f32 %v5611_v1, %v740_v39  ;;  %v722_v28 = vmul.f32 %v5028_v40, %v642_v26  ;;  %v5624_v48 = vmul.f32 0.011904762, %v521_v38 }
  0xbf   : > { %5033 = vrsqrt.f32 %v695_v41  ;;  %v743_v49 = vmul.f32 %v5604_v14, %v723_v44  ;;  %v665_v62 = vmul.f32 %v5622_v47, %v5622_v47  ;;  %v646_v35 = vsub.f32 %v5475_v20, %v5595_v3 }
  0xc0   : > { %5035 = vrsqrt.f32 %v694_v43  ;;  %v530_v45 = vpop.xlane.xlu1 %529  ;;  %v787_v2 = vpack.c.bf16 %v761_v42, %v760_v0  ;;  %v742_v24 = vmul.f32 %v5604_v14, %v722_v28  ;;  %v664_v63 = vmul.f32 %v5624_v48, %v5624_v48 }
  0xc1   : > { %v527_v46 = vpop.xlane.xlu0 %526  ;;  %v5629_v56 = vmul.f32 0.011904762, %v530_v45  ;;  %v763_v61 = vadd.f32 %v5611_v1, %v743_v49 }
  0xc2   : > { %4739 = vmatprep.mubr.msk.bf16.mxu0 %vm494_vm0, %v787_v2  ;;  %v762_v50 = vadd.f32 %v5611_v1, %v742_v24  ;;  %v5636_v7 = vmul.f32 0.011904762, %v527_v46 }
  0xc3   : > { %v667_v21 = vmul.f32 %v5629_v56, %v5629_v56 }
  0xc4   : > { %v605_v57 = vpop.xlane.xlu1 %604  ;;  %v788_v8 = vpack.c.bf16 %v763_v61, %v762_v50  ;;  %v666_v16 = vmul.f32 %v5636_v7, %v5636_v7 }
  0xc5   : > { %v602_v58 = vpop.xlane.xlu0 %601  ;;  %v633_v4 = vmul.f32 0.011904762, %v605_v57 }
  0xc6   : > { %v632_v6 = vmul.f32 0.011904762, %v602_v58  ;;  %4740 = vmatmul.mubr.msk.bf16.vlgmr.msra.gmra.mxu0 %vm494_vm0, %v788_v8 }
  0xc7   : > { %v681_v10 = vsub.f32 %v633_v4, %v665_v62 }
  0xc8   : > { %v680_v11 = vsub.f32 %v632_v6, %v664_v63  ;;  %v5030_v12 = vpop.eup %5029  ;;  %v611_v22 = vpop.xlane.xlu1 %610 }
  0xc9   : > { %v608_v23 = vpop.xlane.xlu0 %607  ;;  %v5032_v5 = vpop.eup %5031  ;;  %v697_v19 = vadd.f32 1e-05, %v681_v10  ;;  %v635_v13 = vmul.f32 0.011904762, %v611_v22  ;;  %v725_v26 = vmul.f32 %v5030_v12, %v645_v9  ;;  %v649_v9 = vsub.f32 %v5494_v30, %v5622_v47 }
  0xca   : > { %v696_v25 = vadd.f32 1e-05, %v680_v11  ;;  %v634_v51 = vmul.f32 0.011904762, %v608_v23  ;;  %v724_v27 = vmul.f32 %v5032_v5, %v644_v15  ;;  %v648_v15 = vsub.f32 %v5497_v31, %v5624_v48 }
  0xcb   : > { %5037 = vrsqrt.f32 %v697_v19  ;;  %v683_v53 = vsub.f32 %v635_v13, %v667_v21  ;;  %v745_v29 = vmul.f32 %v5604_v14, %v725_v26 }
  0xcc   : > { %v5034_v32 = vpop.eup %5033  ;;  %5039 = vrsqrt.f32 %v696_v25  ;;  %v682_v36 = vsub.f32 %v634_v51, %v666_v16  ;;  %v536_v37 = vpop.xlane.xlu1 %535  ;;  %v744_v39 = vmul.f32 %v5604_v14, %v724_v27  ;;  %v651_v51 = vsub.f32 %v5501_v33, %v5629_v56 }
  0xcd   : > { %v533_v38 = vpop.xlane.xlu0 %532  ;;  %v5036_v40 = vpop.eup %5035  ;;  %v699_v41 = vadd.f32 1e-05, %v683_v53  ;;  %v765_v42 = vadd.f32 %v5611_v1, %v745_v29  ;;  %v727_v0 = vmul.f32 %v5034_v32, %v647_v17  ;;  %v5656_v45 = vmul.f32 0.011904762, %v536_v37 }
  0xce   : > { %v698_v43 = vadd.f32 1e-05, %v682_v36  ;;  %v764_v18 = vadd.f32 %v5611_v1, %v744_v39  ;;  %v726_v54 = vmul.f32 %v5036_v40, %v646_v35  ;;  %v5658_v46 = vmul.f32 0.011904762, %v533_v38 }
  0xcf   : > { %5041 = vrsqrt.f32 %v699_v41  ;;  %v747_v2 = vmul.f32 %v5604_v14, %v727_v0  ;;  %v669_v61 = vmul.f32 %v5656_v45, %v5656_v45  ;;  %v650_v17 = vsub.f32 %v5504_v34, %v5636_v7 }
  0xd0   : > { %5043 = vrsqrt.f32 %v698_v43  ;;  %v542_v28 = vpop.xlane.xlu1 %541  ;;  %v789_v20 = vpack.c.bf16 %v765_v42, %v764_v18  ;;  %v746_v3 = vmul.f32 %v5604_v14, %v726_v54  ;;  %v668_v62 = vmul.f32 %v5658_v46, %v5658_v46 }
  0xd1   : > { %v539_v44 = vpop.xlane.xlu0 %538  ;;  %v5663_v49 = vmul.f32 0.011904762, %v542_v28  ;;  %v767_v58 = vadd.f32 %v5611_v1, %v747_v2  ;;  %v653_v43 = vsub.f32 %v5539_v52, %v5656_v45  ;;  %v652_v54 = vsub.f32 %v5546_v55, %v5658_v46 }
  0xd2   : > { %4743 = vmatprep.mubr.msk.bf16.mxu0 %vm494_vm0, %v789_v20  ;;  %v766_v24 = vadd.f32 %v5611_v1, %v746_v3  ;;  %v558_v6 = vmul.f32 0.011904762, %v539_v44 }
  0xd3   : > { %v671_v21 = vmul.f32 %v5663_v49, %v5663_v49  ;;  %v655_v20 = vsub.f32 %v5556_v59, %v5663_v49 }
  0xd4   : > { %v617_v50 = vpop.xlane.xlu1 %616  ;;  %v790_v8 = vpack.c.bf16 %v767_v58, %v766_v24  ;;  %v670_v16 = vmul.f32 %v558_v6, %v558_v6  ;;  %v654_v24 = vsub.f32 %v5559_v60, %v558_v6 }
  0xd5   : > { %v614_v57 = vpop.xlane.xlu0 %613  ;;  %v637_v63 = vmul.f32 0.011904762, %v617_v50 }
  0xd6   : > { %v636_v4 = vmul.f32 0.011904762, %v614_v57  ;;  %4744 = vmatmul.mubr.msk.bf16.gmra.mxu0 %vm494_vm0, %v790_v8 }
  0xd7   : > { %v685_v10 = vsub.f32 %v637_v63, %v669_v61  ;;  %v5711_v63 = vld [vmem:[%s7868_s9] ss:$0 sm:$0xff] }
  0xd8   : > { %v684_v11 = vsub.f32 %v636_v4, %v668_v62  ;;  %v5038_v12 = vpop.eup %5037  ;;  %v623_v22 = vpop.xlane.xlu1 %622 }
  0xd9   : > { %v620_v23 = vpop.xlane.xlu0 %619  ;;  %v5040_v5 = vpop.eup %5039  ;;  %v701_v19 = vadd.f32 1e-05, %v685_v10  ;;  %v639_v13 = vmul.f32 0.011904762, %v623_v22  ;;  %v729_v26 = vmul.f32 %v5038_v12, %v649_v9 }
  0xda   : > { %v700_v25 = vadd.f32 1e-05, %v684_v11  ;;  %v638_v30 = vmul.f32 0.011904762, %v620_v23  ;;  %v728_v47 = vmul.f32 %v5040_v5, %v648_v15 }
  0xdb   : > { %5045 = vrsqrt.f32 %v701_v19  ;;  %v687_v31 = vsub.f32 %v639_v13, %v671_v21  ;;  %v749_v48 = vmul.f32 %v5604_v14, %v729_v26 }
  0xdc   : > { %v5042_v27 = vpop.eup %5041  ;;  %5047 = vrsqrt.f32 %v700_v25  ;;  %v686_v53 = vsub.f32 %v638_v30, %v670_v16  ;;  %v748_v29 = vmul.f32 %v5604_v14, %v728_v47 }
  0xdd   : > { %v5044_v32 = vpop.eup %5043  ;;  %v703_v35 = vadd.f32 1e-05, %v687_v31  ;;  %v769_v36 = vadd.f32 %v5611_v1, %v749_v48  ;;  %v731_v37 = vmul.f32 %v5042_v27, %v651_v51 }
  0xde   : > { %v702_v38 = vadd.f32 1e-05, %v686_v53  ;;  %v768_v33 = vadd.f32 %v5611_v1, %v748_v29  ;;  %v730_v56 = vmul.f32 %v5044_v32, %v650_v17 }
  0xdf   : > { %5049 = vrsqrt.f32 %v703_v35  ;;  %v751_v39 = vmul.f32 %v5604_v14, %v731_v37  ;;  %v4933_v35 = vld [vmem:[%s7864_s5 + $0x38] sm:$0xff]  }
  0xe0   : > { %5051 = vrsqrt.f32 %v702_v38  ;;  %v791_v40 = vpack.c.bf16 %v769_v36, %v768_v33  ;;  %v750_v34 = vmul.f32 %v5604_v14, %v730_v56  ;;  %4755 = vmatprep.subr.bf16.mxu1 %v4933_v35  ;;  %v4934_v56 = vld [vmem:[%s7864_s5 + $0x30] sm:$0xff]  }
  0xe1   : > { %v771_v7 = vadd.f32 %v5611_v1, %v751_v39  ;;  %4756 = vmatpush3.bf16.msra.mxu1 %v4933_v35 }
  0xe2   : > { %4747 = vmatprep.mubr.msk.bf16.mxu0 %vm494_vm0, %v791_v40  ;;  %v770_v41 = vadd.f32 %v5611_v1, %v750_v34  ;;  %4757 = vmatprep.subr.bf16.mxu1 %v4934_v56 }
  0xe4   : > { %v792_v42 = vpack.c.bf16 %v771_v7, %v770_v41 }
  0xe5   : > { %4758 = vmatpush3.bf16.msra.mxu1 %v4934_v56 }
  0xe6   : > { %4748 = vmatmul.mubr.msk.bf16.gmra.mxu0 %vm494_vm0, %v792_v42 }
  0xe8   : > { %v5046_v18 = vpop.eup %5045 }
  0xe9   : > { %v5048_v0 = vpop.eup %5047  ;;  %v733_v28 = vmul.f32 %v5046_v18, %v653_v43  ;;  %v4935_v43 = vld [vmem:[%s7864_s5 + $0x28] sm:$0xff]  }
  0xea   : > { %v732_v44 = vmul.f32 %v5048_v0, %v652_v54  ;;  %4759 = vmatprep.subr.bf16.mxu1 %v4935_v43 }
  0xeb   : > { %v753_v3 = vmul.f32 %v5604_v14, %v733_v28  ;;  %4760 = vmatpush3.bf16.msra.mxu1 %v4935_v43 }
  0xec   : > { %v5050_v2 = vpop.eup %5049  ;;  %v752_v50 = vmul.f32 %v5604_v14, %v732_v44  ;;  %v4936_v44 = vld [vmem:[%s7864_s5 + $0x20] sm:$0xff]  }
  0xed   : > { %v5052_v57 = vpop.eup %5051  ;;  %v773_v52 = vadd.f32 %v5611_v1, %v753_v3  ;;  %v735_v45 = vmul.f32 %v5050_v2, %v655_v20  ;;  %4761 = vmatprep.subr.bf16.mxu1 %v4936_v44  ;;  %v4937_v2 = vld [vmem:[%s7864_s5 + $0x18] sm:$0xff]  }
  0xee   : > { %v772_v58 = vadd.f32 %v5611_v1, %v752_v50  ;;  %v734_v55 = vmul.f32 %v5052_v57, %v654_v24 }
  0xef   : > { %v755_v46 = vmul.f32 %v5604_v14, %v735_v45  ;;  %4762 = vmatpush3.bf16.msra.mxu1 %v4936_v44  ;;  %v4938_v45 = vld [vmem:[%s7864_s5 + $0x10] sm:$0xff]  }
  0xf0   : > { %v793_v61 = vpack.c.bf16 %v773_v52, %v772_v58  ;;  %v754_v62 = vmul.f32 %v5604_v14, %v734_v55  ;;  %4763 = vmatprep.subr.bf16.mxu1 %v4937_v2 }
  0xf1   : > { %v775_v59 = vadd.f32 %v5611_v1, %v755_v46 }
  0xf2   : > { %4751 = vmatprep.mubr.msk.bf16.mxu0 %vm494_vm0, %v793_v61  ;;  %v774_v60 = vadd.f32 %v5611_v1, %v754_v62 }
  0xf3   : > { %4764 = vmatpush3.bf16.msra.mxu1 %v4937_v2 }
  0xf4   : > { %v794_v49 = vpack.c.bf16 %v775_v59, %v774_v60  ;;  %4765 = vmatprep.subr.bf16.mxu1 %v4938_v45  ;;  %v4939_v60 = vld [vmem:[%s7864_s5 + $0x8] sm:$0xff]  }
  0xf6   : > { %4752 = vmatmul.mubr.msk.bf16.gmra.mxu0 %vm494_vm0, %v794_v49 }
  0xf7   : > { %4766 = vmatpush3.bf16.msra.mxu1 %v4938_v45 }
  0xf8   : > { %4767 = vmatprep.subr.bf16.mxu1 %v4939_v60 }
  0xfb   : > { %4768 = vmatpush3.bf16.msra.mxu1 %v4939_v60 }
 0x186   : > { %v4741_v4 = vpop.f32.mrf.mxu0 }
 0x187   : > { %v904_v6 = vadd.f32 %v4741_v4, %v5711_v63 }
 0x188   : > { %v895_v8 = vpop.f32.mrf.mxu0 }
 0x189   : > { %v5714_v9 = vmax.f32 %v904_v6, 0.0  ;;  %v896_v14 = vadd.f32 %v5711_v63, %v895_v8 }
 0x18a   : > { %v4742_v10 = vpop.f32.mrf.mxu0 }
 0x18b   : > { %v907_v11 = vadd.f32 %v4742_v10, %v5711_v63  ;;  %980 = vadd.xlane.f32.xlu0 %v5714_v9  ;;  %v5719_v12 = vmax.f32 %v896_v14, 0.0  ;;  %v1027_v23 = vmul.f32 %v5714_v9, %v5714_v9  ;;  %v4940_v14 = vld [vmem:[%s7864_s5] sm:$0xff]  }
 0x18c   : > { %v898_v1 = vpop.f32.mrf.mxu0  ;;  %4769 = vmatprep.subr.bf16.mxu1 %v4940_v14 }
 0x18d   : > { %v5721_v15 = vmax.f32 %v907_v11, 0.0  ;;  %v899_v21 = vadd.f32 %v5711_v63, %v898_v1  ;;  %v1025_v19 = vmul.f32 %v5719_v12, %v5719_v12  ;;  %4770 = vmatpush3.bf16.msra.mxu1 %v4940_v14 }
 0x18f   : > { %982 = vadd.xlane.f32.xlu1 %v5721_v15  ;;  %976 = vadd.xlane.f32.xlu0 %v5719_v12  ;;  %v5726_v22 = vmax.f32 %v899_v21, 0.0  ;;  %v1028_v5 = vmul.f32 %v5721_v15, %v5721_v15 }
 0x191   : > { %v1026_v47 = vmul.f32 %v5726_v22, %v5726_v22 }
 0x193   : > { %978 = vadd.xlane.f32.xlu1 %v5726_v22  ;;  %1045 = vadd.xlane.f32.xlu0 %v1027_v23 }
 0x196   : > { %v4745_v25 = vpop.f32.mrf.mxu0 }
 0x197   : > { %v920_v13 = vadd.f32 %v4745_v25, %v5711_v63  ;;  %1047 = vadd.xlane.f32.xlu1 %v1028_v5  ;;  %1041 = vadd.xlane.f32.xlu0 %v1025_v19 }
 0x198   : > { %v911_v26 = vpop.f32.mrf.mxu0 }
 0x199   : > { %v5736_v16 = vmax.f32 %v920_v13, 0.0  ;;  %v912_v30 = vadd.f32 %v5711_v63, %v911_v26 }
 0x19a   : > { %v4746_v51 = vpop.f32.mrf.mxu0 }
 0x19b   : > { %v923_v31 = vadd.f32 %v4746_v51, %v5711_v63  ;;  %1043 = vadd.xlane.f32.xlu1 %v1026_v47  ;;  %988 = vadd.xlane.f32.xlu0 %v5736_v16  ;;  %v5743_v27 = vmax.f32 %v912_v30, 0.0  ;;  %v1031_v32 = vmul.f32 %v5736_v16, %v5736_v16 }
 0x19c   : > { %v914_v48 = vpop.f32.mrf.mxu0 }
 0x19d   : > { %v5745_v17 = vmax.f32 %v923_v31, 0.0  ;;  %v915_v53 = vadd.f32 %v5711_v63, %v914_v48  ;;  %v1029_v33 = vmul.f32 %v5743_v27, %v5743_v27 }
 0x19f   : > { %990 = vadd.xlane.f32.xlu1 %v5745_v17  ;;  %984 = vadd.xlane.f32.xlu0 %v5743_v27  ;;  %v5750_v29 = vmax.f32 %v915_v53, 0.0  ;;  %v1032_v38 = vmul.f32 %v5745_v17, %v5745_v17 }
 0x1a1   : > { %v1030_v42 = vmul.f32 %v5750_v29, %v5750_v29 }
 0x1a3   : > { %986 = vadd.xlane.f32.xlu1 %v5750_v29  ;;  %1053 = vadd.xlane.f32.xlu0 %v1031_v32 }
 0x1a6   : > { %v4749_v36 = vpop.f32.mrf.mxu0 }
 0x1a7   : > { %v936_v37 = vadd.f32 %v4749_v36, %v5711_v63  ;;  %1055 = vadd.xlane.f32.xlu1 %v1032_v38  ;;  %1049 = vadd.xlane.f32.xlu0 %v1029_v33 }
 0x1a8   : > { %v927_v39 = vpop.f32.mrf.mxu0 }
 0x1a9   : > { %v5766_v40 = vmax.f32 %v936_v37, 0.0  ;;  %v928_v7 = vadd.f32 %v5711_v63, %v927_v39 }
 0x1aa   : > { %v4750_v34 = vpop.f32.mrf.mxu0 }
 0x1ab   : > { %v939_v41 = vadd.f32 %v4750_v34, %v5711_v63  ;;  %1051 = vadd.xlane.f32.xlu1 %v1030_v42  ;;  %996 = vadd.xlane.f32.xlu0 %v5766_v40  ;;  %v5778_v0 = vmax.f32 %v928_v7, 0.0  ;;  %v1035_v3 = vmul.f32 %v5766_v40, %v5766_v40 }
 0x1ac   : > { %v930_v18 = vpop.f32.mrf.mxu0 }
 0x1ad   : > { %v5775_v54 = vmax.f32 %v939_v41, 0.0  ;;  %v931_v28 = vadd.f32 %v5711_v63, %v930_v18  ;;  %v1033_v52 = vmul.f32 %v5778_v0, %v5778_v0 }
 0x1af   : > { %998 = vadd.xlane.f32.xlu1 %v5775_v54  ;;  %992 = vadd.xlane.f32.xlu0 %v5778_v0  ;;  %v5786_v20 = vmax.f32 %v931_v28, 0.0  ;;  %v1036_v57 = vmul.f32 %v5775_v54, %v5775_v54 }
 0x1b1   : > { %v1034_v59 = vmul.f32 %v5786_v20, %v5786_v20 }
 0x1b3   : > { %994 = vadd.xlane.f32.xlu1 %v5786_v20  ;;  %1061 = vadd.xlane.f32.xlu0 %v1035_v3 }
 0x1b6   : > { %v4753_v24 = vpop.f32.mrf.mxu0 }
 0x1b7   : > { %v952_v50 = vadd.f32 %v4753_v24, %v5711_v63  ;;  %1063 = vadd.xlane.f32.xlu1 %v1036_v57  ;;  %1057 = vadd.xlane.f32.xlu0 %v1033_v52 }
 0x1b8   : > { %v943_v58 = vpop.f32.mrf.mxu0 }
 0x1b9   : > { %v5802_v55 = vmax.f32 %v952_v50, 0.0  ;;  %v944_v61 = vadd.f32 %v5711_v63, %v943_v58 }
 0x1ba   : > { %v4754_v46 = vpop.f32.mrf.mxu0 }
 0x1bb   : > { %v955_v62 = vadd.f32 %v4754_v46, %v5711_v63  ;;  %1059 = vadd.xlane.f32.xlu1 %v1034_v59  ;;  %1004 = vadd.xlane.f32.xlu0 %v5802_v55  ;;  %v5814_v6 = vmax.f32 %v944_v61, 0.0  ;;  %v1039_v1 = vmul.f32 %v5802_v55, %v5802_v55 }
 0x1bc   : > { %v946_v49 = vpop.f32.mrf.mxu0 }
 0x1bd   : > { %v5811_v4 = vmax.f32 %v955_v62, 0.0  ;;  %v947_v8 = vadd.f32 %v5711_v63, %v946_v49  ;;  %v1037_v11 = vmul.f32 %v5814_v6, %v5814_v6 }
 0x1bf   : > { %1006 = vadd.xlane.f32.xlu1 %v5811_v4  ;;  %1000 = vadd.xlane.f32.xlu0 %v5814_v6  ;;  %v5822_v10 = vmax.f32 %v947_v8, 0.0  ;;  %v1040_v21 = vmul.f32 %v5811_v4, %v5811_v4 }
 0x1c1   : > { %v1038_v63 = vmul.f32 %v5822_v10, %v5822_v10 }
 0x1c3   : > { %1002 = vadd.xlane.f32.xlu1 %v5822_v10  ;;  %1065 = vadd.xlane.f32.xlu0 %v1037_v11 }
 0x1c7   : > { %1067 = vadd.xlane.f32.xlu1 %v1038_v63  ;;  %1069 = vadd.xlane.f32.xlu0 %v1039_v1 }
 0x1cb   : > { %1071 = vadd.xlane.f32.xlu1 %v1040_v21 }
 0x214   : > { %v981_v23 = vpop.xlane.xlu0 %980 }
 0x215   : > { %v5833_v25 = vmul.f32 0.0078125, %v981_v23 }
 0x217   : > { %v1107_v47 = vmul.f32 %v5833_v25, %v5833_v25 }
 0x218   : > { %v983_v5 = vpop.xlane.xlu1 %982  ;;  %v977_v19 = vpop.xlane.xlu0 %976 }
 0x219   : > { %v5835_v13 = vmul.f32 0.0078125, %v983_v5  ;;  %v1009_v51 = vmul.f32 0.0078125, %v977_v19 }
 0x21b   : > { %v1108_v53 = vmul.f32 %v5835_v13, %v5835_v13  ;;  %v1105_v36 = vmul.f32 %v1009_v51, %v1009_v51 }
 0x21c   : > { %v979_v26 = vpop.xlane.xlu1 %978  ;;  %v1046_v30 = vpop.xlane.xlu0 %1045 }
 0x21d   : > { %v1075_v31 = vmul.f32 0.0078125, %v1046_v30  ;;  %v5841_v37 = vmul.f32 0.0078125, %v979_v26  ;;  %v1091_v26 = vsub.f32 %v5714_v9, %v5833_v25  ;;  %v1092_v30 = vsub.f32 %v5721_v15, %v5835_v13 }
 0x21f   : > { %v1123_v48 = vsub.f32 %v1075_v31, %v1107_v47  ;;  %v1106_v42 = vmul.f32 %v5841_v37, %v5841_v37  ;;  %v1089_v47 = vsub.f32 %v5719_v12, %v1009_v51  ;;  %v1090_v9 = vsub.f32 %v5726_v22, %v5841_v37 }
 0x220   : > { %v1048_v32 = vpop.xlane.xlu1 %1047  ;;  %v1042_v35 = vpop.xlane.xlu0 %1041 }
 0x221   : > { %v1076_v38 = vmul.f32 0.0078125, %v1048_v32  ;;  %v1073_v33 = vmul.f32 0.0078125, %v1042_v35  ;;  %v1139_v56 = vadd.f32 1e-05, %v1123_v48 }
 0x223   : > { %v1124_v39 = vsub.f32 %v1076_v38, %v1108_v53  ;;  %v1121_v34 = vsub.f32 %v1073_v33, %v1105_v36  ;;  %5053 = vrsqrt.f32 %v1139_v56 }
 0x224   : > { %v1044_v7 = vpop.xlane.xlu1 %1043  ;;  %v989_v41 = vpop.xlane.xlu0 %988 }
 0x225   : > { %v1140_v43 = vadd.f32 1e-05, %v1124_v39  ;;  %v1137_v18 = vadd.f32 1e-05, %v1121_v34  ;;  %v1074_v28 = vmul.f32 0.0078125, %v1044_v7  ;;  %v5845_v50 = vmul.f32 0.0078125, %v989_v41 }
 0x226   : > { %v5871_v39 = vld [vmem:[%s7866_s7] ss:$0 sm:$0xff] }
 0x227   : > { %5055 = vrsqrt.f32 %v1140_v43  ;;  %v1122_v44 = vsub.f32 %v1074_v28, %v1106_v42  ;;  %v1111_v58 = vmul.f32 %v5845_v50, %v5845_v50 }
 0x228   : > { %5057 = vrsqrt.f32 %v1137_v18  ;;  %v991_v3 = vpop.xlane.xlu1 %990  ;;  %v985_v2 = vpop.xlane.xlu0 %984 }
 0x229   : > { %v1138_v24 = vadd.f32 1e-05, %v1122_v44  ;;  %v5847_v57 = vmul.f32 0.0078125, %v991_v3  ;;  %v5851_v46 = vmul.f32 0.0078125, %v985_v2  ;;  %v5885_v3 = vld [vmem:[%s7867_s8] ss:$0 sm:$0xff] }
 0x22b   : > { %5059 = vrsqrt.f32 %v1138_v24  ;;  %v1112_v59 = vmul.f32 %v5847_v57, %v5847_v57  ;;  %v1109_v8 = vmul.f32 %v5851_v46, %v5851_v46 }
 0x22c   : > { %v987_v52 = vpop.xlane.xlu1 %986  ;;  %v1054_v45 = vpop.xlane.xlu0 %1053 }
 0x22d   : > { %v1079_v61 = vmul.f32 0.0078125, %v1054_v45  ;;  %v5857_v14 = vmul.f32 0.0078125, %v987_v52 }
 0x22f   : > { %v1127_v62 = vsub.f32 %v1079_v61, %v1111_v58  ;;  %v1110_v32 = vmul.f32 %v5857_v14, %v5857_v14 }
 0x230   : > { %v1056_v60 = vpop.xlane.xlu1 %1055  ;;  %v1050_v49 = vpop.xlane.xlu0 %1049 }
 0x231   : > { %v1080_v11 = vmul.f32 0.0078125, %v1056_v60  ;;  %v1077_v63 = vmul.f32 0.0078125, %v1050_v49  ;;  %v1143_v1 = vadd.f32 1e-05, %v1127_v62  ;;  %v5054_v21 = vpop.eup %5053 }
 0x232   : > { %v1171_v15 = vmul.f32 %v5054_v21, %v1091_v26 }
 0x233   : > { %v1128_v23 = vsub.f32 %v1080_v11, %v1112_v59  ;;  %v1125_v5 = vsub.f32 %v1077_v63, %v1109_v8  ;;  %5061 = vrsqrt.f32 %v1143_v1 }
 0x234   : > { %v5056_v19 = vpop.eup %5055  ;;  %v1052_v31 = vpop.xlane.xlu1 %1051  ;;  %v1191_v37 = vmul.f32 %v5871_v39, %v1171_v15 }
 0x235   : > { %v997_v48 = vpop.xlane.xlu0 %996  ;;  %v5058_v53 = vpop.eup %5057  ;;  %v1144_v35 = vadd.f32 1e-05, %v1128_v23  ;;  %v1141_v36 = vadd.f32 1e-05, %v1125_v5  ;;  %v1078_v38 = vmul.f32 0.0078125, %v1052_v31  ;;  %v1172_v56 = vmul.f32 %v5056_v19, %v1092_v30 }
 0x236   : > { %v1169_v33 = vmul.f32 %v5058_v53, %v1089_v47  ;;  %v5873_v7 = vmul.f32 0.0078125, %v997_v48  ;;  %v1211_v59 = vadd.f32 %v5885_v3, %v1191_v37  ;;  %v1095_v48 = vsub.f32 %v5736_v16, %v5845_v50 }
 0x237   : > { %5063 = vrsqrt.f32 %v1144_v35  ;;  %v1126_v25 = vsub.f32 %v1078_v38, %v1110_v32  ;;  %v1192_v42 = vmul.f32 %v5871_v39, %v1172_v56  ;;  %v1096_v53 = vsub.f32 %v5745_v17, %v5847_v57 }
 0x238   : > { %v5060_v13 = vpop.eup %5059  ;;  %5065 = vrsqrt.f32 %v1141_v36  ;;  %v999_v12 = vpop.xlane.xlu1 %998  ;;  %v1189_v22 = vmul.f32 %v5871_v39, %v1169_v33  ;;  %v1115_v24 = vmul.f32 %v5873_v7, %v5873_v7  ;;  %v1093_v32 = vsub.f32 %v5743_v27, %v5851_v46 }
 0x239   : > { %v993_v51 = vpop.xlane.xlu0 %992  ;;  %v1142_v34 = vadd.f32 1e-05, %v1126_v25  ;;  %v1170_v41 = vmul.f32 %v5060_v13, %v1090_v9  ;;  %v5878_v43 = vmul.f32 0.0078125, %v999_v12  ;;  %v1212_v45 = vadd.f32 %v5885_v3, %v1192_v42 }
 0x23a   : > { %v5880_v18 = vmul.f32 0.0078125, %v993_v51  ;;  %v1209_v58 = vadd.f32 %v5885_v3, %v1189_v22  ;;  %v1094_v16 = vsub.f32 %v5750_v29, %v5857_v14 }
 0x23b   : > { %5067 = vrsqrt.f32 %v1142_v34  ;;  %v1190_v2 = vmul.f32 %v5871_v39, %v1170_v41  ;;  %v1116_v60 = vmul.f32 %v5878_v43, %v5878_v43  ;;  %v1242_v5 = vpack.c.bf16 %v1212_v45, %v1211_v59 }
 0x23c   : > { %v995_v28 = vpop.xlane.xlu1 %994  ;;  %v1113_v49 = vmul.f32 %v5880_v18, %v5880_v18 }
 0x23d   : > { %v1062_v44 = vpop.xlane.xlu0 %1061  ;;  %v1210_v61 = vadd.f32 %v5885_v3, %v1190_v2  ;;  %v5898_v1 = vmul.f32 0.0078125, %v995_v28 }
 0x23e   : > { %v1083_v52 = vmul.f32 0.0078125, %v1062_v44 }
 0x23f   : > { %v1241_v63 = vpack.c.bf16 %v1210_v61, %v1209_v58  ;;  %v1114_v33 = vmul.f32 %v5898_v1, %v5898_v1 }
 0x240   : > { %v1131_v62 = vsub.f32 %v1083_v52, %v1115_v24  ;;  %v1064_v8 = vpop.xlane.xlu1 %1063  ;;  %v5062_v26 = vpop.eup %5061 }
 0x241   : > { %v1058_v11 = vpop.xlane.xlu0 %1057  ;;  %v1084_v21 = vmul.f32 0.0078125, %v1064_v8  ;;  %4771 = vmatprep.mubr.bf16.mxu1 %v1241_v63  ;;  %v1175_v13 = vmul.f32 %v5062_v26, %v1095_v48 }
 0x242   : > { %v1081_v23 = vmul.f32 0.0078125, %v1058_v11  ;;  %v1147_v19 = vadd.f32 1e-05, %v1131_v62  ;;  %4772 = vmatmul.mubr.bf16.vlgmr.msra.gmra.mxu1 %v1242_v5 }
 0x243   : > { %v1132_v30 = vsub.f32 %v1084_v21, %v1116_v60  ;;  %v1195_v22 = vmul.f32 %v5871_v39, %v1175_v13 }
 0x244   : > { %v1129_v47 = vsub.f32 %v1081_v23, %v1113_v49  ;;  %v5064_v31 = vpop.eup %5063  ;;  %v1060_v35 = vpop.xlane.xlu1 %1059  ;;  %5069 = vrsqrt.f32 %v1147_v19 }
 0x245   : > { %v1005_v36 = vpop.xlane.xlu0 %1004  ;;  %v5066_v38 = vpop.eup %5065  ;;  %v1148_v56 = vadd.f32 1e-05, %v1132_v30  ;;  %v1082_v25 = vmul.f32 0.0078125, %v1060_v35  ;;  %v1176_v12 = vmul.f32 %v5064_v31, %v1096_v53  ;;  %v1215_v61 = vadd.f32 %v5885_v3, %v1195_v22 }
 0x246   : > { %v1145_v9 = vadd.f32 1e-05, %v1129_v47  ;;  %v1173_v15 = vmul.f32 %v5066_v38, %v1093_v32  ;;  %v5915_v37 = vmul.f32 0.0078125, %v1005_v36  ;;  %v1100_v30 = vsub.f32 %v5775_v54, %v5878_v43 }
 0x247   : > { %5071 = vrsqrt.f32 %v1148_v56  ;;  %v1130_v17 = vsub.f32 %v1082_v25, %v1114_v33  ;;  %v1196_v46 = vmul.f32 %v5871_v39, %v1176_v12  ;;  %v1099_v53 = vsub.f32 %v5766_v40, %v5873_v7 }
 0x248   : > { %v5068_v50 = vpop.eup %5067  ;;  %5073 = vrsqrt.f32 %v1145_v9  ;;  %v1007_v27 = vpop.xlane.xlu1 %1006  ;;  %v1193_v42 = vmul.f32 %v5871_v39, %v1173_v15  ;;  %v1119_v59 = vmul.f32 %v5915_v37, %v5915_v37  ;;  %v1097_v32 = vsub.f32 %v5778_v0, %v5880_v18 }
 0x249   : > { %v1001_v57 = vpop.xlane.xlu0 %1000  ;;  %v1146_v51 = vadd.f32 1e-05, %v1130_v17  ;;  %v1174_v41 = vmul.f32 %v5068_v50, %v1094_v16  ;;  %v1216_v44 = vadd.f32 %v5885_v3, %v1196_v46  ;;  %v5928_v60 = vmul.f32 0.0078125, %v1007_v27 }
 0x24a   : > { %v5911_v34 = vmul.f32 0.0078125, %v1001_v57  ;;  %v1213_v45 = vadd.f32 %v5885_v3, %v1193_v42  ;;  %v1098_v15 = vsub.f32 %v5786_v20, %v5898_v1 }
 0x24b   : > { %5075 = vrsqrt.f32 %v1146_v51  ;;  %v1194_v28 = vmul.f32 %v5871_v39, %v1174_v41  ;;  %v1244_v63 = vpack.c.bf16 %v1216_v44, %v1215_v61  ;;  %v1120_v35 = vmul.f32 %v5928_v60, %v5928_v60 }
 0x24c   : > { %v1003_v29 = vpop.xlane.xlu1 %1002  ;;  %v1117_v2 = vmul.f32 %v5911_v34, %v5911_v34  ;;  %v1101_v57 = vsub.f32 %v5814_v6, %v5911_v34  ;;  %v1104_v6 = vsub.f32 %v5811_v4, %v5928_v60  ;;  %v5349_v4 = vmov 0   ;;  %v5972_v60 = vld [vmem:[%s7868_s9 + $0x1] ss:$0 sm:$0xff] }
 0x24d   : > { %v1066_v14 = vpop.xlane.xlu0 %1065  ;;  %v5921_v24 = vmul.f32 0.0078125, %v1003_v29  ;;  %v1214_v58 = vadd.f32 %v5885_v3, %v1194_v28  ;;  %4926 = vset.pattern.permute.xlu1 %v5349_v4  ;;  %4925 = vset.pattern.permute.xlu0 %v5349_v4 }
 0x24e   : > { %v1085_v52 = vmul.f32 0.0078125, %v1066_v14  ;;  %v1103_v14 = vsub.f32 %v5802_v55, %v5915_v37  ;;  %1993 = vmatprep.mubr.bf16.mxu0 %v5349_v4 }
 0x24f   : > { %v1243_v11 = vpack.c.bf16 %v1214_v58, %v1213_v45  ;;  %v1118_v21 = vmul.f32 %v5921_v24, %v5921_v24  ;;  %v1102_v22 = vsub.f32 %v5822_v10, %v5921_v24 }
 0x250   : > { %v1133_v62 = vsub.f32 %v1085_v52, %v1117_v2  ;;  %v1068_v49 = vpop.xlane.xlu1 %1067 }
 0x251   : > { %v1070_v8 = vpop.xlane.xlu0 %1069  ;;  %v1086_v5 = vmul.f32 0.0078125, %v1068_v49  ;;  %4775 = vmatprep.mubr.bf16.mxu1 %v1243_v11  ;;  %v5070_v26 = vpop.eup %5069 }
 0x252   : > { %v1149_v23 = vadd.f32 1e-05, %v1133_v62  ;;  %v1087_v19 = vmul.f32 0.0078125, %v1070_v8  ;;  %4776 = vmatmul.mubr.bf16.gmra.mxu1 %v1244_v63  ;;  %v1179_v25 = vmul.f32 %v5070_v26, %v1099_v53 }
 0x253   : > { %v1134_v47 = vsub.f32 %v1086_v5, %v1118_v21 }
 0x254   : > { %5077 = vrsqrt.f32 %v1149_v23  ;;  %v1135_v31 = vsub.f32 %v1087_v19, %v1119_v59  ;;  %v5072_v48 = vpop.eup %5071  ;;  %v1072_v36 = vpop.xlane.xlu1 %1071  ;;  %v1199_v16 = vmul.f32 %v5871_v39, %v1179_v25 }
 0x255   : > { %v5074_v38 = vpop.eup %5073  ;;  %v1150_v33 = vadd.f32 1e-05, %v1134_v47  ;;  %v1088_v9 = vmul.f32 0.0078125, %v1072_v36  ;;  %v1180_v54 = vmul.f32 %v5072_v48, %v1100_v30 }
 0x256   : > { %v1151_v56 = vadd.f32 1e-05, %v1135_v31  ;;  %v1177_v43 = vmul.f32 %v5074_v38, %v1097_v32  ;;  %v1219_v1 = vadd.f32 %v5885_v3, %v1199_v16  ;;  %v4947_v16 = vld [vmem:[%s7865_s6 + $0x94] ss:$12 sps:$4 sm:$0xff]  }
 0x257   : > { %5079 = vrsqrt.f32 %v1150_v33  ;;  %v1136_v13 = vsub.f32 %v1088_v9, %v1120_v35  ;;  %v1200_v0 = vmul.f32 %v5871_v39, %v1180_v54 }
 0x258   : > { %v5076_v40 = vpop.eup %5075  ;;  %5081 = vrsqrt.f32 %v1151_v56  ;;  %v1197_v12 = vmul.f32 %v5871_v39, %v1177_v43 }
 0x259   : > { %v1152_v7 = vadd.f32 1e-05, %v1136_v13  ;;  %v1178_v18 = vmul.f32 %v5076_v40, %v1098_v15  ;;  %v1220_v50 = vadd.f32 %v5885_v3, %v1200_v0  ;;  %v4943_v40 = vld [vmem:[%s7865_s6 + $0xac] ss:$12 sps:$4 sm:$0xff]  }
 0x25a   : > { %v1217_v27 = vadd.f32 %v5885_v3, %v1197_v12  ;;  %v4944_v12 = vld [vmem:[%s7865_s6 + $0xb0] ss:$12 sps:$4 sm:$0xff]   ;;  %1961 = vmatprep.subr.bf16.mxu0 %v4943_v40  ;;  %v4972_v40 = vld [vmem:[%s7865_s6 + $0x8] ss:$12 sps:$4 sm:$0xff]  }
 0x25b   : > { %5083 = vrsqrt.f32 %v1152_v7  ;;  %v1198_v17 = vmul.f32 %v5871_v39, %v1178_v18  ;;  %v1246_v41 = vpack.c.bf16 %v1220_v50, %v1219_v1  ;;  %v4941_v18 = vld [vmem:[%s7865_s6 + $0xa8] ss:$12 sps:$4 sm:$0xff]   ;;  %4787 = vmatprep.subr.bf16.mxu1 %v4944_v12  ;;  %v4948_v1 = vld [vmem:[%s7865_s6 + $0x98] ss:$12 sps:$4 sm:$0xff]  }
 0x25c   : > { %1962 = vmatpush1.bf16.msra.mxu0 %v4941_v18  ;;  %4788 = vmatpush3.bf16.msra.mxu1 %v4944_v12 }
 0x25d   : > { %v1218_v20 = vadd.f32 %v5885_v3, %v1198_v17  ;;  %1963 = vmatprep.subr.bf16.mxu0 %v4947_v16  ;;  %4789 = vmatprep.subr.bf16.mxu1 %v4948_v1 }
 0x25f   : > { %v1245_v46 = vpack.c.bf16 %v1218_v20, %v1217_v27  ;;  %v4945_v20 = vld [vmem:[%s7865_s6 + $0x90] ss:$12 sps:$4 sm:$0xff]  }
 0x260   : > { %1964 = vmatpush1.bf16.msra.mxu0 %v4945_v20  ;;  %4790 = vmatpush3.bf16.msra.mxu1 %v4948_v1  ;;  %v6156_v20 = vld [vmem:[%s7865_s6 + $0x170] ss:$12 sps:$4 sm:$0xff]  }
 0x261   : > { %v5078_v51 = vpop.eup %5077  ;;  %4779 = vmatprep.mubr.bf16.mxu1 %v1245_v46  ;;  %v1683_v1 = vld [vmem:[%s6146_s20 + $0x10] sm:$0xff] }
 0x262   : > { %v1181_v42 = vmul.f32 %v5078_v51, %v1101_v57  ;;  %4780 = vmatmul.mubr.bf16.gmra.mxu1 %v1246_v41  ;;  %v4951_v41 = vld [vmem:[%s7865_s6 + $0x7c] ss:$12 sps:$4 sm:$0xff]  }
 0x263   : > { %1965 = vmatprep.subr.bf16.mxu0 %v4951_v41  ;;  %v1692_v41 = vld [vmem:[%s6146_s20 + $0x58] sm:$0xff] }
 0x264   : > { %v5080_v29 = vpop.eup %5079  ;;  %v1201_v2 = vmul.f32 %v5871_v39, %v1181_v42 }
 0x265   : > { %v5082_v28 = vpop.eup %5081  ;;  %v1182_v44 = vmul.f32 %v5080_v29, %v1102_v22 }
 0x266   : > { %v1183_v52 = vmul.f32 %v5082_v28, %v1103_v14  ;;  %v1221_v58 = vadd.f32 %v5885_v3, %v1201_v2  ;;  %v4949_v14 = vld [vmem:[%s7865_s6 + $0x78] ss:$12 sps:$4 sm:$0xff]   ;;  %v4952_v28 = vld [vmem:[%s7865_s6 + $0x80] ss:$12 sps:$4 sm:$0xff]  }
 0x267   : > { %v1202_v34 = vmul.f32 %v5871_v39, %v1182_v44  ;;  %1966 = vmatpush1.bf16.msra.mxu0 %v4949_v14  ;;  %4791 = vmatprep.subr.bf16.mxu1 %v4952_v28  ;;  %v1696_v14 = vld [vmem:[%s6146_s20 + $0x78] sm:$0xff] }
 0x268   : > { %v5084_v45 = vpop.eup %5083  ;;  %v1203_v24 = vmul.f32 %v5871_v39, %v1183_v52  ;;  %4792 = vmatpush3.bf16.msra.mxu1 %v4952_v28  ;;  %v1687_v28 = vld [vmem:[%s6146_s20 + $0x30] sm:$0xff] }
 0x269   : > { %v1222_v61 = vadd.f32 %v5885_v3, %v1202_v34  ;;  %v1184_v10 = vmul.f32 %v5084_v45, %v1104_v6  ;;  %v4955_v6 = vld [vmem:[%s7865_s6 + $0x64] ss:$12 sps:$4 sm:$0xff]  }
 0x26a   : > { %v1223_v37 = vadd.f32 %v5885_v3, %v1203_v24  ;;  %1967 = vmatprep.subr.bf16.mxu0 %v4955_v6  ;;  %v1691_v6 = vld [vmem:[%s6146_s20 + $0x50] sm:$0xff] }
 0x26b   : > { %v1247_v62 = vpack.c.bf16 %v1222_v61, %v1221_v58  ;;  %v1204_v55 = vmul.f32 %v5871_v39, %v1184_v10  ;;  %v4953_v58 = vld [vmem:[%s7865_s6 + $0x60] ss:$12 sps:$4 sm:$0xff]   ;;  %v4956_v61 = vld [vmem:[%s7865_s6 + $0x68] ss:$12 sps:$4 sm:$0xff]  }
 0x26c   : > { %1968 = vmatpush1.bf16.msra.mxu0 %v4953_v58  ;;  %4793 = vmatprep.subr.bf16.mxu1 %v4956_v61  ;;  %v4959_v10 = vld [vmem:[%s7865_s6 + $0x4c] ss:$12 sps:$4 sm:$0xff]   ;;  %v1695_v58 = vld [vmem:[%s6146_s20 + $0x70] sm:$0xff] }
 0x26d   : > { %4783 = vmatprep.mubr.bf16.mxu1 %v1247_v62  ;;  %v1224_v59 = vadd.f32 %v5885_v3, %v1204_v55  ;;  %4794 = vmatpush3.bf16.msra.mxu1 %v4956_v61  ;;  %v4957_v55 = vld [vmem:[%s7865_s6 + $0x48] ss:$12 sps:$4 sm:$0xff]  }
 0x26e   : > { %1969 = vmatprep.subr.bf16.mxu0 %v4959_v10 }
 0x26f   : > { %v1248_v49 = vpack.c.bf16 %v1224_v59, %v1223_v37  ;;  %v4960_v37 = vld [vmem:[%s7865_s6 + $0x50] ss:$12 sps:$4 sm:$0xff]  }
 0x270   : > { %1970 = vmatpush1.bf16.msra.mxu0 %v4957_v55  ;;  %4795 = vmatprep.subr.bf16.mxu1 %v4960_v37 }
 0x271   : > { %4784 = vmatmul.mubr.bf16.gmra.mxu1 %v1248_v49  ;;  %v4963_v49 = vld [vmem:[%s7865_s6 + $0x34] ss:$12 sps:$4 sm:$0xff]  }
 0x272   : > { %4796 = vmatpush3.bf16.msra.mxu1 %v4960_v37  ;;  %1971 = vmatprep.subr.bf16.mxu0 %v4963_v49 }
 0x302   : > { %v4773_v39 = vpop.f32.mrf.mxu1 }
 0x303   : > { %v1345_v8 = vadd.f32 %v4773_v39, %v5972_v60 }
 0x304   : > { %v1336_v11 = vpop.f32.mrf.mxu1 }
 0x305   : > { %v5975_v63 = vmax.f32 %v1345_v8, 0.0  ;;  %v1337_v3 = vadd.f32 %v5972_v60, %v1336_v11 }
 0x306   : > { %v4774_v21 = vpop.f32.mrf.mxu1 }
 0x307   : > { %v1348_v23 = vadd.f32 %v4774_v21, %v5972_v60  ;;  %1421 = vadd.xlane.f32.xlu0 %v5975_v63  ;;  %v5980_v19 = vmax.f32 %v1337_v3, 0.0  ;;  %v1467_v31 = vmul.f32 %v5975_v63, %v5975_v63  ;;  %v4961_v3 = vld [vmem:[%s7865_s6 + $0x30] ss:$12 sps:$4 sm:$0xff]   ;;  %v4964_v21 = vld [vmem:[%s7865_s6 + $0x38] ss:$12 sps:$4 sm:$0xff]  }
 0x308   : > { %v1339_v5 = vpop.f32.mrf.mxu1  ;;  %1972 = vmatpush1.bf16.msra.mxu0 %v4961_v3  ;;  %4797 = vmatprep.subr.bf16.mxu1 %v4964_v21 }
 0x309   : > { %v5982_v26 = vmax.f32 %v1348_v23, 0.0  ;;  %v1340_v30 = vadd.f32 %v5972_v60, %v1339_v5  ;;  %v1465_v53 = vmul.f32 %v5980_v19, %v5980_v19  ;;  %4798 = vmatpush3.bf16.msra.mxu1 %v4964_v21 }
 0x30b   : > { %1423 = vadd.xlane.f32.xlu1 %v5982_v26  ;;  %1417 = vadd.xlane.f32.xlu0 %v5980_v19  ;;  %v5987_v47 = vmax.f32 %v1340_v30, 0.0  ;;  %v1468_v48 = vmul.f32 %v5982_v26, %v5982_v26 }
 0x30d   : > { %v1466_v56 = vmul.f32 %v5987_v47, %v5987_v47 }
 0x30f   : > { %1419 = vadd.xlane.f32.xlu1 %v5987_v47  ;;  %1485 = vadd.xlane.f32.xlu0 %v1467_v31  ;;  %v4967_v31 = vld [vmem:[%s7865_s6 + $0x1c] ss:$12 sps:$4 sm:$0xff]  }
 0x310   : > { %1973 = vmatprep.subr.bf16.mxu0 %v4967_v31 }
 0x312   : > { %v4777_v32 = vpop.f32.mrf.mxu1 }
 0x313   : > { %v1361_v35 = vadd.f32 %v4777_v32, %v5972_v60  ;;  %1487 = vadd.xlane.f32.xlu1 %v1468_v48  ;;  %1481 = vadd.xlane.f32.xlu0 %v1465_v53 }
 0x314   : > { %v1352_v36 = vpop.f32.mrf.mxu1 }
 0x315   : > { %v5997_v38 = vmax.f32 %v1361_v35, 0.0  ;;  %v1353_v33 = vadd.f32 %v5972_v60, %v1352_v36  ;;  %v4965_v35 = vld [vmem:[%s7865_s6 + $0x18] ss:$12 sps:$4 sm:$0xff]   ;;  %v4968_v36 = vld [vmem:[%s7865_s6 + $0x20] ss:$12 sps:$4 sm:$0xff]  }
 0x316   : > { %v4778_v9 = vpop.f32.mrf.mxu1  ;;  %1974 = vmatpush1.bf16.msra.mxu0 %v4965_v35  ;;  %4799 = vmatprep.subr.bf16.mxu1 %v4968_v36 }
 0x317   : > { %v1364_v54 = vadd.f32 %v4778_v9, %v5972_v60  ;;  %1483 = vadd.xlane.f32.xlu1 %v1466_v56  ;;  %1429 = vadd.xlane.f32.xlu0 %v5997_v38  ;;  %v6004_v25 = vmax.f32 %v1353_v33, 0.0  ;;  %v1471_v7 = vmul.f32 %v5997_v38, %v5997_v38  ;;  %v4971_v9 = vld [vmem:[%s7865_s6 + $0x4] ss:$12 sps:$4 sm:$0xff]  }
 0x318   : > { %v1355_v43 = vpop.f32.mrf.mxu1  ;;  %4800 = vmatpush3.bf16.msra.mxu1 %v4968_v36  ;;  %1975 = vmatprep.subr.bf16.mxu0 %v4971_v9 }
 0x319   : > { %v6006_v15 = vmax.f32 %v1364_v54, 0.0  ;;  %v1356_v13 = vadd.f32 %v5972_v60, %v1355_v43  ;;  %v1469_v27 = vmul.f32 %v6004_v25, %v6004_v25  ;;  %4801 = vmatprep.subr.bf16.mxu1 %v4972_v40 }
 0x31b   : > { %1431 = vadd.xlane.f32.xlu1 %v6006_v15  ;;  %1425 = vadd.xlane.f32.xlu0 %v6004_v25  ;;  %v6014_v0 = vmax.f32 %v1356_v13, 0.0  ;;  %v1472_v50 = vmul.f32 %v6006_v15, %v6006_v15  ;;  %v4969_v13 = vld [vmem:[%s7865_s6] ss:$12 sps:$4 sm:$0xff]  }
 0x31c   : > { %1976 = vmatpush1.bf16.msra.mxu0 %v4969_v13  ;;  %4802 = vmatpush3.bf16.msra.mxu1 %v4972_v40 }
 0x31d   : > { %v1470_v29 = vmul.f32 %v6014_v0, %v6014_v0  ;;  %4819 = vmatprep.subr.bf16.mxu0 %v6156_v20 }
 0x31f   : > { %1427 = vadd.xlane.f32.xlu1 %v6014_v0  ;;  %1493 = vadd.xlane.f32.xlu0 %v1471_v7 }
 0x322   : > { %v4781_v17 = vpop.f32.mrf.mxu1 }
 0x323   : > { %v1377_v57 = vadd.f32 %v4781_v17, %v5972_v60  ;;  %1495 = vadd.xlane.f32.xlu1 %v1472_v50  ;;  %1489 = vadd.xlane.f32.xlu0 %v1469_v27  ;;  %v4976_v17 = vld [vmem:[%s7865_s6 + $0x16c] ss:$12 sps:$4 sm:$0xff]   ;;  %v1681_v27 = vld [vmem:[%s6146_s20] sm:$0xff] }
 0x324   : > { %v1368_v46 = vpop.f32.mrf.mxu1  ;;  %v1682_v50 = vld [vmem:[%s6146_s20 + $0x8] sm:$0xff]  ;;  %2339 = vmatprep.subr.bf16.mxu1 %v4976_v17 }
 0x325   : > { %v6039_v51 = vmax.f32 %v1377_v57, 0.0  ;;  %v1369_v42 = vadd.f32 %v5972_v60, %v1368_v46  ;;  %v1690_v57 = vld [vmem:[%s6146_s20 + $0x48] sm:$0xff]  ;;  %v1684_v46 = vld [vmem:[%s6146_s20 + $0x18] sm:$0xff] }
 0x326   : > { %v4782_v22 = vpop.f32.mrf.mxu1 }
 0x327   : > { %v1380_v44 = vadd.f32 %v4782_v22, %v5972_v60  ;;  %1491 = vadd.xlane.f32.xlu1 %v1470_v29  ;;  %1437 = vadd.xlane.f32.xlu0 %v6039_v51  ;;  %v6060_v34 = vmax.f32 %v1369_v42, 0.0  ;;  %v1475_v62 = vmul.f32 %v6039_v51, %v6039_v51  ;;  %v1685_v42 = vld [vmem:[%s6146_s20 + $0x20] sm:$0xff]  ;;  %v1694_v22 = vld [vmem:[%s6146_s20 + $0x68] sm:$0xff] }
 0x328   : > { %v1371_v2 = vpop.f32.mrf.mxu1  ;;  %v1686_v29 = vld [vmem:[%s6146_s20 + $0x28] sm:$0xff] }
 0x329   : > { %v6055_v52 = vmax.f32 %v1380_v44, 0.0  ;;  %v1372_v45 = vadd.f32 %v5972_v60, %v1371_v2  ;;  %v1473_v11 = vmul.f32 %v6060_v34, %v6060_v34  ;;  %v1688_v44 = vld [vmem:[%s6146_s20 + $0x38] sm:$0xff]  ;;  %v1689_v2 = vld [vmem:[%s6146_s20 + $0x40] sm:$0xff] }
 0x32b   : > { %1439 = vadd.xlane.f32.xlu1 %v6055_v52  ;;  %1433 = vadd.xlane.f32.xlu0 %v6060_v34  ;;  %v6074_v24 = vmax.f32 %v1372_v45, 0.0  ;;  %v1476_v8 = vmul.f32 %v6055_v52, %v6055_v52  ;;  %v1693_v45 = vld [vmem:[%s6146_s20 + $0x60] sm:$0xff] }
 0x32d   : > { %v1474_v32 = vmul.f32 %v6074_v24, %v6074_v24 }
 0x32f   : > { %1435 = vadd.xlane.f32.xlu1 %v6074_v24  ;;  %1501 = vadd.xlane.f32.xlu0 %v1475_v62 }
 0x331   : > { %v4785_v59 = vpop.f32.mrf.mxu1 }
 0x332   : > { %v1393_v39 = vadd.f32 %v4785_v59, %v5972_v60 }
 0x333   : > { %v1384_v23 = vpop.f32.mrf.mxu1  ;;  %1503 = vadd.xlane.f32.xlu1 %v1476_v8  ;;  %1497 = vadd.xlane.f32.xlu0 %v1473_v11 }
 0x334   : > { %v6099_v5 = vmax.f32 %v1393_v39, 0.0  ;;  %v1385_v48 = vadd.f32 %v5972_v60, %v1384_v23 }
 0x335   : > { %v4786_v30 = vpop.f32.mrf.mxu1 }
 0x336   : > { %v1396_v53 = vadd.f32 %v4786_v30, %v5972_v60  ;;  %v6120_v54 = vmax.f32 %v1385_v48, 0.0  ;;  %v1479_v12 = vmul.f32 %v6099_v5, %v6099_v5 }
 0x337   : > { %v1387_v33 = vpop.f32.mrf.mxu1  ;;  %1499 = vadd.xlane.f32.xlu1 %v1474_v32  ;;  %1445 = vadd.xlane.f32.xlu0 %v6099_v5 }
 0x338   : > { %v6114_v56 = vmax.f32 %v1396_v53, 0.0  ;;  %v1388_v43 = vadd.f32 %v5972_v60, %v1387_v33  ;;  %v1477_v60 = vmul.f32 %v6120_v54, %v6120_v54 }
 0x33a   : > { %v6131_v7 = vmax.f32 %v1388_v43, 0.0  ;;  %v1480_v16 = vmul.f32 %v6114_v56, %v6114_v56 }
 0x33b   : > { %1447 = vadd.xlane.f32.xlu1 %v6114_v56  ;;  %1441 = vadd.xlane.f32.xlu0 %v6120_v54 }
 0x33c   : > { %v1478_v18 = vmul.f32 %v6131_v7, %v6131_v7 }
 0x33f   : > { %1443 = vadd.xlane.f32.xlu1 %v6131_v7  ;;  %1505 = vadd.xlane.f32.xlu0 %v1477_v60 }
 0x343   : > { %1507 = vadd.xlane.f32.xlu1 %v1478_v18  ;;  %1509 = vadd.xlane.f32.xlu0 %v1479_v12 }
 0x347   : > { %1511 = vadd.xlane.f32.xlu1 %v1480_v16 }
 0x358   : > { %1704 = vperm.xlu1 %4926, %v1682_v50  }
 0x359   : > { %1699 = vperm.xlu0 %4925, %v1681_v27  }
 0x35c   : > { %1709 = vperm.xlu1 %4926, %v1683_v1  }
 0x35d   : > { %1744 = vperm.xlu0 %4925, %v1690_v57  }
 0x360   : > { %1714 = vperm.xlu1 %4926, %v1684_v46  }
 0x361   : > { %1754 = vperm.xlu0 %4925, %v1692_v41  }
 0x364   : > { %1719 = vperm.xlu1 %4926, %v1685_v42  }
 0x365   : > { %1764 = vperm.xlu0 %4925, %v1694_v22  }
 0x368   : > { %1724 = vperm.xlu1 %4926, %v1686_v29  }
 0x369   : > { %1774 = vperm.xlu0 %4925, %v1696_v14  }
 0x36c   : > { %1729 = vperm.xlu1 %4926, %v1687_v28  }
 0x370   : > { %1734 = vperm.xlu1 %4926, %v1688_v44  }
 0x374   : > { %1739 = vperm.xlu1 %4926, %v1689_v2  }
 0x378   : > { %1749 = vperm.xlu1 %4926, %v1691_v6  }
 0x37c   : > { %1759 = vperm.xlu1 %4926, %v1693_v45  }
 0x380   : > { %1769 = vperm.xlu1 %4926, %v1695_v58  }
 0x390   : > { %v1422_v61 = vpop.xlane.xlu0 %1421 }
 0x391   : > { %v6173_v55 = vmul.f32 0.0078125, %v1422_v61 }
 0x393   : > { %v1547_v39 = vmul.f32 %v6173_v55, %v6173_v55 }
 0x394   : > { %v1424_v10 = vpop.xlane.xlu1 %1423  ;;  %v1418_v62 = vpop.xlane.xlu0 %1417 }
 0x395   : > { %v6175_v37 = vmul.f32 0.0078125, %v1424_v10  ;;  %v1449_v8 = vmul.f32 0.0078125, %v1418_v62 }
 0x397   : > { %v1548_v21 = vmul.f32 %v6175_v37, %v6175_v37  ;;  %v1545_v31 = vmul.f32 %v1449_v8, %v1449_v8 }
 0x398   : > { %v1420_v59 = vpop.xlane.xlu1 %1419  ;;  %v1486_v49 = vpop.xlane.xlu0 %1485 }
 0x399   : > { %v1515_v11 = vmul.f32 0.0078125, %v1486_v49  ;;  %v6181_v48 = vmul.f32 0.0078125, %v1420_v59 }
 0x39b   : > { %v1563_v3 = vsub.f32 %v1515_v11, %v1547_v39  ;;  %v1546_v13 = vmul.f32 %v6181_v48, %v6181_v48  ;;  %v1531_v39 = vsub.f32 %v5975_v63, %v6173_v55  ;;  %v1532_v11 = vsub.f32 %v5982_v26, %v6175_v37 }
 0x39c   : > { %v1488_v23 = vpop.xlane.xlu1 %1487  ;;  %v1482_v30 = vpop.xlane.xlu0 %1481  ;;  %v1530_v63 = vsub.f32 %v5987_v47, %v6181_v48 }
 0x39d   : > { %v1516_v53 = vmul.f32 0.0078125, %v1488_v23  ;;  %v1513_v32 = vmul.f32 0.0078125, %v1482_v30  ;;  %v1579_v35 = vadd.f32 1e-05, %v1563_v3  ;;  %v1529_v3 = vsub.f32 %v5980_v19, %v1449_v8 }
 0x39f   : > { %v1564_v36 = vsub.f32 %v1516_v53, %v1548_v21  ;;  %v1561_v33 = vsub.f32 %v1513_v32, %v1545_v31  ;;  %5085 = vrsqrt.f32 %v1579_v35 }
 0x3a0   : > { %v1484_v9 = vpop.xlane.xlu1 %1483  ;;  %v1430_v43 = vpop.xlane.xlu0 %1429 }
 0x3a1   : > { %v1580_v40 = vadd.f32 1e-05, %v1564_v36  ;;  %v1577_v60 = vadd.f32 1e-05, %v1561_v33  ;;  %v1514_v18 = vmul.f32 0.0078125, %v1484_v9  ;;  %v6185_v27 = vmul.f32 0.0078125, %v1430_v43 }
 0x3a2   : > { %v6211_v9 = vld [vmem:[%s7866_s7 + $0x1] ss:$0 sm:$0xff] }
 0x3a3   : > { %5087 = vrsqrt.f32 %v1580_v40  ;;  %v1562_v12 = vsub.f32 %v1514_v18, %v1546_v13  ;;  %v1551_v41 = vmul.f32 %v6185_v27, %v6185_v27 }
 0x3a4   : > { %5089 = vrsqrt.f32 %v1577_v60  ;;  %v1432_v16 = vpop.xlane.xlu1 %1431  ;;  %v1426_v17 = vpop.xlane.xlu0 %1425 }
 0x3a5   : > { %v1578_v50 = vadd.f32 1e-05, %v1562_v12  ;;  %v6187_v1 = vmul.f32 0.0078125, %v1432_v16  ;;  %v6191_v42 = vmul.f32 0.0078125, %v1426_v17 }
 0x3a7   : > { %5091 = vrsqrt.f32 %v1578_v50  ;;  %v1552_v14 = vmul.f32 %v6187_v1, %v6187_v1  ;;  %v1549_v2 = vmul.f32 %v6191_v42, %v6191_v42  ;;  %v6225_v50 = vld [vmem:[%s7867_s8 + $0x1] ss:$0 sm:$0xff] }
 0x3a8   : > { %v1428_v57 = vpop.xlane.xlu1 %1427  ;;  %v1494_v46 = vpop.xlane.xlu0 %1493 }
 0x3a9   : > { %v1519_v22 = vmul.f32 0.0078125, %v1494_v46  ;;  %v6197_v6 = vmul.f32 0.0078125, %v1428_v57 }
 0x3ab   : > { %v1567_v29 = vsub.f32 %v1519_v22, %v1551_v41  ;;  %v1550_v31 = vmul.f32 %v6197_v6, %v6197_v6 }
 0x3ac   : > { %v1496_v28 = vpop.xlane.xlu1 %1495  ;;  %v1490_v44 = vpop.xlane.xlu0 %1489 }
 0x3ad   : > { %v1520_v45 = vmul.f32 0.0078125, %v1496_v28  ;;  %v1517_v58 = vmul.f32 0.0078125, %v1490_v44  ;;  %v1583_v61 = vadd.f32 1e-05, %v1567_v29  ;;  %v5086_v10 = vpop.eup %5085 }
 0x3ae   : > { %v1611_v26 = vmul.f32 %v5086_v10, %v1531_v39 }
 0x3af   : > { %v1568_v62 = vsub.f32 %v1520_v45, %v1552_v14  ;;  %v1565_v59 = vsub.f32 %v1517_v58, %v1549_v2  ;;  %5093 = vrsqrt.f32 %v1583_v61 }
 0x3b0   : > { %v5088_v49 = vpop.eup %5087  ;;  %v1492_v21 = vpop.xlane.xlu1 %1491  ;;  %v1631_v48 = vmul.f32 %v6211_v9, %v1611_v26  ;;  %v4977_v26 = vld [vmem:[%s7865_s6 + $0x150] ss:$12 sps:$4 sm:$0xff]  }
 0x3b1   : > { %v1438_v23 = vpop.xlane.xlu0 %1437  ;;  %v5090_v30 = vpop.eup %5089  ;;  %v1584_v53 = vadd.f32 1e-05, %v1568_v62  ;;  %v1581_v32 = vadd.f32 1e-05, %v1565_v59  ;;  %v1518_v35 = vmul.f32 0.0078125, %v1492_v21  ;;  %v1612_v33 = vmul.f32 %v5088_v49, %v1532_v11 }
 0x3b2   : > { %v1609_v36 = vmul.f32 %v5090_v30, %v1529_v3  ;;  %v6213_v13 = vmul.f32 0.0078125, %v1438_v23  ;;  %v1651_v44 = vadd.f32 %v6225_v50, %v1631_v48  ;;  %v4974_v62 = vld [vmem:[%s7865_s6 + $0x168] ss:$12 sps:$4 sm:$0xff]   ;;  %v4980_v21 = vld [vmem:[%s7865_s6 + $0x158] ss:$12 sps:$4 sm:$0xff]  }
 0x3b3   : > { %5095 = vrsqrt.f32 %v1584_v53  ;;  %v1566_v55 = vsub.f32 %v1518_v35, %v1550_v31  ;;  %v1632_v60 = vmul.f32 %v6211_v9, %v1612_v33  ;;  %v4979_v59 = vld [vmem:[%s7865_s6 + $0x154] ss:$12 sps:$4 sm:$0xff]   ;;  %v1535_v35 = vsub.f32 %v5997_v38, %v6185_v27 }
 0x3b4   : > { %v5092_v37 = vpop.eup %5091  ;;  %5097 = vrsqrt.f32 %v1581_v32  ;;  %v1440_v19 = vpop.xlane.xlu1 %1439  ;;  %v1629_v47 = vmul.f32 %v6211_v9, %v1609_v36  ;;  %v1555_v46 = vmul.f32 %v6213_v13, %v6213_v13  ;;  %v1536_v36 = vsub.f32 %v6006_v15, %v6187_v1  ;;  %v4987_v38 = vld [vmem:[%s7865_s6 + $0x140] ss:$12 sps:$4 sm:$0xff]  }
 0x3b5   : > { %v1434_v8 = vpop.xlane.xlu0 %1433  ;;  %v1582_v43 = vadd.f32 1e-05, %v1566_v55  ;;  %v1610_v40 = vmul.f32 %v5092_v37, %v1530_v63  ;;  %v6218_v18 = vmul.f32 0.0078125, %v1440_v19  ;;  %v1652_v22 = vadd.f32 %v6225_v50, %v1632_v60  ;;  %v4983_v37 = vld [vmem:[%s7865_s6 + $0x13c] ss:$12 sps:$4 sm:$0xff]  }
 0x3b6   : > { %v6220_v12 = vmul.f32 0.0078125, %v1434_v8  ;;  %v1649_v29 = vadd.f32 %v6225_v50, %v1629_v47  ;;  %v1533_v33 = vsub.f32 %v6004_v25, %v6191_v42 }
 0x3b7   : > { %5099 = vrsqrt.f32 %v1582_v43  ;;  %v1630_v57 = vmul.f32 %v6211_v9, %v1610_v40  ;;  %v1556_v2 = vmul.f32 %v6218_v18, %v6218_v18  ;;  %v1826_v3 = vpack.c.bf16 %v1652_v22, %v1651_v44 }
 0x3b8   : > { %v1436_v16 = vpop.xlane.xlu1 %1435  ;;  %v1553_v45 = vmul.f32 %v6220_v12, %v6220_v12  ;;  %v1534_v43 = vsub.f32 %v6014_v0, %v6197_v6 }
 0x3b9   : > { %v1502_v17 = vpop.xlane.xlu0 %1501  ;;  %v1650_v14 = vadd.f32 %v6225_v50, %v1630_v57  ;;  %v6244_v49 = vmul.f32 0.0078125, %v1436_v16  ;;  %v4986_v57 = vld [vmem:[%s7865_s6 + $0x124] ss:$12 sps:$4 sm:$0xff]  }
 0x3ba   : > { %v1523_v41 = vmul.f32 0.0078125, %v1502_v17  ;;  %v4981_v17 = vld [vmem:[%s7865_s6 + $0x138] ss:$12 sps:$4 sm:$0xff]  }
 0x3bb   : > { %v1825_v10 = vpack.c.bf16 %v1650_v14, %v1649_v29  ;;  %v1554_v25 = vmul.f32 %v6244_v49, %v6244_v49 }
 0x3bc   : > { %v1571_v28 = vsub.f32 %v1523_v41, %v1555_v46  ;;  %v1504_v58 = vpop.xlane.xlu1 %1503  ;;  %v5094_v30 = vpop.eup %5093  ;;  %v4994_v41 = vld [vmem:[%s7865_s6 + $0x128] ss:$12 sps:$4 sm:$0xff]  }
 0x3bd   : > { %v1498_v61 = vpop.xlane.xlu0 %1497  ;;  %v1524_v39 = vmul.f32 0.0078125, %v1504_v58  ;;  %1994 = vmatmul.mubr.bf16.vlgmr.msra.gmra.mxu0 %v1825_v10  ;;  %4803 = vmatprep.mubr.bf16.mxu1 %v1825_v10  ;;  %v1615_v19 = vmul.f32 %v5094_v30, %v1535_v35  ;;  %v4984_v58 = vld [vmem:[%s7865_s6 + $0x120] ss:$12 sps:$4 sm:$0xff]  }
 0x3be   : > { %v1521_v11 = vmul.f32 0.0078125, %v1498_v61  ;;  %v1587_v23 = vadd.f32 1e-05, %v1571_v28  ;;  %4804 = vmatmul.mubr.bf16.vlgmr.msra.gmra.mxu1 %v1826_v3  ;;  %2003 = vmatprep.mubr.bf16.mxu0 %v5349_v4 }
 0x3bf   : > { %v1572_v31 = vsub.f32 %v1524_v39, %v1556_v2  ;;  %4820 = vmatpush3.bf16.msra.mxu0 %v6156_v20  ;;  %2340 = vmatpush1.bf16.msra.mxu1 %v4974_v62  ;;  %v1635_v29 = vmul.f32 %v6211_v9, %v1615_v19  ;;  %v4998_v39 = vld [vmem:[%s7865_s6 + $0x110] ss:$12 sps:$4 sm:$0xff]   ;;  %v1539_v19 = vsub.f32 %v6039_v51, %v6213_v13  ;;  %v5003_v51 = vld [vmem:[%s7865_s6 + $0xe0] ss:$12 sps:$4 sm:$0xff]  }
 0x3c0   : > { %v1569_v53 = vsub.f32 %v1521_v11, %v1553_v45  ;;  %v5096_v32 = vpop.eup %5095  ;;  %v1500_v63 = vpop.xlane.xlu1 %1499  ;;  %2341 = vmatprep.subr.bf16.mxu1 %v4979_v59  ;;  %4821 = vmatprep.subr.bf16.mxu0 %v4980_v21  ;;  %5101 = vrsqrt.f32 %v1587_v23  ;;  %v4990_v59 = vld [vmem:[%s7865_s6 + $0x10c] ss:$12 sps:$4 sm:$0xff]  }
 0x3c1   : > { %v1446_v55 = vpop.xlane.xlu0 %1445  ;;  %v5098_v15 = vpop.eup %5097  ;;  %v1588_v27 = vadd.f32 1e-05, %v1572_v31  ;;  %v1522_v20 = vmul.f32 0.0078125, %v1500_v63  ;;  %v1616_v8 = vmul.f32 %v5096_v32, %v1536_v36  ;;  %v4993_v63 = vld [vmem:[%s7865_s6 + $0xf4] ss:$12 sps:$4 sm:$0xff]  }
 0x3c2   : > { %v1585_v1 = vadd.f32 1e-05, %v1569_v53  ;;  %v1613_v42 = vmul.f32 %v5098_v15, %v1533_v33  ;;  %v6285_v14 = vmul.f32 0.0078125, %v1446_v55  ;;  %v4988_v33 = vld [vmem:[%s7865_s6 + $0x108] ss:$12 sps:$4 sm:$0xff]  }
 0x3c3   : > { %5103 = vrsqrt.f32 %v1588_v27  ;;  %v1570_v40 = vsub.f32 %v1522_v20, %v1554_v25  ;;  %v1636_v16 = vmul.f32 %v6211_v9, %v1616_v8  ;;  %2342 = vmatpush1.bf16.msra.mxu1 %v4977_v26  ;;  %4822 = vmatpush3.bf16.msra.mxu0 %v4980_v21  ;;  %v1655_v21 = vadd.f32 %v6225_v50, %v1635_v29  ;;  %v5002_v15 = vld [vmem:[%s7865_s6 + $0xf8] ss:$12 sps:$4 sm:$0xff]  }
 0x3c4   : > { %v5100_v60 = vpop.eup %5099  ;;  %5105 = vrsqrt.f32 %v1585_v1  ;;  %v1448_v47 = vpop.xlane.xlu1 %1447  ;;  %2343 = vmatprep.subr.bf16.mxu1 %v4983_v37  ;;  %4823 = vmatprep.subr.bf16.mxu0 %v4987_v38  ;;  %v1633_v22 = vmul.f32 %v6211_v9, %v1613_v42  ;;  %v1559_v30 = vmul.f32 %v6285_v14, %v6285_v14  ;;  %v1540_v27 = vsub.f32 %v6055_v52, %v6218_v18  ;;  %v4991_v52 = vld [vmem:[%s7865_s6 + $0xf0] ss:$12 sps:$4 sm:$0xff]  }
 0x3c5   : > { %v1442_v48 = vpop.xlane.xlu0 %1441  ;;  %v1586_v46 = vadd.f32 1e-05, %v1570_v40  ;;  %v1614_v6 = vmul.f32 %v5100_v60, %v1534_v43  ;;  %2004 = vmatmul.mubr.bf16.gmra.mxu0 %v1826_v3  ;;  %v1656_v45 = vadd.f32 %v6225_v50, %v1636_v16  ;;  %v6307_v31 = vmul.f32 0.0078125, %v1448_v47  ;;  %v4997_v18 = vld [vmem:[%s7865_s6 + $0xdc] ss:$12 sps:$4 sm:$0xff]  }
 0x3c6   : > { %v6277_v0 = vmul.f32 0.0078125, %v1442_v48  ;;  %2013 = vmatprep.mubr.bf16.mxu0 %v5349_v4  ;;  %v1653_v11 = vadd.f32 %v6225_v50, %v1633_v22  ;;  %v1537_v8 = vsub.f32 %v6060_v34, %v6220_v12  ;;  %v4995_v22 = vld [vmem:[%s7865_s6 + $0xd8] ss:$12 sps:$4 sm:$0xff]  }
 0x3c7   : > { %5107 = vrsqrt.f32 %v1586_v46  ;;  %v1634_v2 = vmul.f32 %v6211_v9, %v1614_v6  ;;  %2344 = vmatpush1.bf16.msra.mxu1 %v4981_v17  ;;  %4824 = vmatpush3.bf16.msra.mxu0 %v4987_v38  ;;  %v1828_v36 = vpack.c.bf16 %v1656_v45, %v1655_v21  ;;  %v1560_v43 = vmul.f32 %v6307_v31, %v6307_v31 }
 0x3c8   : > { %v1444_v28 = vpop.xlane.xlu1 %1443  ;;  %v1557_v61 = vmul.f32 %v6277_v0, %v6277_v0  ;;  %2345 = vmatprep.subr.bf16.mxu1 %v4986_v57  ;;  %4825 = vmatprep.subr.bf16.mxu0 %v4994_v41  ;;  %v1538_v17 = vsub.f32 %v6074_v24, %v6244_v49  ;;  %v5001_v24 = vld [vmem:[%s7865_s6 + $0xc4] ss:$12 sps:$4 sm:$0xff]   ;;  %v5004_v49 = vld [vmem:[%s7865_s6 + $0xc8] ss:$12 sps:$4 sm:$0xff]  }
 0x3c9   : > { %v1506_v44 = vpop.xlane.xlu0 %1505  ;;  %v6294_v10 = vmul.f32 0.0078125, %v1444_v28  ;;  %v1654_v3 = vadd.f32 %v6225_v50, %v1634_v2 }
 0x3ca   : > { %v1525_v62 = vmul.f32 0.0078125, %v1506_v44 }
 0x3cb   : > { %v1827_v35 = vpack.c.bf16 %v1654_v3, %v1653_v11  ;;  %2346 = vmatpush1.bf16.msra.mxu1 %v4984_v58  ;;  %4826 = vmatpush3.bf16.msra.mxu0 %v4994_v41  ;;  %v1558_v55 = vmul.f32 %v6294_v10, %v6294_v10  ;;  %v1541_v3 = vsub.f32 %v6120_v54, %v6277_v0 }
 0x3cc   : > { %v1573_v23 = vsub.f32 %v1525_v62, %v1557_v61  ;;  %v1508_v53 = vpop.xlane.xlu1 %1507  ;;  %2347 = vmatprep.subr.bf16.mxu1 %v4990_v59  ;;  %4827 = vmatprep.subr.bf16.mxu0 %v4998_v39  ;;  %v4999_v62 = vld [vmem:[%s7865_s6 + $0xc0] ss:$12 sps:$4 sm:$0xff]   ;;  %v1543_v54 = vsub.f32 %v6099_v5, %v6285_v14 }
 0x3cd   : > { %v1510_v32 = vpop.xlane.xlu0 %1509  ;;  %v1526_v37 = vmul.f32 0.0078125, %v1508_v53  ;;  %2014 = vmatmul.mubr.bf16.gmra.mxu0 %v1827_v35  ;;  %4807 = vmatprep.mubr.bf16.mxu1 %v1827_v35  ;;  %v5102_v25 = vpop.eup %5101  ;;  %v1542_v35 = vsub.f32 %v6131_v7, %v6294_v10 }
 0x3ce   : > { %v1589_v26 = vadd.f32 1e-05, %v1573_v23  ;;  %v1527_v38 = vmul.f32 0.0078125, %v1510_v32  ;;  %4808 = vmatmul.mubr.bf16.gmra.mxu1 %v1828_v36  ;;  %2023 = vmatprep.mubr.bf16.mxu0 %v5349_v4  ;;  %v1619_v16 = vmul.f32 %v5102_v25, %v1539_v19 }
 0x3cf   : > { %v1574_v1 = vsub.f32 %v1526_v37, %v1558_v55  ;;  %2348 = vmatpush1.bf16.msra.mxu1 %v4988_v33  ;;  %4828 = vmatpush3.bf16.msra.mxu0 %v4998_v39  ;;  %v1544_v37 = vsub.f32 %v6114_v56, %v6307_v31 }
 0x3d0   : > { %5109 = vrsqrt.f32 %v1589_v26  ;;  %v1575_v20 = vsub.f32 %v1527_v38, %v1559_v30  ;;  %v5104_v42 = vpop.eup %5103  ;;  %v1512_v40 = vpop.xlane.xlu1 %1511  ;;  %2349 = vmatprep.subr.bf16.mxu1 %v4993_v63  ;;  %4829 = vmatprep.subr.bf16.mxu0 %v5002_v15  ;;  %v1639_v2 = vmul.f32 %v6211_v9, %v1619_v16 }
 0x3d1   : > { %v5106_v13 = vpop.eup %5105  ;;  %v1590_v34 = vadd.f32 1e-05, %v1574_v1  ;;  %v1528_v60 = vmul.f32 0.0078125, %v1512_v40  ;;  %v1620_v47 = vmul.f32 %v5104_v42, %v1540_v27  ;;  %v1665_v42 = vld [vmem:[%s6383_s29] sm:$0xff] }
 0x3d2   : > { %v1591_v12 = vadd.f32 1e-05, %v1575_v20  ;;  %v1617_v48 = vmul.f32 %v5106_v13, %v1537_v8  ;;  %v1659_v11 = vadd.f32 %v6225_v50, %v1639_v2  ;;  %v1666_v20 = vld [vmem:[%s6383_s29 + $0x8] sm:$0xff]  ;;  %v1669_v13 = vld [vmem:[%s6383_s29 + $0x20] sm:$0xff] }
 0x3d3   : > { %5111 = vrsqrt.f32 %v1590_v34  ;;  %v1576_v57 = vsub.f32 %v1528_v60, %v1560_v43  ;;  %v1640_v41 = vmul.f32 %v6211_v9, %v1620_v47  ;;  %2350 = vmatpush1.bf16.msra.mxu1 %v4991_v52  ;;  %4830 = vmatpush3.bf16.msra.mxu0 %v5002_v15  ;;  %v1667_v52 = vld [vmem:[%s6383_s29 + $0x10] sm:$0xff]  ;;  %v1670_v34 = vld [vmem:[%s6383_s29 + $0x28] sm:$0xff] }
 0x3d4   : > { %v5108_v46 = vpop.eup %5107  ;;  %5113 = vrsqrt.f32 %v1591_v12  ;;  %v6340_v6 = vpop.permute.xlu1 %1704  ;;  %v1637_v44 = vmul.f32 %v6211_v9, %v1617_v48  ;;  %2351 = vmatprep.subr.bf16.mxu1 %v4997_v18  ;;  %4831 = vmatprep.subr.bf16.mxu0 %v5003_v51  ;;  %v1668_v18 = vld [vmem:[%s6383_s29 + $0x18] sm:$0xff] }
 0x3d5   : > { %v1592_v29 = vadd.f32 1e-05, %v1576_v57  ;;  %v1618_v28 = vmul.f32 %v5108_v46, %v1538_v17  ;;  %2024 = vmatmul.mubr.bf16.gmra.mxu0 %v1828_v36  ;;  %v1660_v61 = vadd.f32 %v6225_v50, %v1640_v41  ;;  %v1700_v8 = vpop.permute.xlu0 %1699  ;;  %v6392_v43 = vmul.f32 %v6340_v6, %v1666_v20  ;;  %v1671_v6 = vld [vmem:[%s6383_s29 + $0x30] sm:$0xff]  ;;  %v1672_v41 = vld [vmem:[%s6383_s29 + $0x38] sm:$0xff] }
 0x3d6   : > { %2033 = vmatprep.mubr.bf16.mxu0 %v5349_v4  ;;  %v1657_v59 = vadd.f32 %v6225_v50, %v1637_v44  ;;  %v6394_v40 = vmul.f32 %v1700_v8, %v1665_v42 }
 0x3d7   : > { %5115 = vrsqrt.f32 %v1592_v29  ;;  %v1638_v45 = vmul.f32 %v6211_v9, %v1618_v28  ;;  %2352 = vmatpush1.bf16.msra.mxu1 %v4995_v22  ;;  %4832 = vmatpush3.bf16.msra.mxu0 %v5003_v51  ;;  %v1830_v53 = vpack.c.bf16 %v1660_v61, %v1659_v11  ;;  %7887 = vst [vmem:[#allocation2_spill] sm:$0xff] %v6392_v43  ;;  %v1674_v22 = vld [vmem:[%s6383_s29 + $0x48] sm:$0xff]  ;;  %v1673_v29 = vld [vmem:[%s6383_s29 + $0x40] sm:$0xff]  ;;  %v1676_v11 = vld [vmem:[%s6383_s29 + $0x58] sm:$0xff] }
 0x3d8   : > { %v6356_v58 = vpop.permute.xlu1 %1709  ;;  %2353 = vmatprep.subr.bf16.mxu1 %v5001_v24  ;;  %4833 = vmatprep.subr.bf16.mxu0 %v5004_v49 }
 0x3d9   : > { %v1658_v39 = vadd.f32 %v6225_v50, %v1638_v45  ;;  %v6406_v12 = vmul.f32 %v6356_v58, %v1667_v52  ;;  %v1745_v46 = vpop.permute.xlu0 %1744 }
 0x3db   : > { %v1829_v21 = vpack.c.bf16 %v1658_v39, %v1657_v59  ;;  %2354 = vmatpush1.bf16.msra.mxu1 %v4999_v62  ;;  %4834 = vmatpush3.bf16.msra.mxu0 %v5004_v49  ;;  %v6427_v49 = vmul.f32 %v1745_v46, %v1674_v22  ;;  %v1675_v62 = vld [vmem:[%s6383_s29 + $0x50] sm:$0xff]  ;;  %v1677_v59 = vld [vmem:[%s6383_s29 + $0x60] sm:$0xff] }
 0x3dc   : > { %v1715_v30 = vpop.permute.xlu1 %1714 }
 0x3dd   : > { %v5110_v23 = vpop.eup %5109  ;;  %4811 = vmatprep.mubr.bf16.mxu1 %v1829_v21  ;;  %2034 = vmatmul.mubr.bf16.gmra.mxu0 %v1829_v21  ;;  %v6408_v60 = vmul.f32 %v1715_v30, %v1668_v18  ;;  %7892 = vst [vmem:[#allocation7_spill] sm:$0xff] %v6427_v49  ;;  %v1755_v45 = vpop.permute.xlu0 %1754 }
 0x3de   : > { %v1621_v32 = vmul.f32 %v5110_v23, %v1541_v3  ;;  %4812 = vmatmul.mubr.bf16.gmra.mxu1 %v1830_v53  ;;  %2043 = vmatprep.mubr.bf16.mxu0 %v5349_v4  ;;  %v1678_v3 = vld [vmem:[%s6383_s29 + $0x68] sm:$0xff] }
 0x3df   : > { %v2204_v17 = vpack.c.bf16 %v6408_v60, %v6406_v12 }
 0x3e0   : > { %v5112_v36 = vpop.eup %5111  ;;  %v1641_v63 = vmul.f32 %v6211_v9, %v1621_v32  ;;  %v1720_v55 = vpop.permute.xlu1 %1719 }
 0x3e1   : > { %v5114_v0 = vpop.eup %5113  ;;  %v1622_v33 = vmul.f32 %v5112_v36, %v1542_v35  ;;  %v6410_v47 = vmul.f32 %v1720_v55, %v1669_v13  ;;  %v1765_v23 = vpop.permute.xlu0 %1764 }
 0x3e2   : > { %v1623_v26 = vmul.f32 %v5114_v0, %v1543_v54  ;;  %v1661_v7 = vadd.f32 %v6225_v50, %v1641_v63  ;;  %v6446_v32 = vmul.f32 %v1765_v23, %v1678_v3  ;;  %v1679_v54 = vld [vmem:[%s6383_s29 + $0x70] sm:$0xff] }
 0x3e3   : > { %v1642_v38 = vmul.f32 %v6211_v9, %v1622_v33  ;;  %7888 = vst [vmem:[#allocation3_spill] sm:$0xff] %v6410_v47  ;;  %v1680_v33 = vld [vmem:[%s6383_s29 + $0x78] sm:$0xff] }
 0x3e4   : > { %v5116_v15 = vpop.eup %5115  ;;  %v1643_v27 = vmul.f32 %v6211_v9, %v1623_v26  ;;  %v1725_v14 = vpop.permute.xlu1 %1724  ;;  %7897 = vst [vmem:[#allocation12_spill] sm:$0xff] %v6446_v32 }
 0x3e5   : > { %v1662_v10 = vadd.f32 %v6225_v50, %v1642_v38  ;;  %v1624_v25 = vmul.f32 %v5116_v15, %v1544_v37  ;;  %2044 = vmatmul.mubr.bf16.gmra.mxu0 %v1830_v53  ;;  %v6412_v48 = vmul.f32 %v1725_v14, %v1670_v34  ;;  %v6444_v53 = vmul.f32 %v1755_v45, %v1676_v11  ;;  %v1775_v63 = vpop.permute.xlu0 %1774 }
 0x3e6   : > { %2053 = vmatprep.mubr.bf16.mxu0 %v5349_v4  ;;  %v1663_v31 = vadd.f32 %v6225_v50, %v1643_v27  ;;  %v6457_v26 = vmul.f32 %v1775_v63, %v1680_v33  ;;  %v6545_v33 = vld [vmem:[%s7868_s9 + $0x4] ss:$0 sm:$0xff] }
 0x3e7   : > { %v1831_v5 = vpack.c.bf16 %v1662_v10, %v1661_v7  ;;  %v1644_v56 = vmul.f32 %v6211_v9, %v1624_v25  ;;  %7889 = vst [vmem:[#allocation4_spill] sm:$0xff] %v6412_v48  ;;  %v2205_v57 = vpack.c.bf16 %v6412_v48, %v6410_v47  ;;  %7896 = vst [vmem:[#allocation11_spill] sm:$0xff] %v6444_v53 }
 0x3e8   : > { %v1730_v9 = vpop.permute.xlu1 %1729  ;;  %7899 = vst [vmem:[#allocation14_spill] sm:$0xff] %v6457_v26 }
 0x3e9   : > { %4815 = vmatprep.mubr.bf16.mxu1 %v1831_v5  ;;  %v1664_v1 = vadd.f32 %v6225_v50, %v1644_v56  ;;  %v2203_v50 = vpack.c.bf16 %v6392_v43, %v6394_v40  ;;  %v6423_v28 = vmul.f32 %v1730_v9, %v1671_v6 }
 0x3eb   : > { %v1832_v19 = vpack.c.bf16 %v1664_v1, %v1663_v31  ;;  %7890 = vst [vmem:[#allocation5_spill] sm:$0xff] %v6423_v28 }
 0x3ec   : > { %v1735_v51 = vpop.permute.xlu1 %1734 }
 0x3ed   : > { %4816 = vmatmul.mubr.bf16.gmra.mxu1 %v1832_v19  ;;  %2054 = vmatmul.mubr.bf16.gmra.mxu0 %v1831_v5  ;;  %v6425_v44 = vmul.f32 %v1735_v51, %v1672_v41 }
 0x3ee   : > { %2371 = vmatprep.mubr.bf16.mxu1 %v5349_v4  ;;  %2063 = vmatprep.mubr.bf16.mxu0 %v5349_v4 }
 0x3ef   : > { %7891 = vst [vmem:[#allocation6_spill] sm:$0xff] %v6425_v44  ;;  %v2206_v58 = vpack.c.bf16 %v6425_v44, %v6423_v28 }
 0x3f0   : > { %v1740_v16 = vpop.permute.xlu1 %1739 }
 0x3f1   : > { %v6429_v2 = vmul.f32 %v1740_v16, %v1673_v29 }
 0x3f3   : > { %7893 = vst [vmem:[#allocation8_spill] sm:$0xff] %v6429_v2  ;;  %v2207_v61 = vpack.c.bf16 %v6427_v49, %v6429_v2 }
 0x3f4   : > { %v1750_v24 = vpop.permute.xlu1 %1749 }
 0x3f5   : > { %2372 = vmatmul.mubr.bf16.vlgmr.msra.gmra.mxu1 %v2203_v50  ;;  %2064 = vmatmul.mubr.bf16.gmra.mxu0 %v1832_v19  ;;  %v6440_v21 = vmul.f32 %v1750_v24, %v1675_v62 }
 0x3f6   : > { %2381 = vmatprep.mubr.bf16.mxu1 %v5349_v4  ;;  %4835 = vmatprep.mubr.bf16.mxu0 %v2203_v50 }
 0x3f7   : > { %7894 = vst [vmem:[#allocation9_spill] sm:$0xff] %v6440_v21  ;;  %v2208_v35 = vpack.c.bf16 %v6444_v53, %v6440_v21 }
 0x3f8   : > { %v1760_v39 = vpop.permute.xlu1 %1759 }
 0x3f9   : > { %v6442_v30 = vmul.f32 %v1760_v39, %v1677_v59 }
 0x3fb   : > { %7895 = vst [vmem:[#allocation10_spill] sm:$0xff] %v6442_v30  ;;  %v2209_v36 = vpack.c.bf16 %v6446_v32, %v6442_v30 }
 0x3fc   : > { %v1770_v0 = vpop.permute.xlu1 %1769 }
 0x3fd   : > { %2382 = vmatmul.mubr.bf16.gmra.mxu1 %v2204_v17  ;;  %4836 = vmatmul.mubr.bf16.vlgmr.msra.gmra.mxu0 %v2204_v17  ;;  %v6455_v55 = vmul.f32 %v1770_v0, %v1679_v54 }
 0x3fe   : > { %2391 = vmatprep.mubr.bf16.mxu1 %v5349_v4  ;;  %4839 = vmatprep.mubr.bf16.mxu0 %v2205_v57 }
 0x3ff   : > { %7898 = vst [vmem:[#allocation13_spill] sm:$0xff] %v6455_v55  ;;  %v2210_v37 = vpack.c.bf16 %v6457_v26, %v6455_v55  ;;  %v6552_v55 = vld [vmem:[%s7868_s9 + $0x5] ss:$0 sm:$0xff] }
 0x405   : > { %2392 = vmatmul.mubr.bf16.gmra.mxu1 %v2205_v57  ;;  %4840 = vmatmul.mubr.bf16.gmra.mxu0 %v2206_v58 }
 0x406   : > { %2401 = vmatprep.mubr.bf16.mxu1 %v5349_v4  ;;  %4843 = vmatprep.mubr.bf16.mxu0 %v2207_v61 }
 0x40d   : > { %2402 = vmatmul.mubr.bf16.gmra.mxu1 %v2206_v58  ;;  %4844 = vmatmul.mubr.bf16.gmra.mxu0 %v2208_v35 }
 0x40e   : > { %2411 = vmatprep.mubr.bf16.mxu1 %v5349_v4  ;;  %4847 = vmatprep.mubr.bf16.mxu0 %v2209_v36 }
 0x415   : > { %2412 = vmatmul.mubr.bf16.gmra.mxu1 %v2207_v61  ;;  %4848 = vmatmul.mubr.bf16.gmra.mxu0 %v2210_v37 }
 0x416   : > { %2421 = vmatprep.mubr.bf16.mxu1 %v5349_v4 }
 0x41d   : > { %2422 = vmatmul.mubr.bf16.gmra.mxu1 %v2208_v35 }
 0x41e   : > { %2431 = vmatprep.mubr.bf16.mxu1 %v5349_v4 }
 0x425   : > { %2432 = vmatmul.mubr.bf16.gmra.mxu1 %v2209_v36 }
 0x426   : > { %2441 = vmatprep.mubr.bf16.mxu1 %v5349_v4 }
 0x42d   : > { %2442 = vmatmul.mubr.bf16.gmra.mxu1 %v2210_v37 }
 0x47d   : > { %v1995_v38 = vpop.f32.mrf.mxu0 }
 0x47e   : > { %v6464_v10 = vpop.f32.mrf.mxu1 }
 0x47f   : > { %v1997_v15 = vpop.f32.mrf.mxu0 }
 0x480   : > { %v6466_v5 = vpop.f32.mrf.mxu1 }
 0x481   : > { %v1999_v7 = vpop.f32.mrf.mxu0 }
 0x482   : > { %v6472_v31 = vpop.f32.mrf.mxu1 }
 0x483   : > { %v2001_v25 = vpop.f32.mrf.mxu0 }
 0x484   : > { %v6478_v4 = vpop.f32.mrf.mxu1 }
 0x485   : > { %v2005_v27 = vpop.f32.mrf.mxu0 }
 0x487   : > { %v6468_v56 = vpop.f32.mrf.mxu0 }
 0x489   : > { %v6470_v14 = vpop.f32.mrf.mxu0 }
 0x48b   : > { %v6474_v1 = vpop.f32.mrf.mxu0 }
 0x48d   : > { %v6476_v20 = vpop.f32.mrf.mxu0 }
 0x48e   : > { %v6482_v19 = vpop.f32.mrf.mxu1 }
 0x48f   : > { %v6480_v42 = vpop.f32.mrf.mxu0 }
 0x490   : > { %v6488_v50 = vpop.f32.mrf.mxu1 }
 0x491   : > { %v6484_v8 = vpop.f32.mrf.mxu0 }
 0x492   : > { %v6494_v51 = vpop.f32.mrf.mxu1 }
 0x493   : > { %v6486_v9 = vpop.f32.mrf.mxu0 }
 0x494   : > { %v6500_v16 = vpop.f32.mrf.mxu1 }
 0x495   : > { %v6490_v52 = vpop.f32.mrf.mxu0 }
 0x497   : > { %v6492_v18 = vpop.f32.mrf.mxu0 }
 0x499   : > { %v6496_v13 = vpop.f32.mrf.mxu0 }
 0x49b   : > { %v6498_v34 = vpop.f32.mrf.mxu0 }
 0x49d   : > { %v6502_v17 = vpop.f32.mrf.mxu0 }
 0x49e   : > { %v6504_v57 = vpop.f32.mrf.mxu1 }
 0x49f   : > { %v6506_v46 = vpop.f32.mrf.mxu0 }
 0x4a0   : > { %v6510_v41 = vpop.f32.mrf.mxu1 }
 0x4a1   : > { %v6508_v6 = vpop.f32.mrf.mxu0 }
 0x4a2   : > { %v6516_v24 = vpop.f32.mrf.mxu1 }
 0x4a3   : > { %v6512_v22 = vpop.f32.mrf.mxu0 }
 0x4a4   : > { %v6522_v61 = vpop.f32.mrf.mxu1 }
 0x4a5   : > { %v6514_v29 = vpop.f32.mrf.mxu0 }
 0x4a7   : > { %v6518_v45 = vpop.f32.mrf.mxu0 }
 0x4a9   : > { %v6520_v58 = vpop.f32.mrf.mxu0 }
 0x4ab   : > { %v6524_v62 = vpop.f32.mrf.mxu0 }
 0x4ad   : > { %v6526_v59 = vpop.f32.mrf.mxu1  ;;  %v6528_v39 = vpop.f32.mrf.mxu0 }
 0x4ae   : > { %7900 = vst [vmem:[#allocation15_spill] sm:$0xff] %v6526_v59 }
 0x4af   : > { %v6530_v11 = vpop.f32.mrf.mxu1  ;;  %v6532_v3 = vpop.f32.mrf.mxu0 }
 0x4b1   : > { %v6534_v23 = vpop.f32.mrf.mxu1  ;;  %v6536_v35 = vpop.f32.mrf.mxu0 }
 0x4b2   : > { %7901 = vst [vmem:[#allocation16_spill] sm:$0xff] %v6534_v23 }
 0x4b3   : > { %v6538_v36 = vpop.f32.mrf.mxu1  ;;  %v6540_v54 = vpop.f32.mrf.mxu0 }
 0x4b5   : > { %v2373_v0 = vpop.f32.mrf.mxu1  ;;  %v6547_v63 = vpop.f32.mrf.mxu0 }
 0x4b6   : > { %v2549_v37 = vadd.f32 %v2373_v0, %v1995_v38 }
 0x4b7   : > { %v2375_v26 = vpop.f32.mrf.mxu1  ;;  %v6555_v30 = vpop.f32.mrf.mxu0 }
 0x4b8   : > { %v2570_v32 = vadd.f32 %v6545_v33, %v2549_v37  ;;  %v2650_v53 = vadd.f32 %v2375_v26, %v1997_v15 }
 0x4b9   : > { %v2377_v23 = vpop.f32.mrf.mxu1  ;;  %v6558_v49 = vpop.f32.mrf.mxu0 }
 0x4ba   : > { %v2586_v21 = vmul.f32 0.5, %v2570_v32  ;;  %v2671_v59 = vadd.f32 %v6552_v55, %v2650_v53  ;;  %7902 = vst [vmem:[#allocation17_spill] sm:$0xff] %v6558_v49  ;;  %v2550_v2 = vadd.f32 %v2377_v23, %v1999_v7 }
 0x4bb   : > { %v2379_v44 = vpop.f32.mrf.mxu1  ;;  %v6561_v28 = vpop.f32.mrf.mxu0 }
 0x4bc   : > { %5117 = vtanh.f32 %v2586_v21  ;;  %v2687_v38 = vmul.f32 0.5, %v2671_v59  ;;  %v2571_v0 = vadd.f32 %v6545_v33, %v2550_v2  ;;  %7903 = vst [vmem:[#allocation18_spill] sm:$0xff] %v6561_v28  ;;  %v2651_v48 = vadd.f32 %v2379_v44, %v2001_v25 }
 0x4bd   : > { %v2383_v47 = vpop.f32.mrf.mxu1  ;;  %v6564_v15 = vpop.f32.mrf.mxu0 }
 0x4be   : > { %v2587_v37 = vmul.f32 0.5, %v2571_v0  ;;  %v2672_v43 = vadd.f32 %v6552_v55, %v2651_v48  ;;  %v2551_v26 = vadd.f32 %v2383_v47, %v2005_v27  ;;  %5119 = vtanh.f32 %v2687_v38  ;;  %v6575_v48 = vld [vmem:[%s7868_s9 + $0x6] ss:$0 sm:$0xff] }
 0x4bf   : > { %v2385_v53 = vpop.f32.mrf.mxu1  ;;  %v2486_v59 = vpop.f32.mrf.mxu0  ;;  %7904 = vst [vmem:[#allocation19_spill] sm:$0xff] %v6575_v48 }
 0x4c0   : > { %5121 = vtanh.f32 %v2587_v37  ;;  %v2688_v32 = vmul.f32 0.5, %v2672_v43  ;;  %v2572_v7 = vadd.f32 %v6545_v33, %v2551_v26  ;;  %v2652_v21 = vadd.f32 %v2385_v53, %v6468_v56 }
 0x4c1   : > { %v2387_v2 = vpop.f32.mrf.mxu1  ;;  %v6570_v0 = vpop.f32.mrf.mxu0 }
 0x4c2   : > { %v2588_v23 = vmul.f32 0.5, %v2572_v7  ;;  %v2673_v44 = vadd.f32 %v6552_v55, %v2652_v21  ;;  %v2552_v25 = vadd.f32 %v2387_v2, %v6470_v14  ;;  %5123 = vtanh.f32 %v2688_v32 }
 0x4c3   : > { %v2389_v47 = vpop.f32.mrf.mxu1  ;;  %v6579_v38 = vpop.f32.mrf.mxu0  ;;  %v6587_v7 = vadd.f32 %v6464_v10, %v6575_v48  ;;  %v6603_v10 = vadd.f32 %v6575_v48, %v6478_v4  ;;  %v6620_v4 = vadd.f32 %v6575_v48, %v6500_v16  ;;  %v6633_v16 = vadd.f32 %v6516_v24, %v6575_v48 }
 0x4c4   : > { %5125 = vtanh.f32 %v2588_v23  ;;  %v2689_v43 = vmul.f32 0.5, %v2673_v44  ;;  %v2573_v27 = vadd.f32 %v6545_v33, %v2552_v25  ;;  %v2653_v56 = vadd.f32 %v2389_v47, %v6474_v1 }
 0x4c5   : > { %v2393_v37 = vpop.f32.mrf.mxu1  ;;  %v6583_v32 = vpop.f32.mrf.mxu0  ;;  %v6599_v47 = vadd.f32 %v6472_v31, %v6575_v48  ;;  %v6616_v31 = vadd.f32 %v6494_v51, %v6575_v48  ;;  %v6629_v51 = vadd.f32 %v6575_v48, %v6510_v41  ;;  %7906 = vst [vmem:[#allocation21_spill] sm:$0xff] %v6633_v16 }
 0x4c6   : > { %v2589_v26 = vmul.f32 0.5, %v2573_v27  ;;  %v2674_v14 = vadd.f32 %v6552_v55, %v2653_v56  ;;  %v2553_v53 = vadd.f32 %v2393_v37, %v6476_v20  ;;  %5127 = vtanh.f32 %v2689_v43 }
 0x4c7   : > { %v2395_v21 = vpop.f32.mrf.mxu1  ;;  %v6591_v44 = vpop.f32.mrf.mxu0  ;;  %v6595_v20 = vadd.f32 %v6575_v48, %v6466_v5  ;;  %v6607_v43 = vadd.f32 %v6482_v19, %v6575_v48 }
 0x4c8   : > { %5129 = vtanh.f32 %v2589_v26  ;;  %v2690_v2 = vmul.f32 0.5, %v2674_v14  ;;  %v2574_v1 = vadd.f32 %v6545_v33, %v2553_v53  ;;  %v2654_v23 = vadd.f32 %v2395_v21, %v6480_v42 }
 0x4c9   : > { %v5118_v25 = vpop.eup %5117  ;;  %v2397_v42 = vpop.f32.mrf.mxu1  ;;  %v6612_v26 = vadd.f32 %v6575_v48, %v6488_v50  ;;  %v6625_v21 = vadd.f32 %v6504_v57, %v6575_v48 }
 0x4ca   : > { %v2618_v27 = vmul.f32 0.5, %v5118_v25  ;;  %5131 = vtanh.f32 %v2690_v2  ;;  %v2590_v56 = vmul.f32 0.5, %v2574_v1  ;;  %v2675_v37 = vadd.f32 %v6552_v55, %v2654_v23  ;;  %v4842_v5 = vpop.f32.mrf.mxu0 }
 0x4cb   : > { %v2554_v19 = vadd.f32 %v2397_v42, %v6484_v8  ;;  %v2399_v14 = vpop.f32.mrf.mxu1  ;;  %v5120_v53 = vpop.eup %5119  ;;  %7905 = vst [vmem:[#allocation20_spill] sm:$0xff] %v6625_v21  ;;  %v6638_v8 = vld [vmem:[%s7868_s9 + $0x7] ss:$0 sm:$0xff] }
 0x4cc   : > { %v2634_v2 = vadd.f32 0.5, %v2618_v27  ;;  %5133 = vtanh.f32 %v2590_v56  ;;  %v2691_v50 = vmul.f32 0.5, %v2675_v37  ;;  %v2505_v1 = vpop.f32.mrf.mxu0  ;;  %v2655_v25 = vadd.f32 %v2399_v14, %v6486_v9 }
 0x4cd   : > { %v5122_v23 = vpop.eup %5121  ;;  %v2575_v57 = vadd.f32 %v6545_v33, %v2554_v19  ;;  %v2403_v42 = vpop.f32.mrf.mxu1  ;;  %v6644_v27 = vadd.f32 %v6575_v48, %v6522_v61  ;;  %v2777_v41 = vadd.f32 %v6638_v8, %v2486_v59  ;;  %v2719_v37 = vmul.f32 0.5, %v5120_v53 }
 0x4ce   : > { %v2619_v56 = vmul.f32 0.5, %v5122_v23  ;;  %5135 = vtanh.f32 %v2691_v50  ;;  %v4845_v24 = vpop.f32.mrf.mxu0  ;;  %v2676_v21 = vadd.f32 %v6552_v55, %v2655_v25  ;;  %v2555_v28 = vadd.f32 %v2403_v42, %v6490_v52 }
 0x4cf   : > { %7907 = vst [vmem:[#allocation22_spill] sm:$0xff] %v6644_v27  ;;  %v2591_v16 = vmul.f32 0.5, %v2575_v57  ;;  %v2405_v49 = vpop.f32.mrf.mxu1  ;;  %v5124_v19 = vpop.eup %5123  ;;  %v6651_v9 = vadd.f32 %v6575_v48, %v6530_v11  ;;  %v6655_v61 = vadd.f32 %v6575_v48, %v6538_v36  ;;  %v2779_v59 = vadd.f32 %v6564_v15, %v6638_v8 }
 0x4d0   : > { %v2793_v14 = vmul.f32 %v2777_v41, %v2634_v2  ;;  %v2518_v53 = vpop.f32.mrf.mxu0  ;;  %v2780_v23 = vadd.f32 %v6570_v0, %v6638_v8  ;;  %v2576_v52 = vadd.f32 %v6545_v33, %v2555_v28  ;;  %v2656_v57 = vadd.f32 %v2405_v49, %v6492_v18 }
 0x4d1   : > { %7908 = vst [vmem:[#allocation23_spill] sm:$0xff] %v6651_v9  ;;  %7909 = vst [vmem:[#allocation24_spill] sm:$0xff] %v6655_v61  ;;  %v5126_v50 = vpop.eup %5125  ;;  %5137 = vtanh.f32 %v2591_v16  ;;  %v2407_v11 = vpop.f32.mrf.mxu1  ;;  %v2635_v42 = vadd.f32 0.5, %v2619_v56  ;;  %v2778_v36 = vadd.f32 %v6638_v8, %v6579_v38  ;;  %v2692_v48 = vmul.f32 0.5, %v2676_v21 }
 0x4d2   : > { %v2620_v25 = vmul.f32 0.5, %v5126_v50  ;;  %v4846_v61 = vpop.f32.mrf.mxu0  ;;  %v6665_v15 = vadd.f32 0.5, %v2719_v37  ;;  %v6669_v2 = vadd.f32 %v6583_v32, %v6638_v8  ;;  %v2592_v0 = vmul.f32 0.5, %v2576_v52 }
 0x4d3   : > { %v2677_v16 = vadd.f32 %v6552_v55, %v2656_v57  ;;  %v2409_v28 = vpop.f32.mrf.mxu1  ;;  %v5128_v41 = vpop.eup %5127  ;;  %v2720_v49 = vmul.f32 0.5, %v5124_v19  ;;  %v2809_v56 = vadd.f32 %v2793_v14, %v6595_v20  ;;  %v6675_v38 = vadd.f32 %v6638_v8, %v6591_v44 }
 0x4d4   : > { %v2636_v18 = vadd.f32 0.5, %v2620_v25  ;;  %v6678_v37 = vadd.f32 %v4842_v5, %v6638_v8  ;;  %5139 = vtanh.f32 %v2592_v0  ;;  %v2556_v50 = vadd.f32 %v2407_v11, %v6496_v13  ;;  %v2521_v52 = vpop.f32.mrf.mxu0 }
 0x4d5   : > { %v5130_v21 = vpop.eup %5129  ;;  %v2693_v32 = vmul.f32 0.5, %v2677_v16  ;;  %v2413_v57 = vpop.f32.mrf.mxu1  ;;  %v2794_v27 = vmul.f32 %v2778_v36, %v2635_v42  ;;  %5141 = vtanh.f32 %v2692_v48  ;;  %v6682_v19 = vadd.f32 %v6638_v8, %v2505_v1 }
 0x4d6   : > { %v2621_v9 = vmul.f32 0.5, %v5130_v21  ;;  %v6686_v14 = vadd.f32 %v4845_v24, %v6638_v8  ;;  %v2577_v5 = vadd.f32 %v6545_v33, %v2556_v50  ;;  %v2657_v25 = vadd.f32 %v2409_v28, %v6498_v34  ;;  %v6693_v21 = vpop.f32.mrf.mxu0 }
 0x4d7   : > { %v5132_v20 = vpop.eup %5131  ;;  %v2415_v0 = vpop.f32.mrf.mxu1  ;;  %v6690_v13 = vadd.f32 0.5, %v2720_v49  ;;  %v2795_v11 = vmul.f32 %v2779_v59, %v2636_v18  ;;  %v2721_v16 = vmul.f32 0.5, %v5128_v41  ;;  %5143 = vtanh.f32 %v2809_v56 }
 0x4d8   : > { %7910 = vst [vmem:[#allocation25_spill] sm:$0xff] %v6686_v14  ;;  %v2637_v42 = vadd.f32 0.5, %v2621_v9  ;;  %5145 = vtanh.f32 %v2693_v32  ;;  %v2593_v1 = vmul.f32 0.5, %v2577_v5  ;;  %v2557_v36 = vadd.f32 %v2413_v57, %v6502_v17 }
 0x4d9   : > { %v5134_v48 = vpop.eup %5133  ;;  %v2417_v24 = vpop.f32.mrf.mxu1  ;;  %v2722_v44 = vmul.f32 0.5, %v5132_v20  ;;  %v2810_v50 = vadd.f32 %v2794_v27, %v6603_v10  ;;  %v2678_v34 = vadd.f32 %v6552_v55, %v2657_v25  ;;  %v6698_v59 = vadd.f32 %v6638_v8, %v2518_v53 }
 0x4da   : > { %v2622_v14 = vmul.f32 0.5, %v5134_v48  ;;  %5147 = vtanh.f32 %v2593_v1  ;;  %v2578_v9 = vadd.f32 %v6545_v33, %v2557_v36  ;;  %v2658_v41 = vadd.f32 %v2415_v0, %v6506_v46  ;;  %v2534_v20 = vpop.f32.mrf.mxu0 }
 0x4db   : > { %v5136_v28 = vpop.eup %5135  ;;  %v2419_v49 = vpop.f32.mrf.mxu1  ;;  %v2842_v17 = vsub.f32 1.0, %v6690_v13  ;;  %v2811_v18 = vadd.f32 %v2795_v11, %v6587_v7  ;;  %v6704_v56 = vadd.f32 0.5, %v2721_v16  ;;  %v6707_v10 = vadd.f32 %v4846_v61, %v6638_v8 }
 0x4dc   : > { %v2796_v27 = vmul.f32 %v2780_v23, %v2637_v42  ;;  %v2723_v32 = vmul.f32 0.5, %v5136_v28  ;;  %v2638_v57 = vadd.f32 0.5, %v2622_v14  ;;  %v2594_v53 = vmul.f32 0.5, %v2578_v9 }
 0x4dd   : > { %v2423_v5 = vpop.f32.mrf.mxu1  ;;  %v6709_v48 = vadd.f32 0.5, %v2722_v44  ;;  %5149 = vtanh.f32 %v2810_v50  ;;  %v2694_v46 = vmul.f32 0.5, %v2678_v34  ;;  %v2558_v0 = vadd.f32 %v2417_v24, %v6508_v6 }
 0x4de   : > { %v5138_v25 = vpop.eup %5137  ;;  %v6713_v7 = vadd.f32 %v6638_v8, %v2521_v52  ;;  %5151 = vtanh.f32 %v2594_v53  ;;  %v2679_v61 = vadd.f32 %v6552_v55, %v2658_v41  ;;  %v2843_v14 = vsub.f32 1.0, %v6704_v56  ;;  %v6723_v52 = vpop.f32.mrf.mxu0 }
 0x4df   : > { %v2623_v1 = vmul.f32 0.5, %v5138_v25  ;;  %v2425_v23 = vpop.f32.mrf.mxu1  ;;  %5153 = vtanh.f32 %v2811_v18  ;;  %v2579_v11 = vadd.f32 %v6545_v33, %v2558_v0  ;;  %v2659_v44 = vadd.f32 %v2419_v49, %v6512_v22 }
 0x4e0   : > { %v2812_v16 = vadd.f32 %v2796_v27, %v6599_v47  ;;  %v6720_v42 = vadd.f32 0.5, %v2723_v32  ;;  %v2797_v6 = vmul.f32 %v6675_v38, %v2638_v57  ;;  %v2844_v34 = vsub.f32 1.0, %v6709_v48 }
 0x4e1   : > { %v2639_v36 = vadd.f32 0.5, %v2623_v1  ;;  %v2427_v24 = vpop.f32.mrf.mxu1  ;;  %v5140_v50 = vpop.eup %5139  ;;  %5155 = vtanh.f32 %v2694_v46  ;;  %v2595_v28 = vmul.f32 0.5, %v2579_v11  ;;  %v2559_v9 = vadd.f32 %v2423_v5, %v6514_v29 }
 0x4e2   : > { %v5142_v41 = vpop.eup %5141  ;;  %v2624_v18 = vmul.f32 0.5, %v5140_v50  ;;  %v2695_v22 = vmul.f32 0.5, %v2679_v61  ;;  %v2680_v47 = vadd.f32 %v6552_v55, %v2659_v44  ;;  %v2660_v49 = vadd.f32 %v2425_v23, %v6518_v45  ;;  %v2537_v46 = vpop.f32.mrf.mxu0 }
 0x4e3   : > { %v2429_v27 = vpop.f32.mrf.mxu1  ;;  %v6730_v38 = vadd.f32 %v6638_v8, %v2534_v20  ;;  %5157 = vtanh.f32 %v2595_v28  ;;  %v2580_v32 = vadd.f32 %v6545_v33, %v2559_v9  ;;  %v2560_v57 = vadd.f32 %v2427_v24, %v6520_v58 }
 0x4e4   : > { %v5144_v53 = vpop.eup %5143  ;;  %5159 = vtanh.f32 %v2812_v16  ;;  %v2845_v29 = vsub.f32 1.0, %v6720_v42  ;;  %v2813_v5 = vadd.f32 %v2797_v6, %v6612_v26  ;;  %v2798_v25 = vmul.f32 %v6682_v19, %v2639_v36 }
 0x4e5   : > { %v2433_v0 = vpop.f32.mrf.mxu1  ;;  %v5146_v45 = vpop.eup %5145  ;;  %v2724_v1 = vmul.f32 0.5, %v5142_v41  ;;  %v2640_v61 = vadd.f32 0.5, %v2624_v18  ;;  %v2596_v20 = vmul.f32 0.5, %v2580_v32  ;;  %v2581_v23 = vadd.f32 %v6545_v33, %v2560_v57 }
 0x4e6   : > { %5161 = vtanh.f32 %v2695_v22  ;;  %v2696_v11 = vmul.f32 0.5, %v2680_v47  ;;  %v2681_v58 = vadd.f32 %v6552_v55, %v2660_v49  ;;  %v2661_v44 = vadd.f32 %v2429_v27, %v6524_v62 }
 0x4e7   : > { %v2435_v16 = vpop.f32.mrf.mxu1  ;;  %v5148_v24 = vpop.eup %5147  ;;  %v6741_v26 = vadd.f32 %v6638_v8, %v2537_v46  ;;  %5163 = vtanh.f32 %v2596_v20  ;;  %v2597_v19 = vmul.f32 0.5, %v2581_v23  ;;  %v7911_v6 = vsub.f32 1.0, %v6665_v15 }
 0x4e8   : > { %5165 = vtanh.f32 %v2813_v5  ;;  %v2814_v50 = vadd.f32 %v2798_v25, %v6620_v4  ;;  %v2725_v28 = vmul.f32 0.5, %v5146_v45  ;;  %v2625_v9 = vmul.f32 0.5, %v5148_v24 }
 0x4e9   : > { %v2857_v36 = vmul.f32 %v5144_v53, %v7911_v6  ;;  %v2437_v41 = vpop.f32.mrf.mxu1  ;;  %v6746_v18 = vadd.f32 0.5, %v2724_v1  ;;  %v2799_v62 = vmul.f32 %v6669_v2, %v2640_v61  ;;  %v2873_v22 = vmul.f32 %v6665_v15, %v6394_v40 }
 0x4ea   : > { %v2561_v47 = vadd.f32 %v2433_v0, %v6528_v39  ;;  %v6752_v49 = vpop.eup %5149  ;;  %v2641_v4 = vadd.f32 0.5, %v2625_v9  ;;  %5167 = vtanh.f32 %v2696_v11  ;;  %v2697_v27 = vmul.f32 0.5, %v2681_v58 }
 0x4eb   : > { %v2682_v32 = vadd.f32 %v6552_v55, %v2661_v44  ;;  %v2439_v57 = vpop.f32.mrf.mxu1  ;;  %v5152_v2 = vpop.eup %5151  ;;  %5169 = vtanh.f32 %v2597_v19  ;;  %v6761_v53 = vadd.f32 %v2873_v22, %v2857_v36  ;;  %v2662_v39 = vadd.f32 %v2435_v16, %v6532_v3 }
 0x4ec   : > { %v2582_v40 = vadd.f32 %v6545_v33, %v2561_v47  ;;  %v5154_v15 = vpop.eup %5153  ;;  %5171 = vtanh.f32 %v2814_v50  ;;  %v6765_v5 = vadd.f32 0.5, %v2725_v28  ;;  %v2800_v25 = vmul.f32 %v6678_v37, %v2641_v4 }
 0x4ed   : > { %v2626_v46 = vmul.f32 0.5, %v5152_v2  ;;  %v2443_v0 = vpop.f32.mrf.mxu1  ;;  %v2815_v45 = vadd.f32 %v2799_v62, %v6607_v43  ;;  %2923 = vadd.xlane.f32.xlu1 %v6761_v53  ;;  %2905 = vst [vmem:[%s6758_s23] sm:$0xff] %v6761_v53  ;;  %v2562_v61 = vadd.f32 %v2437_v41, %v6536_v35  ;;  %v2663_v20 = vadd.f32 %v2439_v57, %v6540_v54 }
 0x4ee   : > { %v2598_v1 = vmul.f32 0.5, %v2582_v40  ;;  %v5156_v3 = vpop.eup %5155  ;;  %v2846_v23 = vsub.f32 1.0, %v6746_v18  ;;  %5173 = vtanh.f32 %v2697_v27  ;;  %v2698_v58 = vmul.f32 0.5, %v2682_v32 }
 0x4ef   : > { %v2642_v11 = vadd.f32 0.5, %v2626_v46  ;;  %v2683_v37 = vadd.f32 %v6552_v55, %v2662_v39  ;;  %v2583_v43 = vadd.f32 %v6545_v33, %v2562_v61  ;;  %v2859_v44 = vmul.f32 %v5154_v15, %v2843_v14  ;;  %v2445_v16 = vpop.f32.mrf.mxu1  ;;  %v7912_v15 = vld [vmem:[#allocation17_spill] sm:$0xff] }
 0x4f0   : > { %5175 = vtanh.f32 %v2598_v1  ;;  %v5158_v24 = vpop.eup %5157  ;;  %v2847_v35 = vsub.f32 1.0, %v6765_v5  ;;  %v2816_v54 = vadd.f32 %v2800_v25, %v6616_v31  ;;  %v2875_v6 = vmul.f32 %v6704_v56, %v6406_v12 }
 0x4f1   : > { %v2801_v19 = vmul.f32 %v6698_v59, %v2642_v11  ;;  %v5160_v36 = vpop.eup %5159  ;;  %5177 = vtanh.f32 %v2815_v45  ;;  %v2627_v50 = vmul.f32 0.5, %v5158_v24  ;;  %v2599_v28 = vmul.f32 0.5, %v2583_v43  ;;  %v2447_v56 = vpop.f32.mrf.mxu1  ;;  %v7915_v24 = vld [vmem:[#allocation18_spill] sm:$0xff] }
 0x4f2   : > { %v2684_v9 = vadd.f32 %v6552_v55, %v2663_v20  ;;  %5179 = vtanh.f32 %v2698_v58  ;;  %v6786_v41 = vadd.f32 %v2875_v6, %v2859_v44  ;;  %v2563_v62 = vadd.f32 %v2443_v0, %v6547_v63  ;;  %v7913_v0 = vld [vmem:[#allocation22_spill] sm:$0xff]  ;;  %v7914_v58 = vld [vmem:[#allocation25_spill] sm:$0xff]  ;;  %v7916_v6 = vld [vmem:[#allocation20_spill] sm:$0xff] }
 0x4f3   : > { %v2817_v14 = vadd.f32 %v2801_v19, %v6629_v51  ;;  %v5162_v31 = vpop.eup %5161  ;;  %v2643_v22 = vadd.f32 0.5, %v2627_v50  ;;  %v2699_v59 = vmul.f32 0.5, %v2683_v37  ;;  %5181 = vtanh.f32 %v2599_v28 }
 0x4f4   : > { %v2664_v12 = vadd.f32 %v2445_v16, %v6555_v30  ;;  %v5164_v47 = vpop.eup %5163  ;;  %5183 = vtanh.f32 %v2816_v54  ;;  %v2726_v4 = vmul.f32 0.5, %v5156_v3  ;;  %2927 = vadd.xlane.f32.xlu0 %v6786_v41  ;;  %2907 = vst [vmem:[%s6758_s23 + $0x10] sm:$0xff] %v6786_v41  ;;  %v2584_v51 = vadd.f32 %v6545_v33, %v2563_v62 }
 0x4f5   : > { %v2860_v27 = vmul.f32 %v5160_v36, %v2844_v34  ;;  %v5166_v63 = vpop.eup %5165  ;;  %5185 = vtanh.f32 %v2817_v14  ;;  %v2802_v32 = vmul.f32 %v6713_v7, %v2643_v22  ;;  %v2628_v57 = vmul.f32 0.5, %v5164_v47  ;;  %v2449_v7 = vpop.f32.mrf.mxu1 }
 0x4f6   : > { %v2700_v2 = vmul.f32 0.5, %v2684_v9  ;;  %v2600_v30 = vmul.f32 0.5, %v2584_v51  ;;  %v2973_v40 = vmul.f32 %v6786_v41, %v6786_v41  ;;  %v2876_v39 = vmul.f32 %v6709_v48, %v6408_v60  ;;  %v7917_v51 = vld [vmem:[#allocation2_spill] sm:$0xff] }
 0x4f7   : > { %v2564_v25 = vadd.f32 %v2447_v56, %v7912_v15  ;;  %v5168_v46 = vpop.eup %5167  ;;  %v2818_v45 = vadd.f32 %v2802_v32, %v7913_v0  ;;  %v2644_v1 = vadd.f32 0.5, %v2628_v57  ;;  %5187 = vtanh.f32 %v2699_v59  ;;  %v7918_v57 = vld [vmem:[#allocation21_spill] sm:$0xff] }
 0x4f8   : > { %v2685_v34 = vadd.f32 %v6552_v55, %v2664_v12  ;;  %v5170_v61 = vpop.eup %5169  ;;  %v2727_v20 = vmul.f32 0.5, %v5162_v31  ;;  %5189 = vtanh.f32 %v2600_v30  ;;  %2991 = vadd.xlane.f32.xlu0 %v2973_v40  ;;  %v6804_v3 = vadd.f32 %v2876_v39, %v2860_v27 }
 0x4f9   : > { %v2585_v11 = vadd.f32 %v6545_v33, %v2564_v25  ;;  %v5172_v60 = vpop.eup %5171  ;;  %v6807_v48 = vadd.f32 0.5, %v2726_v4  ;;  %5191 = vtanh.f32 %v2818_v45  ;;  %v2803_v37 = vmul.f32 %v7914_v58, %v2644_v1  ;;  %v7922_v58 = vld [vmem:[#allocation5_spill] sm:$0xff] }
 0x4fa   : > { %v2629_v43 = vmul.f32 0.5, %v5170_v61  ;;  %v2728_v44 = vmul.f32 0.5, %v5168_v46  ;;  %5193 = vtanh.f32 %v2700_v2  ;;  %2929 = vadd.xlane.f32.xlu1 %v6804_v3  ;;  %2908 = vst [vmem:[%s6758_s23 + $0x18] sm:$0xff] %v6804_v3  ;;  %v2665_v54 = vadd.f32 %v2449_v7, %v7915_v24  ;;  %v7921_v7 = vld [vmem:[#allocation23_spill] sm:$0xff]  ;;  %v7923_v24 = vld [vmem:[#allocation6_spill] sm:$0xff] }
 0x4fb   : > { %v2601_v16 = vmul.f32 0.5, %v2585_v11  ;;  %v5174_v19 = vpop.eup %5173  ;;  %v2819_v36 = vadd.f32 %v2803_v37, %v7916_v6  ;;  %v2701_v50 = vmul.f32 0.5, %v2685_v34  ;;  %v2971_v28 = vmul.f32 %v6761_v53, %v6761_v53 }
 0x4fc   : > { %v2645_v33 = vadd.f32 0.5, %v2629_v43  ;;  %v2743_v14 = vadd.f32 0.5, %v2727_v20  ;;  %v2686_v62 = vadd.f32 %v6552_v55, %v2665_v54  ;;  %v2974_v31 = vmul.f32 %v6804_v3, %v6804_v3 }
 0x4fd   : > { %v5176_v9 = vpop.eup %5175  ;;  %5195 = vtanh.f32 %v2601_v16  ;;  %2987 = vadd.xlane.f32.xlu0 %v2971_v28  ;;  %v2858_v12 = vmul.f32 %v6752_v49, %v2842_v17  ;;  %v6824_v47 = vadd.f32 0.5, %v2728_v44  ;;  %v2729_v4 = vmul.f32 0.5, %v5174_v19  ;;  %v7919_v49 = vld [vmem:[#allocation3_spill] sm:$0xff] }
 0x4fe   : > { %5197 = vtanh.f32 %v2819_v36  ;;  %v2804_v22 = vmul.f32 %v6707_v10, %v2645_v33  ;;  %v2630_v59 = vmul.f32 0.5, %v5176_v9  ;;  %v5178_v56 = vpop.eup %5177  ;;  %2993 = vadd.xlane.f32.xlu1 %v2974_v31  ;;  %v2874_v55 = vmul.f32 %v6690_v13, %v7917_v51  ;;  %v7920_v13 = vld [vmem:[#allocation4_spill] sm:$0xff]  ;;  %v7926_v51 = vld [vmem:[#allocation7_spill] sm:$0xff] }
 0x4ff   : > { %v2861_v27 = vmul.f32 %v5166_v63, %v2845_v29  ;;  %v5180_v32 = vpop.eup %5179  ;;  %5199 = vtanh.f32 %v2701_v50  ;;  %v2702_v30 = vmul.f32 0.5, %v2686_v62  ;;  %v2877_v39 = vmul.f32 %v6720_v42, %v7919_v49  ;;  %v7924_v50 = vld [vmem:[#allocation8_spill] sm:$0xff] }
 0x500   : > { %v2820_v10 = vadd.f32 %v2804_v22, %v7918_v57  ;;  %v2646_v2 = vadd.f32 0.5, %v2630_v59  ;;  %v5182_v40 = vpop.eup %5181  ;;  %v6831_v17 = vadd.f32 %v2874_v55, %v2858_v12  ;;  %v2862_v15 = vmul.f32 %v5172_v60, %v2846_v23  ;;  %v7925_v62 = vld [vmem:[#allocation24_spill] sm:$0xff]  ;;  %v7928_v57 = vld [vmem:[#allocation15_spill] sm:$0xff] }
 0x501   : > { %v2878_v25 = vmul.f32 %v6746_v18, %v7920_v13  ;;  %v5184_v29 = vpop.eup %5183  ;;  %v2848_v63 = vsub.f32 1.0, %v6807_v48  ;;  %v2631_v0 = vmul.f32 0.5, %v5182_v40  ;;  %v6846_v23 = vadd.f32 %v2877_v39, %v2861_v27 }
 0x502   : > { %5201 = vtanh.f32 %v2820_v10  ;;  %v2805_v46 = vmul.f32 %v6730_v38, %v2646_v2  ;;  %v5186_v45 = vpop.eup %5185  ;;  %2906 = vst [vmem:[%s6758_s23 + $0x8] sm:$0xff] %v6831_v17  ;;  %2925 = vadd.xlane.f32.xlu0 %v6831_v17  ;;  %v2972_v42 = vmul.f32 %v6831_v17, %v6831_v17  ;;  %v2863_v1 = vmul.f32 %v5178_v56, %v2847_v35 }
 0x503   : > { %v6848_v18 = vadd.f32 %v2878_v25, %v2862_v15  ;;  %v2849_v34 = vsub.f32 1.0, %v2743_v14  ;;  %v2850_v38 = vsub.f32 1.0, %v6824_v47  ;;  %v2647_v20 = vadd.f32 0.5, %v2631_v0  ;;  %2909 = vst [vmem:[%s6758_s23 + $0x20] sm:$0xff] %v6846_v23  ;;  %v7929_v15 = vld [vmem:[#allocation9_spill] sm:$0xff] }
 0x504   : > { %v2821_v61 = vadd.f32 %v2805_v46, %v7921_v7  ;;  %v5188_v11 = vpop.eup %5187  ;;  %v2745_v60 = vadd.f32 0.5, %v2729_v4  ;;  %5203 = vtanh.f32 %v2702_v30  ;;  %2989 = vadd.xlane.f32.xlu1 %v2972_v42  ;;  %v2879_v37 = vmul.f32 %v6765_v5, %v7922_v58 }
 0x505   : > { %2910 = vst [vmem:[%s6758_s23 + $0x28] sm:$0xff] %v6848_v18  ;;  %v2864_v43 = vmul.f32 %v5184_v29, %v2848_v63  ;;  %v5190_v44 = vpop.eup %5189  ;;  %v2730_v35 = vmul.f32 0.5, %v5180_v32  ;;  %v2806_v16 = vmul.f32 %v6741_v26, %v2647_v20  ;;  %v2880_v54 = vmul.f32 %v6807_v48, %v7923_v24  ;;  %v7927_v32 = vld [vmem:[#allocation19_spill] sm:$0xff] }
 0x506   : > { %5205 = vtanh.f32 %v2821_v61  ;;  %v5192_v19 = vpop.eup %5191  ;;  %v2632_v6 = vmul.f32 0.5, %v5190_v44  ;;  %2931 = vadd.xlane.f32.xlu0 %v6846_v23  ;;  %v6864_v36 = vadd.f32 %v2879_v37, %v2863_v1  ;;  %v2865_v33 = vmul.f32 %v5186_v45, %v2849_v34  ;;  %v7930_v34 = vld [vmem:[#allocation16_spill] sm:$0xff] }
 0x507   : > { %v2881_v28 = vmul.f32 %v2743_v14, %v7924_v50  ;;  %v5194_v5 = vpop.eup %5193  ;;  %v2791_v9 = vadd.f32 %v6693_v21, %v6638_v8  ;;  %v2822_v26 = vadd.f32 %v2806_v16, %v7925_v62  ;;  %v6870_v31 = vadd.f32 %v2880_v54, %v2864_v43  ;;  %v7932_v54 = vld [vmem:[#allocation10_spill] sm:$0xff]  ;;  %v7933_v62 = vld [vmem:[#allocation12_spill] sm:$0xff] }
 0x508   : > { %v2866_v48 = vmul.f32 %v5192_v19, %v2850_v38  ;;  %v2851_v22 = vsub.f32 1.0, %v2745_v60  ;;  %v2648_v59 = vadd.f32 0.5, %v2632_v6  ;;  %2933 = vadd.xlane.f32.xlu1 %v6848_v18  ;;  %v2975_v12 = vmul.f32 %v6846_v23, %v6846_v23  ;;  %2911 = vst [vmem:[%s6758_s23 + $0x30] sm:$0xff] %v6864_v36 }
 0x509   : > { %v6877_v14 = vadd.f32 %v2881_v28, %v2865_v33  ;;  %v2746_v4 = vadd.f32 0.5, %v2730_v35  ;;  %v2731_v21 = vmul.f32 0.5, %v5188_v11  ;;  %5207 = vtanh.f32 %v2822_v26  ;;  %2912 = vst [vmem:[%s6758_s23 + $0x38] sm:$0xff] %v6870_v31 }
 0x50a   : > { %v5196_v56 = vpop.eup %5195  ;;  %v2882_v55 = vmul.f32 %v6824_v47, %v7926_v51  ;;  %v2770_v10 = vadd.f32 %v7928_v57, %v7927_v32  ;;  %v2807_v2 = vmul.f32 %v2791_v9, %v2648_v59  ;;  %2995 = vadd.xlane.f32.xlu0 %v2975_v12  ;;  %v2976_v40 = vmul.f32 %v6848_v18, %v6848_v18  ;;  %v7934_v51 = vld [vmem:[#allocation13_spill] sm:$0xff] }
 0x50b   : > { %v5198_v27 = vpop.eup %5197  ;;  %v2633_v30 = vmul.f32 0.5, %v5196_v56  ;;  %2913 = vst [vmem:[%s6758_s23 + $0x40] sm:$0xff] %v6877_v14  ;;  %v2883_v13 = vmul.f32 %v2745_v60, %v7929_v15  ;;  %v2792_v25 = vadd.f32 %v6723_v52, %v6638_v8  ;;  %v2852_v46 = vsub.f32 1.0, %v2746_v4  ;;  %v7931_v52 = vld [vmem:[#allocation11_spill] sm:$0xff] }
 0x50c   : > { %v6889_v49 = vadd.f32 %v2882_v55, %v2866_v48  ;;  %v2867_v39 = vmul.f32 %v5198_v27, %v2851_v22  ;;  %v5200_v47 = vpop.eup %5199  ;;  %v2823_v29 = vadd.f32 %v2807_v2, %v2770_v10  ;;  %2997 = vadd.xlane.f32.xlu1 %v2976_v40  ;;  %v2747_v0 = vadd.f32 0.5, %v2731_v21 }
 0x50d   : > { %v2649_v63 = vadd.f32 0.5, %v2633_v30  ;;  %v2732_v45 = vmul.f32 0.5, %v5194_v5  ;;  %v2771_v38 = vadd.f32 %v7930_v34, %v7927_v32  ;;  %v2884_v61 = vmul.f32 %v2746_v4, %v7931_v52  ;;  %v7935_v30 = vld [vmem:[#allocation14_spill] sm:$0xff] }
 0x50e   : > { %2914 = vst [vmem:[%s6758_s23 + $0x48] sm:$0xff] %v6889_v49  ;;  %v6896_v42 = vadd.f32 %v2883_v13, %v2867_v39  ;;  %5209 = vtanh.f32 %v2823_v29  ;;  %2935 = vadd.xlane.f32.xlu0 %v6864_v36  ;;  %v2977_v11 = vmul.f32 %v6864_v36, %v6864_v36  ;;  %v2853_v58 = vsub.f32 1.0, %v2747_v0 }
 0x50f   : > { %v5202_v1 = vpop.eup %5201  ;;  %v2808_v7 = vmul.f32 %v2792_v25, %v2649_v63  ;;  %v2748_v37 = vadd.f32 0.5, %v2732_v45  ;;  %v2733_v35 = vmul.f32 0.5, %v5200_v47  ;;  %v2978_v16 = vmul.f32 %v6870_v31, %v6870_v31 }
 0x510   : > { %2915 = vst [vmem:[%s6758_s23 + $0x50] sm:$0xff] %v6896_v42  ;;  %v2868_v8 = vmul.f32 %v5202_v1, %v2852_v46  ;;  %2937 = vadd.xlane.f32.xlu1 %v6870_v31  ;;  %v2885_v19 = vmul.f32 %v2747_v0, %v7932_v54  ;;  %v2979_v48 = vmul.f32 %v6877_v14, %v6877_v14 }
 0x511   : > { %v2824_v20 = vadd.f32 %v2808_v7, %v2771_v38  ;;  %v5204_v60 = vpop.eup %5203  ;;  %v2854_v6 = vsub.f32 1.0, %v2748_v37  ;;  %v2749_v28 = vadd.f32 0.5, %v2733_v35  ;;  %v2886_v26 = vmul.f32 %v2748_v37, %v7933_v62 }
 0x512   : > { %v6907_v43 = vadd.f32 %v2884_v61, %v2868_v8  ;;  %2999 = vadd.xlane.f32.xlu0 %v2977_v11  ;;  %v2734_v5 = vmul.f32 0.5, %v5204_v60  ;;  %v2980_v56 = vmul.f32 %v6889_v49, %v6889_v49  ;;  %v2981_v10 = vmul.f32 %v6896_v42, %v6896_v42 }
 0x513   : > { %v5206_v44 = vpop.eup %5205  ;;  %5211 = vtanh.f32 %v2824_v20  ;;  %v2855_v59 = vsub.f32 1.0, %v2749_v28  ;;  %v2887_v55 = vmul.f32 %v2749_v28, %v7934_v51 }
 0x514   : > { %2916 = vst [vmem:[%s6758_s23 + $0x58] sm:$0xff] %v6907_v43  ;;  %v2869_v24 = vmul.f32 %v5206_v44, %v2853_v58  ;;  %3001 = vadd.xlane.f32.xlu1 %v2978_v16  ;;  %v2750_v12 = vadd.f32 0.5, %v2734_v5  ;;  %v2982_v39 = vmul.f32 %v6907_v43, %v6907_v43 }
 0x516   : > { %v6914_v33 = vadd.f32 %v2885_v19, %v2869_v24  ;;  %v5208_v50 = vpop.eup %5207  ;;  %2939 = vadd.xlane.f32.xlu0 %v6877_v14  ;;  %v2856_v27 = vsub.f32 1.0, %v2750_v12  ;;  %v2888_v40 = vmul.f32 %v2750_v12, %v7935_v30 }
 0x517   : > { %v2870_v9 = vmul.f32 %v5208_v50, %v2854_v6 }
 0x518   : > { %2917 = vst [vmem:[%s6758_s23 + $0x60] sm:$0xff] %v6914_v33  ;;  %2941 = vadd.xlane.f32.xlu1 %v6889_v49  ;;  %v2983_v13 = vmul.f32 %v6914_v33, %v6914_v33 }
 0x519   : > { %v6923_v22 = vadd.f32 %v2886_v26, %v2870_v9 }
 0x51a   : > { %3003 = vadd.xlane.f32.xlu0 %v2979_v48 }
 0x51b   : > { %v5210_v4 = vpop.eup %5209  ;;  %2918 = vst [vmem:[%s6758_s23 + $0x68] sm:$0xff] %v6923_v22  ;;  %v2984_v47 = vmul.f32 %v6923_v22, %v6923_v22 }
 0x51c   : > { %3005 = vadd.xlane.f32.xlu1 %v2980_v56  ;;  %v2871_v21 = vmul.f32 %v5210_v4, %v2855_v59 }
 0x51e   : > { %2943 = vadd.xlane.f32.xlu0 %v6896_v42  ;;  %v6931_v32 = vadd.f32 %v2887_v55, %v2871_v21 }
 0x520   : > { %v5212_v57 = vpop.eup %5211  ;;  %2945 = vadd.xlane.f32.xlu1 %v6907_v43  ;;  %2919 = vst [vmem:[%s6758_s23 + $0x70] sm:$0xff] %v6931_v32  ;;  %v2985_v25 = vmul.f32 %v6931_v32, %v6931_v32 }
 0x521   : > { %v2872_v2 = vmul.f32 %v5212_v57, %v2856_v27  ;;  %v6971_v57 = vld [vmem:[%s7866_s7 + $0x2] ss:$0 sm:$0xff] }
 0x522   : > { %3007 = vadd.xlane.f32.xlu0 %v2981_v10 }
 0x523   : > { %v6941_v15 = vadd.f32 %v2888_v40, %v2872_v2 }
 0x524   : > { %3009 = vadd.xlane.f32.xlu1 %v2982_v39 }
 0x525   : > { %2920 = vst [vmem:[%s6758_s23 + $0x78] sm:$0xff] %v6941_v15  ;;  %v2986_v29 = vmul.f32 %v6941_v15, %v6941_v15 }
 0x526   : > { %2947 = vadd.xlane.f32.xlu0 %v6914_v33 }
 0x528   : > { %2949 = vadd.xlane.f32.xlu1 %v6923_v22 }
 0x52a   : > { %3011 = vadd.xlane.f32.xlu0 %v2983_v13 }
 0x52c   : > { %3013 = vadd.xlane.f32.xlu1 %v2984_v47 }
 0x52e   : > { %2951 = vadd.xlane.f32.xlu0 %v6931_v32 }
 0x530   : > { %2953 = vadd.xlane.f32.xlu1 %v6941_v15 }
 0x532   : > { %3015 = vadd.xlane.f32.xlu0 %v2985_v25  ;;  %v6980_v25 = vld [vmem:[%s7867_s8 + $0x2] ss:$0 sm:$0xff] }
 0x534   : > { %3017 = vadd.xlane.f32.xlu1 %v2986_v29 }
 0x576   : > { %v2924_v0 = vpop.xlane.xlu1 %2923 }
 0x577   : > { %v2955_v38 = vmul.f32 0.0078125, %v2924_v0 }
 0x579   : > { %v3051_v11 = vmul.f32 %v2955_v38, %v2955_v38 }
 0x57d   : > { %v2928_v63 = vpop.xlane.xlu0 %2927 }
 0x57e   : > { %v2957_v46 = vmul.f32 0.0078125, %v2928_v63  ;;  %v3035_v63 = vsub.f32 %v6761_v53, %v2955_v38 }
 0x580   : > { %v3053_v1 = vmul.f32 %v2957_v46, %v2957_v46  ;;  %v3037_v4 = vsub.f32 %v6786_v41, %v2957_v46 }
 0x581   : > { %v2992_v45 = vpop.xlane.xlu0 %2991 }
 0x582   : > { %v3021_v34 = vmul.f32 0.0078125, %v2992_v45 }
 0x583   : > { %v2930_v7 = vpop.xlane.xlu1 %2929 }
 0x584   : > { %v2958_v8 = vmul.f32 0.0078125, %v2930_v7  ;;  %v3069_v52 = vsub.f32 %v3021_v34, %v3053_v1 }
 0x586   : > { %v3085_v61 = vadd.f32 1e-05, %v3069_v52  ;;  %v2988_v20 = vpop.xlane.xlu0 %2987  ;;  %v3054_v37 = vmul.f32 %v2958_v8, %v2958_v8  ;;  %v3038_v7 = vsub.f32 %v6804_v3, %v2958_v8 }
 0x587   : > { %v2994_v60 = vpop.xlane.xlu1 %2993  ;;  %v3019_v58 = vmul.f32 0.0078125, %v2988_v20 }
 0x588   : > { %5213 = vrsqrt.f32 %v3085_v61  ;;  %v3022_v44 = vmul.f32 0.0078125, %v2994_v60 }
 0x589   : > { %v3067_v35 = vsub.f32 %v3019_v58, %v3051_v11 }
 0x58a   : > { %v3070_v16 = vsub.f32 %v3022_v44, %v3054_v37 }
 0x58b   : > { %v3083_v24 = vadd.f32 1e-05, %v3067_v35  ;;  %v2926_v54 = vpop.xlane.xlu0 %2925 }
 0x58c   : > { %v3086_v19 = vadd.f32 1e-05, %v3070_v16  ;;  %v6957_v6 = vmul.f32 0.0078125, %v2926_v54 }
 0x58d   : > { %5215 = vrsqrt.f32 %v3083_v24  ;;  %v2990_v50 = vpop.xlane.xlu1 %2989 }
 0x58e   : > { %5217 = vrsqrt.f32 %v3086_v19  ;;  %v3020_v28 = vmul.f32 0.0078125, %v2990_v50  ;;  %v3052_v5 = vmul.f32 %v6957_v6, %v6957_v6  ;;  %v3036_v24 = vsub.f32 %v6831_v17, %v6957_v6 }
 0x58f   : > { %v2932_v9 = vpop.xlane.xlu0 %2931 }
 0x590   : > { %v3068_v62 = vsub.f32 %v3020_v28, %v3052_v5  ;;  %v6961_v26 = vmul.f32 0.0078125, %v2932_v9 }
 0x591   : > { %v2934_v48 = vpop.xlane.xlu1 %2933 }
 0x592   : > { %v3084_v59 = vadd.f32 1e-05, %v3068_v62  ;;  %v6963_v12 = vmul.f32 0.0078125, %v2934_v48  ;;  %v3055_v21 = vmul.f32 %v6961_v26, %v6961_v26 }
 0x593   : > { %v2996_v56 = vpop.xlane.xlu0 %2995 }
 0x594   : > { %5219 = vrsqrt.f32 %v3084_v59  ;;  %v3023_v51 = vmul.f32 0.0078125, %v2996_v56  ;;  %v3056_v10 = vmul.f32 %v6963_v12, %v6963_v12 }
 0x595   : > { %v5214_v55 = vpop.eup %5213  ;;  %v2998_v27 = vpop.xlane.xlu1 %2997 }
 0x596   : > { %v3024_v2 = vmul.f32 0.0078125, %v2998_v27  ;;  %v3071_v30 = vsub.f32 %v3023_v51, %v3055_v21  ;;  %v3117_v40 = vmul.f32 %v5214_v55, %v3037_v4  ;;  %v3039_v55 = vsub.f32 %v6846_v23, %v6961_v26 }
 0x597   : > { %v2936_v39 = vpop.xlane.xlu0 %2935  ;;  %v3040_v23 = vsub.f32 %v6848_v18, %v6963_v12 }
 0x598   : > { %v3072_v41 = vsub.f32 %v3024_v2, %v3056_v10  ;;  %v3087_v13 = vadd.f32 1e-05, %v3071_v30  ;;  %v6975_v47 = vmul.f32 0.0078125, %v2936_v39  ;;  %v3137_v29 = vmul.f32 %v6971_v57, %v3117_v40 }
 0x599   : > { %v2938_v46 = vpop.xlane.xlu1 %2937 }
 0x59a   : > { %v5216_v0 = vpop.eup %5215  ;;  %v3088_v45 = vadd.f32 1e-05, %v3072_v41  ;;  %5221 = vrsqrt.f32 %v3087_v13  ;;  %v6984_v1 = vmul.f32 0.0078125, %v2938_v46  ;;  %v6988_v61 = vadd.f32 %v6980_v25, %v3137_v29 }
 0x59b   : > { %v5218_v34 = vpop.eup %5217  ;;  %v3000_v52 = vpop.xlane.xlu0 %2999  ;;  %v3115_v20 = vmul.f32 %v5216_v0, %v3035_v63  ;;  %v3057_v11 = vmul.f32 %v6975_v47, %v6975_v47 }
 0x59c   : > { %5223 = vrsqrt.f32 %v3088_v45  ;;  %v3025_v60 = vmul.f32 0.0078125, %v3000_v52  ;;  %3177 = vadd.xlane.f32.xlu0 %v6988_v61  ;;  %v3118_v38 = vmul.f32 %v5218_v34, %v3038_v7  ;;  %v3058_v37 = vmul.f32 %v6984_v1, %v6984_v1 }
 0x59d   : > { %v3002_v53 = vpop.xlane.xlu1 %3001  ;;  %v3135_v58 = vmul.f32 %v6971_v57, %v3115_v20  ;;  %v3223_v17 = vmul.f32 %v6988_v61, %v6988_v61 }
 0x59e   : > { %v3026_v3 = vmul.f32 0.0078125, %v3002_v53  ;;  %v3073_v8 = vsub.f32 %v3025_v60, %v3057_v11  ;;  %v3138_v35 = vmul.f32 %v6971_v57, %v3118_v38  ;;  %v3041_v38 = vsub.f32 %v6864_v36, %v6975_v47 }
 0x59f   : > { %v2940_v44 = vpop.xlane.xlu0 %2939  ;;  %v6998_v16 = vadd.f32 %v6980_v25, %v3135_v58  ;;  %v3042_v47 = vsub.f32 %v6870_v31, %v6984_v1 }
 0x5a0   : > { %v3074_v54 = vsub.f32 %v3026_v3, %v3058_v37  ;;  %v3089_v19 = vadd.f32 1e-05, %v3073_v8  ;;  %v7002_v50 = vmul.f32 0.0078125, %v2940_v44  ;;  %v7005_v9 = vadd.f32 %v6980_v25, %v3138_v35 }
 0x5a1   : > { %v5220_v28 = vpop.eup %5219  ;;  %v2942_v5 = vpop.xlane.xlu1 %2941  ;;  %3173 = vadd.xlane.f32.xlu0 %v6998_v16  ;;  %v3221_v41 = vmul.f32 %v6998_v16, %v6998_v16 }
 0x5a2   : > { %v3116_v62 = vmul.f32 %v5220_v28, %v3036_v24  ;;  %v3090_v48 = vadd.f32 1e-05, %v3074_v54  ;;  %5225 = vrsqrt.f32 %v3089_v19  ;;  %v7008_v59 = vmul.f32 0.0078125, %v2942_v5  ;;  %3179 = vadd.xlane.f32.xlu1 %v7005_v9 }
 0x5a3   : > { %v3004_v56 = vpop.xlane.xlu0 %3003  ;;  %v3059_v6 = vmul.f32 %v7002_v50, %v7002_v50  ;;  %v3224_v52 = vmul.f32 %v7005_v9, %v7005_v9 }
 0x5a4   : > { %5227 = vrsqrt.f32 %v3090_v48  ;;  %v3027_v4 = vmul.f32 0.0078125, %v3004_v56  ;;  %v3136_v51 = vmul.f32 %v6971_v57, %v3116_v62  ;;  %v3060_v27 = vmul.f32 %v7008_v59, %v7008_v59 }
 0x5a5   : > { %v3006_v21 = vpop.xlane.xlu1 %3005  ;;  %3241 = vadd.xlane.f32.xlu0 %v3223_v17 }
 0x5a6   : > { %v3028_v10 = vmul.f32 0.0078125, %v3006_v21  ;;  %v3075_v2 = vsub.f32 %v3027_v4, %v3059_v6  ;;  %v7021_v39 = vadd.f32 %v6980_v25, %v3136_v51 }
 0x5a7   : > { %v5222_v30 = vpop.eup %5221  ;;  %v2944_v40 = vpop.xlane.xlu0 %2943 }
 0x5a8   : > { %v3076_v13 = vsub.f32 %v3028_v10, %v3060_v27  ;;  %v3091_v29 = vadd.f32 1e-05, %v3075_v2  ;;  %v7025_v63 = vmul.f32 0.0078125, %v2944_v40  ;;  %v3119_v46 = vmul.f32 %v5222_v30, %v3039_v55  ;;  %3175 = vadd.xlane.f32.xlu1 %v7021_v39 }
 0x5a9   : > { %v5224_v0 = vpop.eup %5223  ;;  %v2946_v26 = vpop.xlane.xlu1 %2945  ;;  %3237 = vadd.xlane.f32.xlu0 %v3221_v41  ;;  %v3222_v35 = vmul.f32 %v7021_v39, %v7021_v39  ;;  %v3043_v10 = vsub.f32 %v6877_v14, %v7002_v50  ;;  %v3044_v50 = vsub.f32 %v6889_v49, %v7008_v59 }
 0x5aa   : > { %v3092_v45 = vadd.f32 1e-05, %v3076_v13  ;;  %5229 = vrsqrt.f32 %v3091_v29  ;;  %v7030_v34 = vmul.f32 0.0078125, %v2946_v26  ;;  %v3139_v20 = vmul.f32 %v6971_v57, %v3119_v46 }
 0x5ab   : > { %v3008_v7 = vpop.xlane.xlu0 %3007  ;;  %v3120_v11 = vmul.f32 %v5224_v0, %v3040_v23  ;;  %v3061_v60 = vmul.f32 %v7025_v63, %v7025_v63 }
 0x5ac   : > { %5231 = vrsqrt.f32 %v3092_v45  ;;  %v3029_v18 = vmul.f32 0.0078125, %v3008_v7  ;;  %3243 = vadd.xlane.f32.xlu1 %v3224_v52  ;;  %v7038_v53 = vadd.f32 %v6980_v25, %v3139_v20  ;;  %v3062_v58 = vmul.f32 %v7030_v34, %v7030_v34 }
 0x5ad   : > { %v3010_v12 = vpop.xlane.xlu1 %3009  ;;  %v3140_v24 = vmul.f32 %v6971_v57, %v3120_v11 }
 0x5ae   : > { %v3030_v37 = vmul.f32 0.0078125, %v3010_v12  ;;  %v3077_v3 = vsub.f32 %v3029_v18, %v3061_v60  ;;  %3181 = vadd.xlane.f32.xlu0 %v7038_v53  ;;  %v3225_v48 = vmul.f32 %v7038_v53, %v7038_v53 }
 0x5af   : > { %v5226_v8 = vpop.eup %5225  ;;  %v2948_v44 = vpop.xlane.xlu0 %2947  ;;  %v7057_v4 = vadd.f32 %v6980_v25, %v3140_v24 }
 0x5b0   : > { %v3078_v54 = vsub.f32 %v3030_v37, %v3062_v58  ;;  %v3093_v19 = vadd.f32 1e-05, %v3077_v3  ;;  %v7048_v28 = vmul.f32 0.0078125, %v2948_v44  ;;  %v3121_v5 = vmul.f32 %v5226_v8, %v3041_v38  ;;  %3239 = vadd.xlane.f32.xlu1 %v3222_v35  ;;  %v5005_v3 = vld [vmem:[%s7864_s5 + $0x78] sm:$0xff]  }
 0x5b1   : > { %v5228_v36 = vpop.eup %5227  ;;  %v2950_v62 = vpop.xlane.xlu1 %2949  ;;  %v3226_v29 = vmul.f32 %v7057_v4, %v7057_v4  ;;  %v3045_v8 = vsub.f32 %v6896_v42, %v7025_v63  ;;  %4851 = vmatprep.subr.bf16.mxu0 %v5005_v3  ;;  %v3046_v42 = vsub.f32 %v6907_v43, %v7030_v34  ;;  %v5007_v43 = vld [vmem:[%s7864_s5 + $0x68] sm:$0xff]  }
 0x5b2   : > { %v3094_v56 = vadd.f32 1e-05, %v3078_v54  ;;  %5233 = vrsqrt.f32 %v3093_v19  ;;  %v7054_v17 = vmul.f32 0.0078125, %v2950_v62  ;;  %3245 = vadd.xlane.f32.xlu0 %v3225_v48  ;;  %v3141_v21 = vmul.f32 %v6971_v57, %v3121_v5  ;;  %4852 = vmatpush3.bf16.msra.mxu0 %v5005_v3 }
 0x5b3   : > { %v3012_v6 = vpop.xlane.xlu0 %3011  ;;  %v3122_v51 = vmul.f32 %v5228_v36, %v3042_v47  ;;  %v3063_v31 = vmul.f32 %v7048_v28, %v7048_v28 }
 0x5b4   : > { %5235 = vrsqrt.f32 %v3094_v56  ;;  %v3031_v1 = vmul.f32 0.0078125, %v3012_v6  ;;  %3183 = vadd.xlane.f32.xlu1 %v7057_v4  ;;  %v7064_v27 = vadd.f32 %v6980_v25, %v3141_v21  ;;  %v3064_v2 = vmul.f32 %v7054_v17, %v7054_v17  ;;  %v5006_v56 = vld [vmem:[%s7864_s5 + $0x70] sm:$0xff]  }
 0x5b5   : > { %v3014_v55 = vpop.xlane.xlu1 %3013  ;;  %v3142_v46 = vmul.f32 %v6971_v57, %v3122_v51  ;;  %4853 = vmatprep.subr.bf16.mxu0 %v5006_v56 }
 0x5b6   : > { %v3032_v30 = vmul.f32 0.0078125, %v3014_v55  ;;  %v3079_v40 = vsub.f32 %v3031_v1, %v3063_v31  ;;  %3185 = vadd.xlane.f32.xlu0 %v7064_v27  ;;  %v3227_v52 = vmul.f32 %v7064_v27, %v7064_v27  ;;  %4854 = vmatpush3.bf16.msra.mxu0 %v5006_v56  ;;  %v3047_v1 = vsub.f32 %v6914_v33, %v7048_v28  ;;  %v5008_v33 = vld [vmem:[%s7864_s5 + $0x60] sm:$0xff]  }
 0x5b7   : > { %v5230_v41 = vpop.eup %5229  ;;  %v2952_v13 = vpop.xlane.xlu0 %2951  ;;  %v7083_v18 = vadd.f32 %v6980_v25, %v3142_v46  ;;  %4855 = vmatprep.subr.bf16.mxu0 %v5007_v43 }
 0x5b8   : > { %v3080_v0 = vsub.f32 %v3032_v30, %v3064_v2  ;;  %v3095_v23 = vadd.f32 1e-05, %v3079_v40  ;;  %v7074_v26 = vmul.f32 0.0078125, %v2952_v13  ;;  %v3123_v45 = vmul.f32 %v5230_v41, %v3043_v10  ;;  %3247 = vadd.xlane.f32.xlu1 %v3226_v29 }
 0x5b9   : > { %v5232_v14 = vpop.eup %5231  ;;  %v2954_v7 = vpop.xlane.xlu1 %2953  ;;  %v3228_v19 = vmul.f32 %v7083_v18, %v7083_v18  ;;  %v3048_v41 = vsub.f32 %v6923_v22, %v7054_v17  ;;  %v5009_v22 = vld [vmem:[%s7864_s5 + $0x58] sm:$0xff]  }
 0x5ba   : > { %v3096_v20 = vadd.f32 1e-05, %v3080_v0  ;;  %5237 = vrsqrt.f32 %v3095_v23  ;;  %v7080_v11 = vmul.f32 0.0078125, %v2954_v7  ;;  %3249 = vadd.xlane.f32.xlu0 %v3227_v52  ;;  %v3143_v12 = vmul.f32 %v6971_v57, %v3123_v45  ;;  %4856 = vmatpush3.bf16.msra.mxu0 %v5007_v43 }
 0x5bb   : > { %v3016_v60 = vpop.xlane.xlu0 %3015  ;;  %v3124_v38 = vmul.f32 %v5232_v14, %v3044_v50  ;;  %v3065_v49 = vmul.f32 %v7074_v26, %v7074_v26  ;;  %4857 = vmatprep.subr.bf16.mxu0 %v5008_v33  ;;  %v3049_v0 = vsub.f32 %v6931_v32, %v7074_v26  ;;  %v5010_v32 = vld [vmem:[%s7864_s5 + $0x50] sm:$0xff]  }
 0x5bc   : > { %5239 = vrsqrt.f32 %v3096_v20  ;;  %v3033_v59 = vmul.f32 0.0078125, %v3016_v60  ;;  %3187 = vadd.xlane.f32.xlu1 %v7083_v18  ;;  %v7090_v37 = vadd.f32 %v6980_v25, %v3143_v12  ;;  %v3066_v44 = vmul.f32 %v7080_v11, %v7080_v11 }
 0x5bd   : > { %v3018_v58 = vpop.xlane.xlu1 %3017  ;;  %v3144_v5 = vmul.f32 %v6971_v57, %v3124_v38  ;;  %v3050_v50 = vsub.f32 %v6941_v15, %v7080_v11  ;;  %v5011_v15 = vld [vmem:[%s7864_s5 + $0x48] sm:$0xff]  }
 0x5be   : > { %v3034_v35 = vmul.f32 0.0078125, %v3018_v58  ;;  %v3081_v24 = vsub.f32 %v3033_v59, %v3065_v49  ;;  %3189 = vadd.xlane.f32.xlu0 %v7090_v37  ;;  %v3229_v63 = vmul.f32 %v7090_v37, %v7090_v37  ;;  %4858 = vmatpush3.bf16.msra.mxu0 %v5008_v33 }
 0x5bf   : > { %v5234_v54 = vpop.eup %5233  ;;  %v7112_v51 = vadd.f32 %v6980_v25, %v3144_v5  ;;  %4859 = vmatprep.subr.bf16.mxu0 %v5009_v22 }
 0x5c0   : > { %v3082_v36 = vsub.f32 %v3034_v35, %v3066_v44  ;;  %v3097_v47 = vadd.f32 1e-05, %v3081_v24  ;;  %v3125_v62 = vmul.f32 %v5234_v54, %v3045_v8  ;;  %3251 = vadd.xlane.f32.xlu1 %v3228_v19 }
 0x5c1   : > { %v5236_v48 = vpop.eup %5235  ;;  %v3230_v10 = vmul.f32 %v7112_v51, %v7112_v51 }
 0x5c2   : > { %v3098_v6 = vadd.f32 1e-05, %v3082_v36  ;;  %5241 = vrsqrt.f32 %v3097_v47  ;;  %v3145_v21 = vmul.f32 %v6971_v57, %v3125_v62  ;;  %3253 = vadd.xlane.f32.xlu0 %v3229_v63  ;;  %v3126_v31 = vmul.f32 %v5236_v48, %v3046_v42  ;;  %4860 = vmatpush3.bf16.msra.mxu0 %v5009_v22 }
 0x5c3   : > { %4861 = vmatprep.subr.bf16.mxu0 %v5010_v32 }
 0x5c4   : > { %5243 = vrsqrt.f32 %v3098_v6  ;;  %v7118_v34 = vadd.f32 %v6980_v25, %v3145_v21  ;;  %3191 = vadd.xlane.f32.xlu1 %v7112_v51  ;;  %v3146_v2 = vmul.f32 %v6971_v57, %v3126_v31 }
 0x5c6   : > { %3193 = vadd.xlane.f32.xlu0 %v7118_v34  ;;  %v3231_v13 = vmul.f32 %v7118_v34, %v7118_v34  ;;  %v7136_v29 = vadd.f32 %v6980_v25, %v3146_v2  ;;  %4862 = vmatpush3.bf16.msra.mxu0 %v5010_v32 }
 0x5c7   : > { %v5238_v55 = vpop.eup %5237  ;;  %4863 = vmatprep.subr.bf16.mxu0 %v5011_v15 }
 0x5c8   : > { %v3127_v30 = vmul.f32 %v5238_v55, %v3047_v1  ;;  %3255 = vadd.xlane.f32.xlu1 %v3230_v10  ;;  %v3232_v45 = vmul.f32 %v7136_v29, %v7136_v29 }
 0x5c9   : > { %v5240_v40 = vpop.eup %5239 }
 0x5ca   : > { %v3147_v28 = vmul.f32 %v6971_v57, %v3127_v30  ;;  %3257 = vadd.xlane.f32.xlu0 %v3231_v13  ;;  %v3128_v46 = vmul.f32 %v5240_v40, %v3048_v41  ;;  %4864 = vmatpush3.bf16.msra.mxu0 %v5011_v15 }
 0x5cc   : > { %v7142_v17 = vadd.f32 %v6980_v25, %v3147_v28  ;;  %3195 = vadd.xlane.f32.xlu1 %v7136_v29  ;;  %v3148_v14 = vmul.f32 %v6971_v57, %v3128_v46 }
 0x5ce   : > { %3197 = vadd.xlane.f32.xlu0 %v7142_v17  ;;  %v3233_v20 = vmul.f32 %v7142_v17, %v7142_v17  ;;  %v7160_v12 = vadd.f32 %v6980_v25, %v3148_v14 }
 0x5cf   : > { %v5242_v23 = vpop.eup %5241 }
 0x5d0   : > { %v3129_v7 = vmul.f32 %v5242_v23, %v3049_v0  ;;  %3259 = vadd.xlane.f32.xlu1 %v3232_v45  ;;  %v3234_v59 = vmul.f32 %v7160_v12, %v7160_v12 }
 0x5d1   : > { %v5244_v52 = vpop.eup %5243 }
 0x5d2   : > { %v3149_v26 = vmul.f32 %v6971_v57, %v3129_v7  ;;  %v3130_v60 = vmul.f32 %v5244_v52, %v3050_v50  ;;  %3261 = vadd.xlane.f32.xlu0 %v3233_v20 }
 0x5d4   : > { %v7166_v11 = vadd.f32 %v6980_v25, %v3149_v26  ;;  %v3150_v38 = vmul.f32 %v6971_v57, %v3130_v60  ;;  %3199 = vadd.xlane.f32.xlu1 %v7160_v12  ;;  %v5012_v57 = vld [vmem:[%s7864_s5 + $0x40] sm:$0xff]  }
 0x5d5   : > { %4865 = vmatprep.subr.bf16.mxu0 %v5012_v57 }
 0x5d6   : > { %v7171_v49 = vadd.f32 %v6980_v25, %v3150_v38  ;;  %3201 = vadd.xlane.f32.xlu0 %v7166_v11  ;;  %v3235_v58 = vmul.f32 %v7166_v11, %v7166_v11  ;;  %4866 = vmatpush3.bf16.msra.mxu0 %v5012_v57 }
 0x5d8   : > { %3263 = vadd.xlane.f32.xlu1 %v3234_v59  ;;  %v3236_v25 = vmul.f32 %v7171_v49, %v7171_v49 }
 0x5da   : > { %3265 = vadd.xlane.f32.xlu0 %v3235_v58 }
 0x5dc   : > { %3203 = vadd.xlane.f32.xlu1 %v7171_v49 }
 0x5e0   : > { %3267 = vadd.xlane.f32.xlu1 %v3236_v25 }
 0x625   : > { %v3178_v3 = vpop.xlane.xlu0 %3177 }
 0x626   : > { %v7184_v44 = vmul.f32 0.0078125, %v3178_v3 }
 0x628   : > { %v3303_v5 = vmul.f32 %v7184_v44, %v7184_v44 }
 0x62a   : > { %v3174_v8 = vpop.xlane.xlu0 %3173 }
 0x62b   : > { %v3180_v35 = vpop.xlane.xlu1 %3179  ;;  %v7186_v54 = vmul.f32 0.0078125, %v3174_v8 }
 0x62c   : > { %v3208_v48 = vmul.f32 0.0078125, %v3180_v35 }
 0x62d   : > { %v3301_v42 = vmul.f32 %v7186_v54, %v7186_v54 }
 0x62e   : > { %v3242_v24 = vpop.xlane.xlu0 %3241  ;;  %v3304_v31 = vmul.f32 %v3208_v48, %v3208_v48 }
 0x62f   : > { %v3271_v19 = vmul.f32 0.0078125, %v3242_v24  ;;  %v3287_v24 = vsub.f32 %v6988_v61, %v7184_v44  ;;  %v7222_v61 = vld [vmem:[%s7866_s7 + $0x3] ss:$0 sm:$0xff] }
 0x631   : > { %v3319_v36 = vsub.f32 %v3271_v19, %v3303_v5  ;;  %v3176_v47 = vpop.xlane.xlu1 %3175 }
 0x632   : > { %v3238_v62 = vpop.xlane.xlu0 %3237  ;;  %v7192_v43 = vmul.f32 0.0078125, %v3176_v47 }
 0x633   : > { %v3269_v63 = vmul.f32 0.0078125, %v3238_v62  ;;  %v3335_v6 = vadd.f32 1e-05, %v3319_v36  ;;  %v3288_v36 = vsub.f32 %v7005_v9, %v3208_v48 }
 0x634   : > { %v3302_v41 = vmul.f32 %v7192_v43, %v7192_v43 }
 0x635   : > { %v3317_v56 = vsub.f32 %v3269_v63, %v3301_v42  ;;  %v3244_v21 = vpop.xlane.xlu1 %3243  ;;  %5245 = vrsqrt.f32 %v3335_v6  ;;  %v3285_v42 = vsub.f32 %v6998_v16, %v7186_v54  ;;  %v3286_v16 = vsub.f32 %v7021_v39, %v7192_v43  ;;  %v7235_v39 = vld [vmem:[%s7867_s8 + $0x3] ss:$0 sm:$0xff] }
 0x636   : > { %v3272_v1 = vmul.f32 0.0078125, %v3244_v21 }
 0x637   : > { %v3333_v55 = vadd.f32 1e-05, %v3317_v56  ;;  %v3182_v10 = vpop.xlane.xlu0 %3181 }
 0x638   : > { %v3320_v2 = vsub.f32 %v3272_v1, %v3304_v31  ;;  %v7194_v30 = vmul.f32 0.0078125, %v3182_v10 }
 0x639   : > { %v3240_v40 = vpop.xlane.xlu1 %3239  ;;  %5247 = vrsqrt.f32 %v3333_v55 }
 0x63a   : > { %v3336_v13 = vadd.f32 1e-05, %v3320_v2  ;;  %v3270_v33 = vmul.f32 0.0078125, %v3240_v40  ;;  %v3305_v46 = vmul.f32 %v7194_v30, %v7194_v30 }
 0x63b   : > { %v3246_v28 = vpop.xlane.xlu0 %3245 }
 0x63c   : > { %5249 = vrsqrt.f32 %v3336_v13  ;;  %v3318_v22 = vsub.f32 %v3270_v33, %v3302_v41  ;;  %v3273_v0 = vmul.f32 0.0078125, %v3246_v28 }
 0x63d   : > { %v3184_v23 = vpop.xlane.xlu1 %3183 }
 0x63e   : > { %v3334_v45 = vadd.f32 1e-05, %v3318_v22  ;;  %v3321_v14 = vsub.f32 %v3273_v0, %v3305_v46  ;;  %v7200_v50 = vmul.f32 0.0078125, %v3184_v23 }
 0x63f   : > { %v3186_v7 = vpop.xlane.xlu0 %3185 }
 0x640   : > { %5251 = vrsqrt.f32 %v3334_v45  ;;  %v3337_v52 = vadd.f32 1e-05, %v3321_v14  ;;  %v7202_v20 = vmul.f32 0.0078125, %v3186_v7  ;;  %v3306_v26 = vmul.f32 %v7200_v50, %v7200_v50 }
 0x641   : > { %v3248_v32 = vpop.xlane.xlu1 %3247  ;;  %v3289_v45 = vsub.f32 %v7038_v53, %v7194_v30  ;;  %v3290_v30 = vsub.f32 %v7057_v4, %v7200_v50 }
 0x642   : > { %v3274_v60 = vmul.f32 0.0078125, %v3248_v32  ;;  %5253 = vrsqrt.f32 %v3337_v52  ;;  %v3307_v38 = vmul.f32 %v7202_v20, %v7202_v20  ;;  %v5246_v25 = vpop.eup %5245  ;;  %v3291_v50 = vsub.f32 %v7064_v27, %v7202_v20 }
 0x643   : > { %v3250_v15 = vpop.xlane.xlu0 %3249  ;;  %v3367_v6 = vmul.f32 %v5246_v25, %v3287_v24 }
 0x644   : > { %v3322_v59 = vsub.f32 %v3274_v60, %v3306_v26  ;;  %v3275_v58 = vmul.f32 0.0078125, %v3250_v15 }
 0x645   : > { %v3188_v57 = vpop.xlane.xlu1 %3187  ;;  %v3387_v40 = vmul.f32 %v7222_v61, %v3367_v6 }
 0x646   : > { %v3338_v3 = vadd.f32 1e-05, %v3322_v59  ;;  %v3323_v8 = vsub.f32 %v3275_v58, %v3307_v38  ;;  %v7208_v35 = vmul.f32 0.0078125, %v3188_v57  ;;  %v5248_v5 = vpop.eup %5247 }
 0x647   : > { %v3190_v19 = vpop.xlane.xlu0 %3189  ;;  %v3365_v48 = vmul.f32 %v5248_v5, %v3285_v42  ;;  %v3407_v15 = vadd.f32 %v7235_v39, %v3387_v40 }
 0x648   : > { %5255 = vrsqrt.f32 %v3338_v3  ;;  %v3339_v47 = vadd.f32 1e-05, %v3323_v8  ;;  %v7215_v63 = vmul.f32 0.0078125, %v3190_v19  ;;  %v3308_v21 = vmul.f32 %v7208_v35, %v7208_v35 }
 0x649   : > { %v5250_v62 = vpop.eup %5249  ;;  %v3252_v56 = vpop.xlane.xlu1 %3251  ;;  %v3385_v43 = vmul.f32 %v7222_v61, %v3365_v48 }
 0x64a   : > { %v3276_v31 = vmul.f32 0.0078125, %v3252_v56  ;;  %v3368_v9 = vmul.f32 %v5250_v62, %v3288_v36  ;;  %5257 = vrsqrt.f32 %v3339_v47  ;;  %v3309_v54 = vmul.f32 %v7215_v63, %v7215_v63 }
 0x64b   : > { %v3254_v44 = vpop.xlane.xlu0 %3253  ;;  %v3405_v59 = vadd.f32 %v7235_v39, %v3385_v43 }
 0x64c   : > { %v3324_v1 = vsub.f32 %v3276_v31, %v3308_v21  ;;  %v3277_v55 = vmul.f32 0.0078125, %v3254_v44  ;;  %v3388_v41 = vmul.f32 %v7222_v61, %v3368_v9 }
 0x64d   : > { %v5252_v10 = vpop.eup %5251  ;;  %v3192_v2 = vpop.xlane.xlu1 %3191 }
 0x64e   : > { %v3340_v13 = vadd.f32 1e-05, %v3324_v1  ;;  %v3325_v33 = vsub.f32 %v3277_v55, %v3309_v54  ;;  %v7230_v28 = vmul.f32 0.0078125, %v3192_v2  ;;  %v3366_v46 = vmul.f32 %v5252_v10, %v3286_v16 }
 0x64f   : > { %v3194_v22 = vpop.xlane.xlu0 %3193  ;;  %v5254_v0 = vpop.eup %5253  ;;  %v3408_v32 = vadd.f32 %v7235_v39, %v3388_v41  ;;  %v3292_v2 = vsub.f32 %v7083_v18, %v7208_v35  ;;  %v3293_v35 = vsub.f32 %v7090_v37, %v7215_v63 }
 0x650   : > { %5259 = vrsqrt.f32 %v3340_v13  ;;  %v3341_v23 = vadd.f32 1e-05, %v3325_v33  ;;  %v7240_v14 = vmul.f32 0.0078125, %v3194_v22  ;;  %v3386_v52 = vmul.f32 %v7222_v61, %v3366_v46 }
 0x651   : > { %v3256_v7 = vpop.xlane.xlu1 %3255  ;;  %v3310_v26 = vmul.f32 %v7230_v28, %v7230_v28  ;;  %v3369_v53 = vmul.f32 %v5254_v0, %v3289_v45  ;;  %v3438_v5 = vpack.c.bf16 %v3408_v32, %v3407_v15 }
 0x652   : > { %v3278_v60 = vmul.f32 0.0078125, %v3256_v7  ;;  %5261 = vrsqrt.f32 %v3341_v23  ;;  %v3406_v58 = vadd.f32 %v7235_v39, %v3386_v52  ;;  %v3311_v57 = vmul.f32 %v7240_v14, %v7240_v14 }
 0x653   : > { %v3258_v38 = vpop.xlane.xlu0 %3257  ;;  %v3389_v6 = vmul.f32 %v7222_v61, %v3369_v53 }
 0x654   : > { %v3326_v25 = vsub.f32 %v3278_v60, %v3310_v26  ;;  %v3279_v3 = vmul.f32 0.0078125, %v3258_v38  ;;  %v3437_v19 = vpack.c.bf16 %v3406_v58, %v3405_v59 }
 0x655   : > { %v5256_v8 = vpop.eup %5255  ;;  %v3196_v24 = vpop.xlane.xlu1 %3195  ;;  %v3409_v1 = vadd.f32 %v7235_v39, %v3389_v6 }
 0x656   : > { %v3342_v36 = vadd.f32 1e-05, %v3326_v25  ;;  %v3327_v47 = vsub.f32 %v3279_v3, %v3311_v57  ;;  %v7253_v62 = vmul.f32 0.0078125, %v3196_v24  ;;  %v3370_v42 = vmul.f32 %v5256_v8, %v3290_v30  ;;  %4867 = vmatprep.mubr.bf16.mxu0 %v3437_v19 }
 0x657   : > { %v3198_v56 = vpop.xlane.xlu0 %3197  ;;  %v5258_v21 = vpop.eup %5257  ;;  %4868 = vmatmul.mubr.bf16.vlgmr.msra.gmra.mxu0 %v3438_v5  ;;  %v3294_v30 = vsub.f32 %v7112_v51, %v7230_v28 }
 0x658   : > { %5263 = vrsqrt.f32 %v3342_v36  ;;  %v3343_v4 = vadd.f32 1e-05, %v3327_v47  ;;  %v7258_v31 = vmul.f32 0.0078125, %v3198_v56  ;;  %v3390_v44 = vmul.f32 %v7222_v61, %v3370_v42 }
 0x659   : > { %v3260_v9 = vpop.xlane.xlu1 %3259  ;;  %v3312_v48 = vmul.f32 %v7253_v62, %v7253_v62  ;;  %v3371_v10 = vmul.f32 %v5258_v21, %v3291_v50  ;;  %v3295_v56 = vsub.f32 %v7118_v34, %v7240_v14 }
 0x65a   : > { %5265 = vrsqrt.f32 %v3343_v4  ;;  %v3280_v16 = vmul.f32 0.0078125, %v3260_v9  ;;  %v3410_v55 = vadd.f32 %v7235_v39, %v3390_v44  ;;  %v3313_v27 = vmul.f32 %v7258_v31, %v7258_v31 }
 0x65b   : > { %v3262_v54 = vpop.xlane.xlu0 %3261  ;;  %v3391_v45 = vmul.f32 %v7222_v61, %v3371_v10 }
 0x65c   : > { %v3328_v20 = vsub.f32 %v3280_v16, %v3312_v48  ;;  %v3281_v40 = vmul.f32 0.0078125, %v3262_v54  ;;  %v3439_v33 = vpack.c.bf16 %v3410_v55, %v3409_v1  ;;  %v3296_v48 = vsub.f32 %v7136_v29, %v7253_v62 }
 0x65d   : > { %v5260_v41 = vpop.eup %5259  ;;  %v3200_v13 = vpop.xlane.xlu1 %3199  ;;  %v3411_v59 = vadd.f32 %v7235_v39, %v3391_v45 }
 0x65e   : > { %v3344_v46 = vadd.f32 1e-05, %v3328_v20  ;;  %v3329_v22 = vsub.f32 %v3281_v40, %v3313_v27  ;;  %v7269_v43 = vmul.f32 0.0078125, %v3200_v13  ;;  %v3372_v0 = vmul.f32 %v5260_v41, %v3292_v2  ;;  %4871 = vmatprep.mubr.bf16.mxu0 %v3439_v33 }
 0x65f   : > { %v3202_v23 = vpop.xlane.xlu0 %3201  ;;  %v5262_v7 = vpop.eup %5261  ;;  %v3297_v2 = vsub.f32 %v7142_v17, %v7258_v31 }
 0x660   : > { %5267 = vrsqrt.f32 %v3344_v46  ;;  %v3345_v18 = vadd.f32 1e-05, %v3329_v22  ;;  %v3219_v52 = vmul.f32 0.0078125, %v3202_v23  ;;  %v3392_v26 = vmul.f32 %v7222_v61, %v3372_v0 }
 0x661   : > { %v3264_v32 = vpop.xlane.xlu1 %3263  ;;  %v3314_v60 = vmul.f32 %v7269_v43, %v7269_v43  ;;  %v3373_v53 = vmul.f32 %v5262_v7, %v3293_v35  ;;  %v3298_v62 = vsub.f32 %v7160_v12, %v7269_v43 }
 0x662   : > { %5269 = vrsqrt.f32 %v3345_v18  ;;  %v3282_v15 = vmul.f32 0.0078125, %v3264_v32  ;;  %v3412_v58 = vadd.f32 %v7235_v39, %v3392_v26  ;;  %v3315_v57 = vmul.f32 %v3219_v52, %v3219_v52 }
 0x663   : > { %v3266_v38 = vpop.xlane.xlu0 %3265  ;;  %v3393_v42 = vmul.f32 %v7222_v61, %v3373_v53  ;;  %v3299_v17 = vsub.f32 %v7166_v11, %v3219_v52 }
 0x664   : > { %v3330_v37 = vsub.f32 %v3282_v15, %v3314_v60  ;;  %v3283_v63 = vmul.f32 0.0078125, %v3266_v38  ;;  %v3440_v8 = vpack.c.bf16 %v3412_v58, %v3411_v59  ;;  %v5013_v60 = vld [vmem:[%s7864_s5 + $0xb8] sm:$0xff]  }
 0x665   : > { %v5264_v25 = vpop.eup %5263  ;;  %v3204_v3 = vpop.xlane.xlu1 %3203  ;;  %v3413_v9 = vadd.f32 %v7235_v39, %v3393_v42  ;;  %4883 = vmatprep.subr.bf16.mxu1 %v5013_v60 }
 0x666   : > { %v3346_v24 = vadd.f32 1e-05, %v3330_v37  ;;  %v3331_v19 = vsub.f32 %v3283_v63, %v3315_v57  ;;  %v3220_v5 = vmul.f32 0.0078125, %v3204_v3  ;;  %v3374_v36 = vmul.f32 %v5264_v25, %v3294_v30  ;;  %4872 = vmatmul.mubr.bf16.gmra.mxu0 %v3440_v8  ;;  %4884 = vmatpush3.bf16.msra.mxu1 %v5013_v60 }
 0x667   : > { %v5266_v47 = vpop.eup %5265 }
 0x668   : > { %5271 = vrsqrt.f32 %v3346_v24  ;;  %v3347_v6 = vadd.f32 1e-05, %v3331_v19  ;;  %v3394_v28 = vmul.f32 %v7222_v61, %v3374_v36  ;;  %v3316_v21 = vmul.f32 %v3220_v5, %v3220_v5 }
 0x669   : > { %v3268_v51 = vpop.xlane.xlu1 %3267  ;;  %v3375_v50 = vmul.f32 %v5266_v47, %v3295_v56  ;;  %v3300_v7 = vsub.f32 %v7171_v49, %v3220_v5  ;;  %v5014_v49 = vld [vmem:[%s7864_s5 + $0xb0] sm:$0xff]  }
 0x66a   : > { %5273 = vrsqrt.f32 %v3347_v6  ;;  %v3284_v4 = vmul.f32 0.0078125, %v3268_v51  ;;  %v3414_v44 = vadd.f32 %v7235_v39, %v3394_v28  ;;  %4885 = vmatprep.subr.bf16.mxu1 %v5014_v49 }
 0x66b   : > { %v3395_v55 = vmul.f32 %v7222_v61, %v3375_v50  ;;  %4886 = vmatpush3.bf16.msra.mxu1 %v5014_v49  ;;  %v5016_v50 = vld [vmem:[%s7864_s5 + $0xa0] sm:$0xff]  }
 0x66c   : > { %v3332_v16 = vsub.f32 %v3284_v4, %v3316_v21  ;;  %v3441_v1 = vpack.c.bf16 %v3414_v44, %v3413_v9 }
 0x66d   : > { %v5268_v54 = vpop.eup %5267  ;;  %v3415_v20 = vadd.f32 %v7235_v39, %v3395_v55 }
 0x66e   : > { %v3348_v34 = vadd.f32 1e-05, %v3332_v16  ;;  %v3376_v14 = vmul.f32 %v5268_v54, %v3296_v48  ;;  %4875 = vmatprep.mubr.bf16.mxu0 %v3441_v1 }
 0x66f   : > { %v5270_v10 = vpop.eup %5269 }
 0x670   : > { %5275 = vrsqrt.f32 %v3348_v34  ;;  %v3396_v27 = vmul.f32 %v7222_v61, %v3376_v14  ;;  %v3377_v29 = vmul.f32 %v5270_v10, %v3297_v2 }
 0x672   : > { %v3416_v40 = vadd.f32 %v7235_v39, %v3396_v27  ;;  %v3397_v46 = vmul.f32 %v7222_v61, %v3377_v29 }
 0x674   : > { %v3442_v41 = vpack.c.bf16 %v3416_v40, %v3415_v20  ;;  %v3417_v0 = vadd.f32 %v7235_v39, %v3397_v46 }
 0x675   : > { %v5272_v13 = vpop.eup %5271 }
 0x676   : > { %4876 = vmatmul.mubr.bf16.gmra.mxu0 %v3442_v41  ;;  %v3378_v33 = vmul.f32 %v5272_v13, %v3298_v62 }
 0x677   : > { %v5274_v22 = vpop.eup %5273 }
 0x678   : > { %v3398_v31 = vmul.f32 %v7222_v61, %v3378_v33  ;;  %v3379_v45 = vmul.f32 %v5274_v22, %v3299_v17 }
 0x67a   : > { %v3418_v23 = vadd.f32 %v7235_v39, %v3398_v31  ;;  %v3399_v35 = vmul.f32 %v7222_v61, %v3379_v45  ;;  %v5017_v45 = vld [vmem:[%s7864_s5 + $0x98] sm:$0xff]  }
 0x67c   : > { %v3443_v18 = vpack.c.bf16 %v3418_v23, %v3417_v0  ;;  %v3419_v26 = vadd.f32 %v7235_v39, %v3399_v35 }
 0x67d   : > { %v5276_v12 = vpop.eup %5275 }
 0x67e   : > { %4879 = vmatprep.mubr.bf16.mxu0 %v3443_v18  ;;  %v3380_v43 = vmul.f32 %v5276_v12, %v3300_v7  ;;  %v5018_v18 = vld [vmem:[%s7864_s5 + $0x90] sm:$0xff]  }
 0x680   : > { %v3400_v32 = vmul.f32 %v7222_v61, %v3380_v43  ;;  %v5015_v61 = vld [vmem:[%s7864_s5 + $0xa8] sm:$0xff]  }
 0x681   : > { %4887 = vmatprep.subr.bf16.mxu1 %v5015_v61 }
 0x682   : > { %v3420_v11 = vadd.f32 %v7235_v39, %v3400_v32  ;;  %4888 = vmatpush3.bf16.msra.mxu1 %v5015_v61  ;;  %v7319_v39 = vld [vmem:[%s7868_s9 + $0x2] ss:$0 sm:$0xff] }
 0x683   : > { %4889 = vmatprep.subr.bf16.mxu1 %v5016_v50 }
 0x684   : > { %v3444_v52 = vpack.c.bf16 %v3420_v11, %v3419_v26 }
 0x686   : > { %4880 = vmatmul.mubr.bf16.gmra.mxu0 %v3444_v52  ;;  %4890 = vmatpush3.bf16.msra.mxu1 %v5016_v50  ;;  %v5019_v52 = vld [vmem:[%s7864_s5 + $0x88] sm:$0xff]  }
 0x687   : > { %4891 = vmatprep.subr.bf16.mxu1 %v5017_v45 }
 0x68a   : > { %4892 = vmatpush3.bf16.msra.mxu1 %v5017_v45 }
 0x68b   : > { %4893 = vmatprep.subr.bf16.mxu1 %v5018_v18 }
 0x68e   : > { %4894 = vmatpush3.bf16.msra.mxu1 %v5018_v18 }
 0x68f   : > { %4895 = vmatprep.subr.bf16.mxu1 %v5019_v52 }
 0x692   : > { %4896 = vmatpush3.bf16.msra.mxu1 %v5019_v52 }
 0x717   : > { %v4869_v15 = vpop.f32.mrf.mxu0 }
 0x718   : > { %v3541_v38 = vadd.f32 %v4869_v15, %v7319_v39  ;;  %v5020_v15 = vld [vmem:[%s7864_s5 + $0x80] sm:$0xff]  }
 0x719   : > { %v3532_v59 = vpop.f32.mrf.mxu0  ;;  %4897 = vmatprep.subr.bf16.mxu1 %v5020_v15 }
 0x71a   : > { %v7322_v58 = vmax.f32 %v3541_v38, 0.0  ;;  %v3533_v53 = vadd.f32 %v7319_v39, %v3532_v59  ;;  %4898 = vmatpush3.bf16.msra.mxu1 %v5020_v15 }
 0x71b   : > { %v4870_v30 = vpop.f32.mrf.mxu0 }
 0x71c   : > { %v3544_v57 = vadd.f32 %v4870_v30, %v7319_v39  ;;  %3617 = vadd.xlane.f32.xlu0 %v7322_v58  ;;  %v7327_v63 = vmax.f32 %v3533_v53, 0.0  ;;  %v3663_v24 = vmul.f32 %v7322_v58, %v7322_v58 }
 0x71d   : > { %v3535_v37 = vpop.f32.mrf.mxu0 }
 0x71e   : > { %v7329_v25 = vmax.f32 %v3544_v57, 0.0  ;;  %v3536_v3 = vadd.f32 %v7319_v39, %v3535_v37  ;;  %v3661_v36 = vmul.f32 %v7327_v63, %v7327_v63 }
 0x720   : > { %3619 = vadd.xlane.f32.xlu1 %v7329_v25  ;;  %3613 = vadd.xlane.f32.xlu0 %v7327_v63  ;;  %v7334_v8 = vmax.f32 %v3536_v3, 0.0  ;;  %v3664_v5 = vmul.f32 %v7329_v25, %v7329_v25 }
 0x722   : > { %v3662_v28 = vmul.f32 %v7334_v8, %v7334_v8 }
 0x724   : > { %3615 = vadd.xlane.f32.xlu1 %v7334_v8  ;;  %3681 = vadd.xlane.f32.xlu0 %v3663_v24 }
 0x726   : > { %v4873_v19 = vpop.f32.mrf.mxu0 }
 0x727   : > { %v3557_v47 = vadd.f32 %v4873_v19, %v7319_v39 }
 0x728   : > { %3683 = vadd.xlane.f32.xlu1 %v3664_v5  ;;  %3677 = vadd.xlane.f32.xlu0 %v3661_v36  ;;  %v3548_v42 = vpop.f32.mrf.mxu0 }
 0x729   : > { %v7344_v56 = vmax.f32 %v3557_v47, 0.0  ;;  %v3549_v6 = vadd.f32 %v7319_v39, %v3548_v42 }
 0x72a   : > { %v4874_v51 = vpop.f32.mrf.mxu0 }
 0x72b   : > { %v3560_v21 = vadd.f32 %v4874_v51, %v7319_v39  ;;  %v7356_v44 = vmax.f32 %v3549_v6, 0.0  ;;  %v3667_v54 = vmul.f32 %v7344_v56, %v7344_v56 }
 0x72c   : > { %3679 = vadd.xlane.f32.xlu1 %v3662_v28  ;;  %3625 = vadd.xlane.f32.xlu0 %v7344_v56  ;;  %v3551_v4 = vpop.f32.mrf.mxu0 }
 0x72d   : > { %v7354_v9 = vmax.f32 %v3560_v21, 0.0  ;;  %v3552_v48 = vadd.f32 %v7319_v39, %v3551_v4  ;;  %v3665_v55 = vmul.f32 %v7356_v44, %v7356_v44 }
 0x72f   : > { %v7361_v16 = vmax.f32 %v3552_v48, 0.0  ;;  %v3668_v14 = vmul.f32 %v7354_v9, %v7354_v9 }
 0x730   : > { %3627 = vadd.xlane.f32.xlu1 %v7354_v9  ;;  %3621 = vadd.xlane.f32.xlu0 %v7356_v44 }
 0x731   : > { %v3666_v29 = vmul.f32 %v7361_v16, %v7361_v16 }
 0x734   : > { %3623 = vadd.xlane.f32.xlu1 %v7361_v16  ;;  %3689 = vadd.xlane.f32.xlu0 %v3667_v54 }
 0x736   : > { %v4877_v1 = vpop.f32.mrf.mxu0 }
 0x737   : > { %v3573_v34 = vadd.f32 %v4877_v1, %v7319_v39 }
 0x738   : > { %v3564_v10 = vpop.f32.mrf.mxu0  ;;  %3691 = vadd.xlane.f32.xlu1 %v3668_v14  ;;  %3685 = vadd.xlane.f32.xlu0 %v3665_v55 }
 0x739   : > { %v7371_v2 = vmax.f32 %v3573_v34, 0.0  ;;  %v3565_v20 = vadd.f32 %v7319_v39, %v3564_v10 }
 0x73a   : > { %v4878_v27 = vpop.f32.mrf.mxu0 }
 0x73b   : > { %v3576_v40 = vadd.f32 %v4878_v27, %v7319_v39  ;;  %v7380_v13 = vmax.f32 %v3565_v20, 0.0  ;;  %v3671_v22 = vmul.f32 %v7371_v2, %v7371_v2 }
 0x73c   : > { %v3567_v62 = vpop.f32.mrf.mxu0  ;;  %3687 = vadd.xlane.f32.xlu1 %v3666_v29  ;;  %3633 = vadd.xlane.f32.xlu0 %v7371_v2 }
 0x73d   : > { %v7377_v41 = vmax.f32 %v3576_v40, 0.0  ;;  %v3568_v33 = vadd.f32 %v7319_v39, %v3567_v62  ;;  %v3669_v23 = vmul.f32 %v7380_v13, %v7380_v13 }
 0x73f   : > { %v7385_v46 = vmax.f32 %v3568_v33, 0.0  ;;  %v3672_v0 = vmul.f32 %v7377_v41, %v7377_v41 }
 0x740   : > { %3635 = vadd.xlane.f32.xlu1 %v7377_v41  ;;  %3629 = vadd.xlane.f32.xlu0 %v7380_v13 }
 0x741   : > { %v3670_v26 = vmul.f32 %v7385_v46, %v7385_v46 }
 0x744   : > { %3631 = vadd.xlane.f32.xlu1 %v7385_v46  ;;  %3697 = vadd.xlane.f32.xlu0 %v3671_v22 }
 0x746   : > { %v4881_v17 = vpop.f32.mrf.mxu0 }
 0x747   : > { %v3589_v31 = vadd.f32 %v4881_v17, %v7319_v39 }
 0x748   : > { %v3580_v7 = vpop.f32.mrf.mxu0  ;;  %3699 = vadd.xlane.f32.xlu1 %v3672_v0  ;;  %3693 = vadd.xlane.f32.xlu0 %v3669_v23 }
 0x749   : > { %v7401_v12 = vmax.f32 %v3589_v31, 0.0  ;;  %v3581_v35 = vadd.f32 %v7319_v39, %v3580_v7 }
 0x74a   : > { %v4882_v43 = vpop.f32.mrf.mxu0 }
 0x74b   : > { %v3592_v32 = vadd.f32 %v4882_v43, %v7319_v39  ;;  %v7413_v49 = vmax.f32 %v3581_v35, 0.0  ;;  %v3675_v53 = vmul.f32 %v7401_v12, %v7401_v12 }
 0x74c   : > { %v3583_v11 = vpop.f32.mrf.mxu0  ;;  %3695 = vadd.xlane.f32.xlu1 %v3670_v26  ;;  %3641 = vadd.xlane.f32.xlu0 %v7401_v12 }
 0x74d   : > { %v7410_v60 = vmax.f32 %v3592_v32, 0.0  ;;  %v3584_v61 = vadd.f32 %v7319_v39, %v3583_v11  ;;  %v3673_v59 = vmul.f32 %v7413_v49, %v7413_v49 }
 0x74f   : > { %v7421_v38 = vmax.f32 %v3584_v61, 0.0  ;;  %v3676_v30 = vmul.f32 %v7410_v60, %v7410_v60 }
 0x750   : > { %3643 = vadd.xlane.f32.xlu1 %v7410_v60  ;;  %3637 = vadd.xlane.f32.xlu0 %v7413_v49 }
 0x751   : > { %v3674_v39 = vmul.f32 %v7421_v38, %v7421_v38 }
 0x754   : > { %3639 = vadd.xlane.f32.xlu1 %v7421_v38  ;;  %3701 = vadd.xlane.f32.xlu0 %v3673_v59 }
 0x758   : > { %3703 = vadd.xlane.f32.xlu1 %v3674_v39  ;;  %3705 = vadd.xlane.f32.xlu0 %v3675_v53 }
 0x75c   : > { %3707 = vadd.xlane.f32.xlu1 %v3676_v30 }
 0x7a5   : > { %v3618_v57 = vpop.xlane.xlu0 %3617 }
 0x7a6   : > { %v7432_v24 = vmul.f32 0.0078125, %v3618_v57 }
 0x7a8   : > { %v3743_v47 = vmul.f32 %v7432_v24, %v7432_v24 }
 0x7a9   : > { %v3620_v37 = vpop.xlane.xlu1 %3619  ;;  %v3614_v3 = vpop.xlane.xlu0 %3613 }
 0x7aa   : > { %v3648_v19 = vmul.f32 0.0078125, %v3620_v37  ;;  %v3645_v42 = vmul.f32 0.0078125, %v3614_v3 }
 0x7ac   : > { %v3744_v28 = vmul.f32 %v3648_v19, %v3648_v19  ;;  %v3741_v50 = vmul.f32 %v3645_v42, %v3645_v42  ;;  %v3728_v57 = vsub.f32 %v7329_v25, %v3648_v19 }
 0x7ad   : > { %v3616_v5 = vpop.xlane.xlu1 %3615  ;;  %v3682_v36 = vpop.xlane.xlu0 %3681 }
 0x7ae   : > { %v3711_v6 = vmul.f32 0.0078125, %v3682_v36  ;;  %v7436_v48 = vmul.f32 0.0078125, %v3616_v5  ;;  %v3727_v36 = vsub.f32 %v7322_v58, %v7432_v24 }
 0x7b0   : > { %v3759_v51 = vsub.f32 %v3711_v6, %v3743_v47  ;;  %v3742_v20 = vmul.f32 %v7436_v48, %v7436_v48  ;;  %v3725_v47 = vsub.f32 %v7327_v63, %v3645_v42  ;;  %v3726_v19 = vsub.f32 %v7334_v8, %v7436_v48 }
 0x7b1   : > { %v3684_v21 = vpop.xlane.xlu1 %3683  ;;  %v3678_v4 = vpop.xlane.xlu0 %3677 }
 0x7b2   : > { %v3712_v54 = vmul.f32 0.0078125, %v3684_v21  ;;  %v3709_v1 = vmul.f32 0.0078125, %v3678_v4  ;;  %v3775_v34 = vadd.f32 1e-05, %v3759_v51 }
 0x7b4   : > { %v3760_v14 = vsub.f32 %v3712_v54, %v3744_v28  ;;  %v3757_v55 = vsub.f32 %v3709_v1, %v3741_v50  ;;  %5277 = vrsqrt.f32 %v3775_v34 }
 0x7b5   : > { %v3680_v10 = vpop.xlane.xlu1 %3679  ;;  %v3626_v27 = vpop.xlane.xlu0 %3625 }
 0x7b6   : > { %v3776_v40 = vadd.f32 1e-05, %v3760_v14  ;;  %v3773_v29 = vadd.f32 1e-05, %v3757_v55  ;;  %v3710_v62 = vmul.f32 0.0078125, %v3680_v10  ;;  %v7440_v0 = vmul.f32 0.0078125, %v3626_v27 }
 0x7b7   : > { %v7465_v14 = vld [vmem:[%s7866_s7 + $0x4] ss:$0 sm:$0xff] }
 0x7b8   : > { %5279 = vrsqrt.f32 %v3776_v40  ;;  %v3758_v33 = vsub.f32 %v3710_v62, %v3742_v20  ;;  %v3747_v7 = vmul.f32 %v7440_v0, %v7440_v0 }
 0x7b9   : > { %5281 = vrsqrt.f32 %v3773_v29  ;;  %v3628_v22 = vpop.xlane.xlu1 %3627  ;;  %v3622_v17 = vpop.xlane.xlu0 %3621 }
 0x7ba   : > { %v3774_v31 = vadd.f32 1e-05, %v3758_v33  ;;  %v7444_v18 = vmul.f32 0.0078125, %v3628_v22  ;;  %v7446_v43 = vmul.f32 0.0078125, %v3622_v17  ;;  %v7479_v22 = vld [vmem:[%s7867_s8 + $0x4] ss:$0 sm:$0xff] }
 0x7bc   : > { %5283 = vrsqrt.f32 %v3774_v31  ;;  %v3748_v61 = vmul.f32 %v7444_v18, %v7444_v18  ;;  %v3745_v15 = vmul.f32 %v7446_v43, %v7446_v43 }
 0x7bd   : > { %v3624_v23 = vpop.xlane.xlu1 %3623  ;;  %v3690_v45 = vpop.xlane.xlu0 %3689 }
 0x7be   : > { %v3715_v35 = vmul.f32 0.0078125, %v3690_v45  ;;  %v7448_v26 = vmul.f32 0.0078125, %v3624_v23 }
 0x7c0   : > { %v3763_v32 = vsub.f32 %v3715_v35, %v3747_v7  ;;  %v3746_v6 = vmul.f32 %v7448_v26, %v7448_v26 }
 0x7c1   : > { %v3692_v11 = vpop.xlane.xlu1 %3691  ;;  %v3686_v52 = vpop.xlane.xlu0 %3685 }
 0x7c2   : > { %v3716_v59 = vmul.f32 0.0078125, %v3692_v11  ;;  %v3713_v39 = vmul.f32 0.0078125, %v3686_v52  ;;  %v3779_v53 = vadd.f32 1e-05, %v3763_v32  ;;  %v5278_v30 = vpop.eup %5277 }
 0x7c3   : > { %v3807_v34 = vmul.f32 %v5278_v30, %v3727_v36 }
 0x7c4   : > { %v3764_v37 = vsub.f32 %v3716_v59, %v3748_v61  ;;  %v3761_v3 = vsub.f32 %v3713_v39, %v3745_v15  ;;  %5285 = vrsqrt.f32 %v3779_v53 }
 0x7c5   : > { %v5280_v5 = vpop.eup %5279  ;;  %v3688_v51 = vpop.xlane.xlu1 %3687  ;;  %v3827_v48 = vmul.f32 %v7465_v14, %v3807_v34 }
 0x7c6   : > { %v3634_v28 = vpop.xlane.xlu0 %3633  ;;  %v5282_v21 = vpop.eup %5281  ;;  %v3808_v4 = vmul.f32 %v5280_v5, %v3728_v57  ;;  %v3780_v50 = vadd.f32 1e-05, %v3764_v37  ;;  %v3777_v54 = vadd.f32 1e-05, %v3761_v3  ;;  %v3714_v1 = vmul.f32 0.0078125, %v3688_v51 }
 0x7c7   : > { %v3805_v25 = vmul.f32 %v5282_v21, %v3725_v47  ;;  %v7467_v10 = vmul.f32 0.0078125, %v3634_v28  ;;  %v3847_v11 = vadd.f32 %v7479_v22, %v3827_v48  ;;  %v3731_v51 = vsub.f32 %v7344_v56, %v7440_v0 }
 0x7c8   : > { %5287 = vrsqrt.f32 %v3780_v50  ;;  %v3762_v58 = vsub.f32 %v3714_v1, %v3746_v6  ;;  %v3828_v20 = vmul.f32 %v7465_v14, %v3808_v4  ;;  %v3732_v28 = vsub.f32 %v7354_v9, %v7444_v18 }
 0x7c9   : > { %v5284_v24 = vpop.eup %5283  ;;  %5289 = vrsqrt.f32 %v3777_v54  ;;  %v3636_v63 = vpop.xlane.xlu1 %3635  ;;  %v3825_v8 = vmul.f32 %v7465_v14, %v3805_v25  ;;  %v3751_v31 = vmul.f32 %v7467_v10, %v7467_v10  ;;  %v3729_v21 = vsub.f32 %v7356_v44, %v7446_v43 }
 0x7ca   : > { %v3630_v42 = vpop.xlane.xlu0 %3629  ;;  %v3778_v55 = vadd.f32 1e-05, %v3762_v58  ;;  %v3806_v27 = vmul.f32 %v5284_v24, %v3726_v19  ;;  %v7472_v40 = vmul.f32 0.0078125, %v3636_v63  ;;  %v3848_v45 = vadd.f32 %v7479_v22, %v3828_v20 }
 0x7cb   : > { %v7474_v29 = vmul.f32 0.0078125, %v3630_v42  ;;  %v3845_v7 = vadd.f32 %v7479_v22, %v3825_v8  ;;  %v3730_v56 = vsub.f32 %v7361_v16, %v7448_v26 }
 0x7cc   : > { %5291 = vrsqrt.f32 %v3778_v55  ;;  %v3826_v17 = vmul.f32 %v7465_v14, %v3806_v27  ;;  %v3752_v52 = vmul.f32 %v7472_v40, %v7472_v40  ;;  %v3878_v37 = vpack.c.bf16 %v3848_v45, %v3847_v11 }
 0x7cd   : > { %v3632_v62 = vpop.xlane.xlu1 %3631  ;;  %v3749_v61 = vmul.f32 %v7474_v29, %v7474_v29 }
 0x7ce   : > { %v3698_v33 = vpop.xlane.xlu0 %3697  ;;  %v3846_v35 = vadd.f32 %v7479_v22, %v3826_v17  ;;  %v7492_v53 = vmul.f32 0.0078125, %v3632_v62 }
 0x7cf   : > { %v3719_v23 = vmul.f32 0.0078125, %v3698_v33 }
 0x7d0   : > { %v3877_v39 = vpack.c.bf16 %v3846_v35, %v3845_v7  ;;  %v3750_v1 = vmul.f32 %v7492_v53, %v7492_v53 }
 0x7d1   : > { %v3767_v32 = vsub.f32 %v3719_v23, %v3751_v31  ;;  %v3700_v15 = vpop.xlane.xlu1 %3699  ;;  %v5286_v5 = vpop.eup %5285 }
 0x7d2   : > { %v3694_v59 = vpop.xlane.xlu0 %3693  ;;  %v3720_v30 = vmul.f32 0.0078125, %v3700_v15  ;;  %4899 = vmatprep.mubr.bf16.mxu1 %v3877_v39  ;;  %v3811_v24 = vmul.f32 %v5286_v5, %v3731_v51 }
 0x7d3   : > { %v3717_v57 = vmul.f32 0.0078125, %v3694_v59  ;;  %v3783_v3 = vadd.f32 1e-05, %v3767_v32  ;;  %4900 = vmatmul.mubr.bf16.vlgmr.msra.gmra.mxu1 %v3878_v37 }
 0x7d4   : > { %v3768_v36 = vsub.f32 %v3720_v30, %v3752_v52  ;;  %v3831_v8 = vmul.f32 %v7465_v14, %v3811_v24 }
 0x7d5   : > { %v3765_v47 = vsub.f32 %v3717_v57, %v3749_v61  ;;  %v5288_v6 = vpop.eup %5287  ;;  %v3696_v4 = vpop.xlane.xlu1 %3695  ;;  %5293 = vrsqrt.f32 %v3783_v3 }
 0x7d6   : > { %v3642_v50 = vpop.xlane.xlu0 %3641  ;;  %v5290_v54 = vpop.eup %5289  ;;  %v3784_v25 = vadd.f32 1e-05, %v3768_v36  ;;  %v3718_v34 = vmul.f32 0.0078125, %v3696_v4  ;;  %v3812_v63 = vmul.f32 %v5288_v6, %v3732_v28  ;;  %v3851_v35 = vadd.f32 %v7479_v22, %v3831_v8 }
 0x7d7   : > { %v3781_v19 = vadd.f32 1e-05, %v3765_v47  ;;  %v3809_v58 = vmul.f32 %v5290_v54, %v3729_v21  ;;  %v7509_v48 = vmul.f32 0.0078125, %v3642_v50  ;;  %v3736_v36 = vsub.f32 %v7377_v41, %v7472_v40 }
 0x7d8   : > { %5295 = vrsqrt.f32 %v3784_v25  ;;  %v3766_v9 = vsub.f32 %v3718_v34, %v3750_v1  ;;  %v3832_v43 = vmul.f32 %v7465_v14, %v3812_v63  ;;  %v3735_v28 = vsub.f32 %v7371_v2, %v7467_v10 }
 0x7d9   : > { %v5292_v0 = vpop.eup %5291  ;;  %5297 = vrsqrt.f32 %v3781_v19  ;;  %v3644_v44 = vpop.xlane.xlu1 %3643  ;;  %v3829_v20 = vmul.f32 %v7465_v14, %v3809_v58  ;;  %v3755_v11 = vmul.f32 %v7509_v48, %v7509_v48  ;;  %v3733_v21 = vsub.f32 %v7380_v13, %v7474_v29 }
 0x7da   : > { %v3638_v18 = vpop.xlane.xlu0 %3637  ;;  %v3782_v42 = vadd.f32 1e-05, %v3766_v9  ;;  %v3810_v27 = vmul.f32 %v5292_v0, %v3730_v56  ;;  %v3852_v33 = vadd.f32 %v7479_v22, %v3832_v43  ;;  %v7522_v52 = vmul.f32 0.0078125, %v3644_v44 }
 0x7db   : > { %v7505_v55 = vmul.f32 0.0078125, %v3638_v18  ;;  %v3849_v45 = vadd.f32 %v7479_v22, %v3829_v20  ;;  %v3734_v58 = vsub.f32 %v7385_v46, %v7492_v53 }
 0x7dc   : > { %5299 = vrsqrt.f32 %v3782_v42  ;;  %v3830_v62 = vmul.f32 %v7465_v14, %v3810_v27  ;;  %v3880_v39 = vpack.c.bf16 %v3852_v33, %v3851_v35  ;;  %v3756_v4 = vmul.f32 %v7522_v52, %v7522_v52 }
 0x7dd   : > { %v3640_v16 = vpop.xlane.xlu1 %3639  ;;  %v3753_v17 = vmul.f32 %v7505_v55, %v7505_v55  ;;  %v3737_v18 = vsub.f32 %v7413_v49, %v7505_v55  ;;  %v3740_v49 = vsub.f32 %v7410_v60, %v7522_v52  ;;  %v7563_v60 = vld [vmem:[%s7868_s9 + $0x3] ss:$0 sm:$0xff] }
 0x7de   : > { %v3702_v26 = vpop.xlane.xlu0 %3701  ;;  %v7515_v31 = vmul.f32 0.0078125, %v3640_v16  ;;  %v3850_v7 = vadd.f32 %v7479_v22, %v3830_v62 }
 0x7df   : > { %v3721_v23 = vmul.f32 0.0078125, %v3702_v26  ;;  %v3739_v26 = vsub.f32 %v7401_v12, %v7509_v48 }
 0x7e0   : > { %v3879_v59 = vpack.c.bf16 %v3850_v7, %v3849_v45  ;;  %v3754_v30 = vmul.f32 %v7515_v31, %v7515_v31  ;;  %v3738_v8 = vsub.f32 %v7421_v38, %v7515_v31 }
 0x7e1   : > { %v3769_v32 = vsub.f32 %v3721_v23, %v3753_v17  ;;  %v3704_v61 = vpop.xlane.xlu1 %3703 }
 0x7e2   : > { %v3706_v15 = vpop.xlane.xlu0 %3705  ;;  %v3722_v37 = vmul.f32 0.0078125, %v3704_v61  ;;  %4903 = vmatprep.mubr.bf16.mxu1 %v3879_v59  ;;  %v5294_v5 = vpop.eup %5293 }
 0x7e3   : > { %v3785_v57 = vadd.f32 1e-05, %v3769_v32  ;;  %v3723_v3 = vmul.f32 0.0078125, %v3706_v15  ;;  %4904 = vmatmul.mubr.bf16.gmra.mxu1 %v3880_v39  ;;  %v3815_v34 = vmul.f32 %v5294_v5, %v3735_v28 }
 0x7e4   : > { %v3770_v47 = vsub.f32 %v3722_v37, %v3754_v30 }
 0x7e5   : > { %5301 = vrsqrt.f32 %v3785_v57  ;;  %v3771_v6 = vsub.f32 %v3723_v3, %v3755_v11  ;;  %v5296_v51 = vpop.eup %5295  ;;  %v3708_v50 = vpop.xlane.xlu1 %3707  ;;  %v3835_v56 = vmul.f32 %v7465_v14, %v3815_v34 }
 0x7e6   : > { %v5298_v54 = vpop.eup %5297  ;;  %v3786_v1 = vadd.f32 1e-05, %v3770_v47  ;;  %v3724_v19 = vmul.f32 0.0078125, %v3708_v50  ;;  %v3816_v41 = vmul.f32 %v5296_v51, %v3736_v36 }
 0x7e7   : > { %v3787_v25 = vadd.f32 1e-05, %v3771_v6  ;;  %v3813_v40 = vmul.f32 %v5298_v54, %v3733_v21  ;;  %v3855_v53 = vadd.f32 %v7479_v22, %v3835_v56 }
 0x7e8   : > { %5303 = vrsqrt.f32 %v3786_v1  ;;  %v3772_v24 = vsub.f32 %v3724_v19, %v3756_v4  ;;  %v3836_v13 = vmul.f32 %v7465_v14, %v3816_v41 }
 0x7e9   : > { %v5300_v2 = vpop.eup %5299  ;;  %5305 = vrsqrt.f32 %v3787_v25  ;;  %v3833_v63 = vmul.f32 %v7465_v14, %v3813_v40 }
 0x7ea   : > { %v3788_v10 = vadd.f32 1e-05, %v3772_v24  ;;  %v3814_v29 = vmul.f32 %v5300_v2, %v3734_v58  ;;  %v3856_v0 = vadd.f32 %v7479_v22, %v3836_v13 }
 0x7eb   : > { %v3853_v44 = vadd.f32 %v7479_v22, %v3833_v63 }
 0x7ec   : > { %5307 = vrsqrt.f32 %v3788_v10  ;;  %v3834_v9 = vmul.f32 %v7465_v14, %v3814_v29  ;;  %v3882_v27 = vpack.c.bf16 %v3856_v0, %v3855_v53 }
 0x7ee   : > { %v3854_v46 = vadd.f32 %v7479_v22, %v3834_v9 }
 0x7f0   : > { %v3881_v43 = vpack.c.bf16 %v3854_v46, %v3853_v44 }
 0x7f2   : > { %v5302_v42 = vpop.eup %5301  ;;  %4907 = vmatprep.mubr.bf16.mxu1 %v3881_v43 }
 0x7f3   : > { %v3817_v20 = vmul.f32 %v5302_v42, %v3737_v18  ;;  %4908 = vmatmul.mubr.bf16.gmra.mxu1 %v3882_v27 }
 0x7f5   : > { %v5304_v16 = vpop.eup %5303  ;;  %v3837_v17 = vmul.f32 %v7465_v14, %v3817_v20 }
 0x7f6   : > { %v5306_v62 = vpop.eup %5305  ;;  %v3818_v33 = vmul.f32 %v5304_v16, %v3738_v8 }
 0x7f7   : > { %v3819_v23 = vmul.f32 %v5306_v62, %v3739_v26  ;;  %v3857_v7 = vadd.f32 %v7479_v22, %v3837_v17 }
 0x7f8   : > { %v3838_v55 = vmul.f32 %v7465_v14, %v3818_v33 }
 0x7f9   : > { %v5308_v45 = vpop.eup %5307  ;;  %v3839_v31 = vmul.f32 %v7465_v14, %v3819_v23 }
 0x7fa   : > { %v3858_v35 = vadd.f32 %v7479_v22, %v3838_v55  ;;  %v3820_v38 = vmul.f32 %v5308_v45, %v3740_v49 }
 0x7fb   : > { %v3859_v48 = vadd.f32 %v7479_v22, %v3839_v31 }
 0x7fc   : > { %v3883_v32 = vpack.c.bf16 %v3858_v35, %v3857_v7  ;;  %v3840_v12 = vmul.f32 %v7465_v14, %v3820_v38 }
 0x7fe   : > { %4911 = vmatprep.mubr.bf16.mxu1 %v3883_v32  ;;  %v3860_v11 = vadd.f32 %v7479_v22, %v3840_v12 }
 0x800   : > { %v3884_v61 = vpack.c.bf16 %v3860_v11, %v3859_v48 }
 0x802   : > { %4912 = vmatmul.mubr.bf16.gmra.mxu1 %v3884_v61 }
 0x893   : > { %v4901_v52 = vpop.f32.mrf.mxu1 }
 0x894   : > { %v3981_v15 = vadd.f32 %v4901_v52, %v7563_v60 }
 0x895   : > { %v3972_v59 = vpop.f32.mrf.mxu1 }
 0x896   : > { %v7566_v39 = vmax.f32 %v3981_v15, 0.0  ;;  %v3973_v14 = vadd.f32 %v7563_v60, %v3972_v59 }
 0x897   : > { %v4902_v30 = vpop.f32.mrf.mxu1 }
 0x898   : > { %v3984_v57 = vadd.f32 %v4902_v30, %v7563_v60  ;;  %4057 = vadd.xlane.f32.xlu0 %v7566_v39  ;;  %v7571_v37 = vmax.f32 %v3973_v14, 0.0  ;;  %v4103_v47 = vmul.f32 %v7566_v39, %v7566_v39 }
 0x899   : > { %v3975_v22 = vpop.f32.mrf.mxu1 }
 0x89a   : > { %v7573_v3 = vmax.f32 %v3984_v57, 0.0  ;;  %v3976_v5 = vadd.f32 %v7563_v60, %v3975_v22  ;;  %v4101_v51 = vmul.f32 %v7571_v37, %v7571_v37 }
 0x89c   : > { %4059 = vadd.xlane.f32.xlu1 %v7573_v3  ;;  %4053 = vadd.xlane.f32.xlu0 %v7571_v37  ;;  %v7578_v36 = vmax.f32 %v3976_v5, 0.0  ;;  %v4104_v6 = vmul.f32 %v7573_v3, %v7573_v3 }
 0x89e   : > { %v4102_v1 = vmul.f32 %v7578_v36, %v7578_v36 }
 0x8a0   : > { %4055 = vadd.xlane.f32.xlu1 %v7578_v36  ;;  %4121 = vadd.xlane.f32.xlu0 %v4103_v47 }
 0x8a3   : > { %v4905_v28 = vpop.f32.mrf.mxu1 }
 0x8a4   : > { %v3997_v21 = vadd.f32 %v4905_v28, %v7563_v60  ;;  %4123 = vadd.xlane.f32.xlu1 %v4104_v6  ;;  %4117 = vadd.xlane.f32.xlu0 %v4101_v51 }
 0x8a5   : > { %v3988_v4 = vpop.f32.mrf.mxu1 }
 0x8a6   : > { %v7588_v50 = vmax.f32 %v3997_v21, 0.0  ;;  %v3989_v54 = vadd.f32 %v7563_v60, %v3988_v4 }
 0x8a7   : > { %v4906_v25 = vpop.f32.mrf.mxu1 }
 0x8a8   : > { %v4000_v19 = vadd.f32 %v4906_v25, %v7563_v60  ;;  %4119 = vadd.xlane.f32.xlu1 %v4102_v1  ;;  %4065 = vadd.xlane.f32.xlu0 %v7588_v50  ;;  %v7595_v40 = vmax.f32 %v3989_v54, 0.0  ;;  %v4107_v2 = vmul.f32 %v7588_v50, %v7588_v50 }
 0x8a9   : > { %v3991_v41 = vpop.f32.mrf.mxu1 }
 0x8aa   : > { %v7597_v34 = vmax.f32 %v4000_v19, 0.0  ;;  %v3992_v58 = vadd.f32 %v7563_v60, %v3991_v41  ;;  %v4105_v29 = vmul.f32 %v7595_v40, %v7595_v40 }
 0x8ac   : > { %4067 = vadd.xlane.f32.xlu1 %v7597_v34  ;;  %4061 = vadd.xlane.f32.xlu0 %v7595_v40  ;;  %v7602_v24 = vmax.f32 %v3992_v58, 0.0  ;;  %v4108_v10 = vmul.f32 %v7597_v34, %v7597_v34 }
 0x8ae   : > { %v4106_v46 = vmul.f32 %v7602_v24, %v7602_v24 }
 0x8b0   : > { %4063 = vadd.xlane.f32.xlu1 %v7602_v24  ;;  %4129 = vadd.xlane.f32.xlu0 %v4107_v2 }
 0x8b3   : > { %v4909_v13 = vpop.f32.mrf.mxu1 }
 0x8b4   : > { %v4013_v63 = vadd.f32 %v4909_v13, %v7563_v60  ;;  %4131 = vadd.xlane.f32.xlu1 %v4108_v10  ;;  %4125 = vadd.xlane.f32.xlu0 %v4105_v29 }
 0x8b5   : > { %v4004_v56 = vpop.f32.mrf.mxu1 }
 0x8b6   : > { %v7612_v9 = vmax.f32 %v4013_v63, 0.0  ;;  %v4005_v0 = vadd.f32 %v7563_v60, %v4004_v56 }
 0x8b7   : > { %v4910_v44 = vpop.f32.mrf.mxu1 }
 0x8b8   : > { %v4016_v53 = vadd.f32 %v4910_v44, %v7563_v60  ;;  %4127 = vadd.xlane.f32.xlu1 %v4106_v46  ;;  %4073 = vadd.xlane.f32.xlu0 %v7612_v9  ;;  %v7621_v42 = vmax.f32 %v4005_v0, 0.0  ;;  %v4111_v8 = vmul.f32 %v7612_v9, %v7612_v9 }
 0x8b9   : > { %v4007_v18 = vpop.f32.mrf.mxu1 }
 0x8ba   : > { %v7619_v43 = vmax.f32 %v4016_v53, 0.0  ;;  %v4008_v27 = vadd.f32 %v7563_v60, %v4007_v18  ;;  %v4109_v33 = vmul.f32 %v7621_v42, %v7621_v42 }
 0x8bc   : > { %4075 = vadd.xlane.f32.xlu1 %v7619_v43  ;;  %4069 = vadd.xlane.f32.xlu0 %v7621_v42  ;;  %v7626_v20 = vmax.f32 %v4008_v27, 0.0  ;;  %v4112_v62 = vmul.f32 %v7619_v43, %v7619_v43 }
 0x8be   : > { %v4110_v7 = vmul.f32 %v7626_v20, %v7626_v20 }
 0x8c0   : > { %4071 = vadd.xlane.f32.xlu1 %v7626_v20  ;;  %4137 = vadd.xlane.f32.xlu0 %v4111_v8 }
 0x8c2   : > { %v4913_v16 = vpop.f32.mrf.mxu1 }
 0x8c3   : > { %v4029_v26 = vadd.f32 %v4913_v16, %v7563_v60 }
 0x8c4   : > { %v4020_v17 = vpop.f32.mrf.mxu1  ;;  %4139 = vadd.xlane.f32.xlu1 %v4112_v62  ;;  %4133 = vadd.xlane.f32.xlu0 %v4109_v33 }
 0x8c5   : > { %v7636_v23 = vmax.f32 %v4029_v26, 0.0  ;;  %v4021_v55 = vadd.f32 %v7563_v60, %v4020_v17 }
 0x8c6   : > { %v4914_v49 = vpop.f32.mrf.mxu1 }
 0x8c7   : > { %v4032_v45 = vadd.f32 %v4914_v49, %v7563_v60  ;;  %v7645_v31 = vmax.f32 %v4021_v55, 0.0  ;;  %v4115_v61 = vmul.f32 %v7636_v23, %v7636_v23 }
 0x8c8   : > { %v4023_v35 = vpop.f32.mrf.mxu1  ;;  %4135 = vadd.xlane.f32.xlu1 %v4110_v7  ;;  %4081 = vadd.xlane.f32.xlu0 %v7636_v23 }
 0x8c9   : > { %v7642_v38 = vmax.f32 %v4032_v45, 0.0  ;;  %v4024_v32 = vadd.f32 %v7563_v60, %v4023_v35  ;;  %v4113_v48 = vmul.f32 %v7645_v31, %v7645_v31 }
 0x8cb   : > { %v7650_v12 = vmax.f32 %v4024_v32, 0.0  ;;  %v4116_v60 = vmul.f32 %v7642_v38, %v7642_v38 }
 0x8cc   : > { %4083 = vadd.xlane.f32.xlu1 %v7642_v38  ;;  %4077 = vadd.xlane.f32.xlu0 %v7645_v31 }
 0x8cd   : > { %v4114_v11 = vmul.f32 %v7650_v12, %v7650_v12 }
 0x8d0   : > { %4079 = vadd.xlane.f32.xlu1 %v7650_v12  ;;  %4141 = vadd.xlane.f32.xlu0 %v4113_v48 }
 0x8d4   : > { %4143 = vadd.xlane.f32.xlu1 %v4114_v11  ;;  %4145 = vadd.xlane.f32.xlu0 %v4115_v61  ;;  %v7691_v61 = vld [vmem:[%s7866_s7 + $0x5] ss:$0 sm:$0xff] }
 0x8d8   : > { %4147 = vadd.xlane.f32.xlu1 %v4116_v60 }
 0x921   : > { %v4058_v52 = vpop.xlane.xlu0 %4057 }
 0x922   : > { %v4087_v14 = vmul.f32 0.0078125, %v4058_v52 }
 0x924   : > { %v4183_v47 = vmul.f32 %v4087_v14, %v4087_v14  ;;  %v4167_v49 = vsub.f32 %v7566_v39, %v4087_v14 }
 0x925   : > { %v4060_v15 = vpop.xlane.xlu1 %4059  ;;  %v4054_v59 = vpop.xlane.xlu0 %4053 }
 0x926   : > { %v7661_v30 = vmul.f32 0.0078125, %v4060_v15  ;;  %v7663_v57 = vmul.f32 0.0078125, %v4054_v59 }
 0x928   : > { %v4184_v28 = vmul.f32 %v7661_v30, %v7661_v30  ;;  %v4181_v21 = vmul.f32 %v7663_v57, %v7663_v57 }
 0x929   : > { %v4056_v22 = vpop.xlane.xlu1 %4055  ;;  %v4122_v5 = vpop.xlane.xlu0 %4121 }
 0x92a   : > { %v4151_v6 = vmul.f32 0.0078125, %v4122_v5  ;;  %v7669_v1 = vmul.f32 0.0078125, %v4056_v22  ;;  %v7696_v22 = vld [vmem:[%s7867_s8 + $0x5] ss:$0 sm:$0xff] }
 0x92c   : > { %v4199_v51 = vsub.f32 %v4151_v6, %v4183_v47  ;;  %v4182_v29 = vmul.f32 %v7669_v1, %v7669_v1  ;;  %v4168_v6 = vsub.f32 %v7573_v3, %v7661_v30 }
 0x92d   : > { %v4124_v4 = vpop.xlane.xlu1 %4123  ;;  %v4118_v54 = vpop.xlane.xlu0 %4117 }
 0x92e   : > { %v4215_v25 = vadd.f32 1e-05, %v4199_v51  ;;  %v4152_v19 = vmul.f32 0.0078125, %v4124_v4  ;;  %v4149_v41 = vmul.f32 0.0078125, %v4118_v54  ;;  %v4165_v51 = vsub.f32 %v7571_v37, %v7663_v57  ;;  %v7706_v4 = vld [vmem:[%s7869_s10] ss:$0 sm:$0xff] }
 0x92f   : > { %v4166_v37 = vsub.f32 %v7578_v36, %v7669_v1 }
 0x930   : > { %5309 = vrsqrt.f32 %v4215_v25  ;;  %v4200_v58 = vsub.f32 %v4152_v19, %v4184_v28  ;;  %v4197_v2 = vsub.f32 %v4149_v41, %v4181_v21 }
 0x931   : > { %v4120_v13 = vpop.xlane.xlu1 %4119  ;;  %v4066_v10 = vpop.xlane.xlu0 %4065 }
 0x932   : > { %v4216_v63 = vadd.f32 1e-05, %v4200_v58  ;;  %v4213_v56 = vadd.f32 1e-05, %v4197_v2  ;;  %v4150_v0 = vmul.f32 0.0078125, %v4120_v13  ;;  %v7673_v27 = vmul.f32 0.0078125, %v4066_v10 }
 0x934   : > { %5311 = vrsqrt.f32 %v4216_v63  ;;  %v4198_v44 = vsub.f32 %v4150_v0, %v4182_v29  ;;  %v4187_v33 = vmul.f32 %v7673_v27, %v7673_v27 }
 0x935   : > { %5313 = vrsqrt.f32 %v4213_v56  ;;  %v4068_v46 = vpop.xlane.xlu1 %4067  ;;  %v4062_v53 = vpop.xlane.xlu0 %4061 }
 0x936   : > { %v4214_v18 = vadd.f32 1e-05, %v4198_v44  ;;  %v7675_v8 = vmul.f32 0.0078125, %v4068_v46  ;;  %v7677_v16 = vmul.f32 0.0078125, %v4062_v53 }
 0x938   : > { %5315 = vrsqrt.f32 %v4214_v18  ;;  %v4188_v7 = vmul.f32 %v7675_v8, %v7675_v8  ;;  %v4185_v35 = vmul.f32 %v7677_v16, %v7677_v16 }
 0x939   : > { %v4064_v26 = vpop.xlane.xlu1 %4063  ;;  %v4130_v62 = vpop.xlane.xlu0 %4129 }
 0x93a   : > { %v4155_v17 = vmul.f32 0.0078125, %v4130_v62  ;;  %v7686_v32 = vmul.f32 0.0078125, %v4064_v26 }
 0x93c   : > { %v4203_v55 = vsub.f32 %v4155_v17, %v4187_v33  ;;  %v4186_v25 = vmul.f32 %v7686_v32, %v7686_v32 }
 0x93d   : > { %v5310_v45 = vpop.eup %5309  ;;  %v4132_v48 = vpop.xlane.xlu1 %4131 }
 0x93e   : > { %v4126_v11 = vpop.xlane.xlu0 %4125  ;;  %v4219_v60 = vadd.f32 1e-05, %v4203_v55  ;;  %v4156_v52 = vmul.f32 0.0078125, %v4132_v48  ;;  %v4247_v15 = vmul.f32 %v5310_v45, %v4167_v49  ;;  %v4171_v48 = vsub.f32 %v7588_v50, %v7673_v27 }
 0x93f   : > { %v4153_v39 = vmul.f32 0.0078125, %v4126_v11 }
 0x940   : > { %5317 = vrsqrt.f32 %v4219_v60  ;;  %v4204_v59 = vsub.f32 %v4156_v52, %v4188_v7  ;;  %v4267_v5 = vmul.f32 %v7691_v61, %v4247_v15 }
 0x941   : > { %v4201_v14 = vsub.f32 %v4153_v39, %v4185_v35  ;;  %v5312_v47 = vpop.eup %5311  ;;  %v4128_v28 = vpop.xlane.xlu1 %4127 }
 0x942   : > { %v4074_v21 = vpop.xlane.xlu0 %4073  ;;  %v5314_v54 = vpop.eup %5313  ;;  %v4220_v19 = vadd.f32 1e-05, %v4204_v59  ;;  %v4154_v58 = vmul.f32 0.0078125, %v4128_v28  ;;  %v4287_v2 = vadd.f32 %v7696_v22, %v4267_v5  ;;  %v4248_v3 = vmul.f32 %v5312_v47, %v4168_v6 }
 0x943   : > { %v4217_v41 = vadd.f32 1e-05, %v4201_v14  ;;  %v4245_v30 = vmul.f32 %v5314_v54, %v4165_v51  ;;  %v7716_v46 = vmul.f32 0.0078125, %v4074_v21 }
 0x944   : > { %5319 = vrsqrt.f32 %v4220_v19  ;;  %v4202_v57 = vsub.f32 %v4154_v58, %v4186_v25  ;;  %v4308_v63 = vmul.f32 %v7706_v4, %v4287_v2  ;;  %v4268_v56 = vmul.f32 %v7691_v61, %v4248_v3 }
 0x945   : > { %v5316_v13 = vpop.eup %5315  ;;  %5321 = vrsqrt.f32 %v4217_v41  ;;  %v4076_v10 = vpop.xlane.xlu1 %4075  ;;  %v4265_v0 = vmul.f32 %v7691_v61, %v4245_v30  ;;  %v4191_v45 = vmul.f32 %v7716_v46, %v7716_v46  ;;  %v4172_v25 = vsub.f32 %v7597_v34, %v7675_v8 }
 0x946   : > { %v4070_v29 = vpop.xlane.xlu0 %4069  ;;  %v4218_v44 = vadd.f32 1e-05, %v4202_v57  ;;  %v4246_v53 = vmul.f32 %v5316_v13, %v4166_v37  ;;  %4326 = vadd.xlane.f32.xlu0 %v4308_v63  ;;  %v4288_v18 = vadd.f32 %v7696_v22, %v4268_v56  ;;  %v7720_v1 = vmul.f32 0.0078125, %v4076_v10 }
 0x947   : > { %v4285_v36 = vadd.f32 %v7696_v22, %v4265_v0  ;;  %v7722_v26 = vmul.f32 0.0078125, %v4070_v29  ;;  %v4169_v19 = vsub.f32 %v7595_v40, %v7677_v16  ;;  %v4170_v63 = vsub.f32 %v7602_v24, %v7686_v32 }
 0x948   : > { %5323 = vrsqrt.f32 %v4218_v44  ;;  %v4309_v17 = vmul.f32 %v7706_v4, %v4288_v18  ;;  %v4266_v55 = vmul.f32 %v7691_v61, %v4246_v53  ;;  %v4192_v52 = vmul.f32 %v7720_v1, %v7720_v1 }
 0x949   : > { %v4072_v62 = vpop.xlane.xlu1 %4071  ;;  %v4306_v49 = vmul.f32 %v7706_v4, %v4285_v36  ;;  %v4189_v39 = vmul.f32 %v7722_v26, %v7722_v26 }
 0x94a   : > { %v4138_v33 = vpop.xlane.xlu0 %4137  ;;  %4328 = vadd.xlane.f32.xlu1 %v4309_v17  ;;  %v4286_v35 = vadd.f32 %v7696_v22, %v4266_v55  ;;  %v7736_v15 = vmul.f32 0.0078125, %v4072_v62 }
 0x94b   : > { %v4159_v7 = vmul.f32 0.0078125, %v4138_v33  ;;  %4322 = vadd.xlane.f32.xlu0 %v4306_v49 }
 0x94c   : > { %v4307_v5 = vmul.f32 %v7706_v4, %v4286_v35  ;;  %v4190_v3 = vmul.f32 %v7736_v15, %v7736_v15 }
 0x94d   : > { %v4207_v11 = vsub.f32 %v4159_v7, %v4191_v45  ;;  %v5318_v60 = vpop.eup %5317  ;;  %v4140_v59 = vpop.xlane.xlu1 %4139 }
 0x94e   : > { %v4134_v14 = vpop.xlane.xlu0 %4133  ;;  %v4160_v6 = vmul.f32 0.0078125, %v4140_v59  ;;  %v4251_v28 = vmul.f32 %v5318_v60, %v4171_v48  ;;  %4324 = vadd.xlane.f32.xlu1 %v4307_v5  ;;  %v4175_v60 = vsub.f32 %v7612_v9, %v7716_v46 }
 0x94f   : > { %v4223_v47 = vadd.f32 1e-05, %v4207_v11  ;;  %v4157_v51 = vmul.f32 0.0078125, %v4134_v14 }
 0x950   : > { %v4208_v50 = vsub.f32 %v4160_v6, %v4192_v52  ;;  %v4271_v21 = vmul.f32 %v7691_v61, %v4251_v28 }
 0x951   : > { %5325 = vrsqrt.f32 %v4223_v47  ;;  %v4205_v27 = vsub.f32 %v4157_v51, %v4189_v39  ;;  %v5320_v54 = vpop.eup %5319  ;;  %v4136_v41 = vpop.xlane.xlu1 %4135 }
 0x952   : > { %v4082_v58 = vpop.xlane.xlu0 %4081  ;;  %v5322_v2 = vpop.eup %5321  ;;  %v4224_v30 = vadd.f32 1e-05, %v4208_v50  ;;  %v4158_v57 = vmul.f32 0.0078125, %v4136_v41  ;;  %v4291_v13 = vadd.f32 %v7696_v22, %v4271_v21  ;;  %v4252_v10 = vmul.f32 %v5320_v54, %v4172_v25 }
 0x953   : > { %v4221_v37 = vadd.f32 1e-05, %v4205_v27  ;;  %v4249_v29 = vmul.f32 %v5322_v2, %v4169_v19  ;;  %v7756_v32 = vmul.f32 0.0078125, %v4082_v58  ;;  %v4176_v19 = vsub.f32 %v7619_v43, %v7720_v1 }
 0x954   : > { %5327 = vrsqrt.f32 %v4224_v30  ;;  %v4206_v34 = vsub.f32 %v4158_v57, %v4190_v3  ;;  %v4312_v56 = vmul.f32 %v7706_v4, %v4291_v13  ;;  %v4272_v0 = vmul.f32 %v7691_v61, %v4252_v10 }
 0x955   : > { %v5324_v8 = vpop.eup %5323  ;;  %5329 = vrsqrt.f32 %v4221_v37  ;;  %v4084_v40 = vpop.xlane.xlu1 %4083  ;;  %v4269_v44 = vmul.f32 %v7691_v61, %v4249_v29  ;;  %v4195_v59 = vmul.f32 %v7756_v32, %v7756_v32  ;;  %v4173_v41 = vsub.f32 %v7621_v42, %v7722_v26 }
 0x956   : > { %v4078_v16 = vpop.xlane.xlu0 %4077  ;;  %v4222_v53 = vadd.f32 1e-05, %v4206_v34  ;;  %v4250_v36 = vmul.f32 %v5324_v8, %v4170_v63  ;;  %4334 = vadd.xlane.f32.xlu0 %v4312_v56  ;;  %v4292_v62 = vadd.f32 %v7696_v22, %v4272_v0  ;;  %v7770_v14 = vmul.f32 0.0078125, %v4084_v40 }
 0x957   : > { %v7752_v18 = vmul.f32 0.0078125, %v4078_v16  ;;  %v4289_v24 = vadd.f32 %v7696_v22, %v4269_v44  ;;  %v4174_v63 = vsub.f32 %v7626_v20, %v7736_v15 }
 0x958   : > { %5331 = vrsqrt.f32 %v4222_v53  ;;  %v4313_v49 = vmul.f32 %v7706_v4, %v4292_v62  ;;  %v4270_v45 = vmul.f32 %v7691_v61, %v4250_v36  ;;  %v4196_v58 = vmul.f32 %v7770_v14, %v7770_v14 }
 0x959   : > { %v4080_v33 = vpop.xlane.xlu1 %4079  ;;  %v4310_v55 = vmul.f32 %v7706_v4, %v4289_v24  ;;  %v4193_v7 = vmul.f32 %v7752_v18, %v7752_v18  ;;  %v4177_v53 = vsub.f32 %v7645_v31, %v7752_v18  ;;  %v4180_v31 = vsub.f32 %v7642_v38, %v7770_v14 }
 0x95a   : > { %v4142_v17 = vpop.xlane.xlu0 %4141  ;;  %v7763_v35 = vmul.f32 0.0078125, %v4080_v33  ;;  %4336 = vadd.xlane.f32.xlu1 %v4313_v49  ;;  %v4290_v11 = vadd.f32 %v7696_v22, %v4270_v45 }
 0x95b   : > { %v4161_v48 = vmul.f32 0.0078125, %v4142_v17  ;;  %4330 = vadd.xlane.f32.xlu0 %v4310_v55  ;;  %v4179_v55 = vsub.f32 %v7636_v23, %v7756_v32 }
 0x95c   : > { %v4194_v5 = vmul.f32 %v7763_v35, %v7763_v35  ;;  %v4311_v51 = vmul.f32 %v7706_v4, %v4290_v11  ;;  %v4178_v33 = vsub.f32 %v7650_v12, %v7763_v35 }
 0x95d   : > { %v4209_v52 = vsub.f32 %v4161_v48, %v4193_v7  ;;  %v4144_v47 = vpop.xlane.xlu1 %4143 }
 0x95e   : > { %v5326_v39 = vpop.eup %5325  ;;  %v4146_v6 = vpop.xlane.xlu0 %4145  ;;  %v4162_v50 = vmul.f32 0.0078125, %v4144_v47  ;;  %4332 = vadd.xlane.f32.xlu1 %v4311_v51  ;;  %v4630_v47 = vld [vmem:[%s7869_s10 + $0x1] ss:$0 sm:$0xff] }
 0x95f   : > { %v4225_v28 = vadd.f32 1e-05, %v4209_v52  ;;  %v4163_v27 = vmul.f32 0.0078125, %v4146_v6  ;;  %v4255_v21 = vmul.f32 %v5326_v39, %v4175_v60 }
 0x960   : > { %v4210_v9 = vsub.f32 %v4162_v50, %v4194_v5 }
 0x961   : > { %5333 = vrsqrt.f32 %v4225_v28  ;;  %v4211_v46 = vsub.f32 %v4163_v27, %v4195_v59  ;;  %v4275_v54 = vmul.f32 %v7691_v61, %v4255_v21  ;;  %v5328_v25 = vpop.eup %5327  ;;  %v4148_v2 = vpop.xlane.xlu1 %4147 }
 0x962   : > { %v5330_v3 = vpop.eup %5329  ;;  %v4226_v30 = vadd.f32 1e-05, %v4210_v9  ;;  %v4164_v57 = vmul.f32 0.0078125, %v4148_v2  ;;  %v4256_v10 = vmul.f32 %v5328_v25, %v4176_v19 }
 0x963   : > { %v4227_v37 = vadd.f32 1e-05, %v4211_v46  ;;  %v4295_v13 = vadd.f32 %v7696_v22, %v4275_v54  ;;  %v4253_v29 = vmul.f32 %v5330_v3, %v4173_v41 }
 0x964   : > { %5335 = vrsqrt.f32 %v4226_v30  ;;  %v4212_v43 = vsub.f32 %v4164_v57, %v4196_v58  ;;  %v4276_v26 = vmul.f32 %v7691_v61, %v4256_v10 }
 0x965   : > { %v4316_v1 = vmul.f32 %v7706_v4, %v4295_v13  ;;  %v5332_v42 = vpop.eup %5331  ;;  %5337 = vrsqrt.f32 %v4227_v37  ;;  %v4273_v34 = vmul.f32 %v7691_v61, %v4253_v29 }
 0x966   : > { %v4228_v8 = vadd.f32 1e-05, %v4212_v43  ;;  %v4254_v40 = vmul.f32 %v5332_v42, %v4174_v63  ;;  %v4296_v16 = vadd.f32 %v7696_v22, %v4276_v26 }
 0x967   : > { %4342 = vadd.xlane.f32.xlu0 %v4316_v1  ;;  %v4293_v56 = vadd.f32 %v7696_v22, %v4273_v34 }
 0x968   : > { %5339 = vrsqrt.f32 %v4228_v8  ;;  %v4274_v20 = vmul.f32 %v7691_v61, %v4254_v40  ;;  %v4317_v15 = vmul.f32 %v7706_v4, %v4296_v16 }
 0x969   : > { %v4314_v0 = vmul.f32 %v7706_v4, %v4293_v56 }
 0x96a   : > { %v4294_v44 = vadd.f32 %v7696_v22, %v4274_v20  ;;  %4344 = vadd.xlane.f32.xlu1 %v4317_v15 }
 0x96b   : > { %4338 = vadd.xlane.f32.xlu0 %v4314_v0 }
 0x96c   : > { %v4315_v36 = vmul.f32 %v7706_v4, %v4294_v44 }
 0x96e   : > { %v5334_v62 = vpop.eup %5333  ;;  %4340 = vadd.xlane.f32.xlu1 %v4315_v36 }
 0x96f   : > { %v4257_v24 = vmul.f32 %v5334_v62, %v4177_v53 }
 0x971   : > { %v4277_v17 = vmul.f32 %v7691_v61, %v4257_v24  ;;  %v5336_v49 = vpop.eup %5335 }
 0x972   : > { %v5338_v45 = vpop.eup %5337  ;;  %v4258_v48 = vmul.f32 %v5336_v49, %v4178_v33 }
 0x973   : > { %v4297_v7 = vadd.f32 %v7696_v22, %v4277_v17  ;;  %v4259_v11 = vmul.f32 %v5338_v45, %v4179_v55 }
 0x974   : > { %v4278_v60 = vmul.f32 %v7691_v61, %v4258_v48 }
 0x975   : > { %v4318_v18 = vmul.f32 %v7706_v4, %v4297_v7  ;;  %v5340_v12 = vpop.eup %5339  ;;  %v4279_v35 = vmul.f32 %v7691_v61, %v4259_v11 }
 0x976   : > { %v4298_v52 = vadd.f32 %v7696_v22, %v4278_v60  ;;  %v4260_v23 = vmul.f32 %v5340_v12, %v4180_v31 }
 0x977   : > { %4346 = vadd.xlane.f32.xlu0 %v4318_v18  ;;  %v4299_v32 = vadd.f32 %v7696_v22, %v4279_v35 }
 0x978   : > { %v4319_v39 = vmul.f32 %v7706_v4, %v4298_v52  ;;  %v4280_v59 = vmul.f32 %v7691_v61, %v4260_v23 }
 0x979   : > { %v4320_v38 = vmul.f32 %v7706_v4, %v4299_v32 }
 0x97a   : > { %4348 = vadd.xlane.f32.xlu1 %v4319_v39  ;;  %v4300_v14 = vadd.f32 %v7696_v22, %v4280_v59 }
 0x97b   : > { %4350 = vadd.xlane.f32.xlu0 %v4320_v38 }
 0x97c   : > { %v4321_v5 = vmul.f32 %v7706_v4, %v4300_v14 }
 0x97e   : > { %4352 = vadd.xlane.f32.xlu1 %v4321_v5 }
 0x9cf   : > { %v4327_v61 = vpop.xlane.xlu0 %4326 }
 0x9d0   : > { %v4361_v22 = vadd.f32 %v4630_v47, %v4327_v61 }
 0x9d2   : > { %4378 = vst.msk [vmem:[%s7822_s17 + $0x10] sm:$0xff] %vm4375_vm2, %v4361_v22 }
 0x9d3   : > { %v4329_v4 = vpop.xlane.xlu1 %4328 }
 0x9d4   : > { %v4323_v6 = vpop.xlane.xlu0 %4322  ;;  %v4362_v51 = vadd.f32 %v4630_v47, %v4329_v4 }
 0x9d5   : > { %v4359_v28 = vadd.f32 %v4630_v47, %v4323_v6 }
 0x9d6   : > { %4379 = vst.msk [vmem:[%s7822_s17 + $0x18] sm:$0xff] %vm4375_vm2, %v4362_v51 }
 0x9d7   : > { %4376 = vst.msk [vmem:[%s7822_s17] sm:$0xff] %vm4375_vm2, %v4359_v28  ;;  %v4325_v50 = vpop.xlane.xlu1 %4324 }
 0x9d8   : > { %v4360_v27 = vadd.f32 %v4630_v47, %v4325_v50 }
 0x9da   : > { %4377 = vst.msk [vmem:[%s7822_s17 + $0x8] sm:$0xff] %vm4375_vm2, %v4360_v27 }
 0x9df   : > { %v4335_v21 = vpop.xlane.xlu0 %4334 }
 0x9e0   : > { %v4365_v9 = vadd.f32 %v4630_v47, %v4335_v21 }
 0x9e2   : > { %4382 = vst.msk [vmem:[%s7822_s17 + $0x30] sm:$0xff] %vm4375_vm2, %v4365_v9 }
 0x9e3   : > { %v4337_v46 = vpop.xlane.xlu1 %4336 }
 0x9e4   : > { %v4331_v54 = vpop.xlane.xlu0 %4330  ;;  %v4366_v25 = vadd.f32 %v4630_v47, %v4337_v46 }
 0x9e5   : > { %v4363_v19 = vadd.f32 %v4630_v47, %v4331_v54 }
 0x9e6   : > { %4383 = vst.msk [vmem:[%s7822_s17 + $0x38] sm:$0xff] %vm4375_vm2, %v4366_v25 }
 0x9e7   : > { %4380 = vst.msk [vmem:[%s7822_s17 + $0x20] sm:$0xff] %vm4375_vm2, %v4363_v19  ;;  %v4333_v41 = vpop.xlane.xlu1 %4332 }
 0x9e8   : > { %v4364_v58 = vadd.f32 %v4630_v47, %v4333_v41 }
 0x9ea   : > { %4381 = vst.msk [vmem:[%s7822_s17 + $0x28] sm:$0xff] %vm4375_vm2, %v4364_v58 }
 0x9f0   : > { %v4343_v2 = vpop.xlane.xlu0 %4342 }
 0x9f1   : > { %v4369_v3 = vadd.f32 %v4630_v47, %v4343_v2 }
 0x9f3   : > { %4386 = vst.msk [vmem:[%s7822_s17 + $0x50] sm:$0xff] %vm4375_vm2, %v4369_v3  ;;  %v4345_v30 = vpop.xlane.xlu1 %4344 }
 0x9f4   : > { %v4339_v37 = vpop.xlane.xlu0 %4338  ;;  %v4370_v57 = vadd.f32 %v4630_v47, %v4345_v30 }
 0x9f5   : > { %v4367_v13 = vadd.f32 %v4630_v47, %v4339_v37 }
 0x9f6   : > { %4387 = vst.msk [vmem:[%s7822_s17 + $0x58] sm:$0xff] %vm4375_vm2, %v4370_v57 }
 0x9f7   : > { %4384 = vst.msk [vmem:[%s7822_s17 + $0x40] sm:$0xff] %vm4375_vm2, %v4367_v13  ;;  %v4341_v10 = vpop.xlane.xlu1 %4340 }
 0x9f8   : > { %v4368_v29 = vadd.f32 %v4630_v47, %v4341_v10 }
 0x9fa   : > { %4385 = vst.msk [vmem:[%s7822_s17 + $0x48] sm:$0xff] %vm4375_vm2, %v4368_v29 }
 0xa00   : > { %v4347_v63 = vpop.xlane.xlu0 %4346 }
 0xa01   : > { %v4371_v43 = vadd.f32 %v4630_v47, %v4347_v63 }
 0xa03   : > { %4388 = vst.msk [vmem:[%s7822_s17 + $0x60] sm:$0xff] %vm4375_vm2, %v4371_v43  ;;  %v4349_v1 = vpop.xlane.xlu1 %4348 }
 0xa04   : > { %v4372_v42 = vadd.f32 %v4630_v47, %v4349_v1  ;;  %v4351_v26 = vpop.xlane.xlu0 %4350 }
 0xa05   : > { %v4373_v34 = vadd.f32 %v4630_v47, %v4351_v26 }
 0xa06   : > { %4389 = vst.msk [vmem:[%s7822_s17 + $0x68] sm:$0xff] %vm4375_vm2, %v4372_v42 }
 0xa07   : > { %4390 = vst.msk [vmem:[%s7822_s17 + $0x70] sm:$0xff] %vm4375_vm2, %v4373_v34  ;;  %v4353_v8 = vpop.xlane.xlu1 %4352 }
 0xa08   : > { %v4374_v40 = vadd.f32 %v4630_v47, %v4353_v8 }
 0xa0a   : > { %4391 = vst.msk [vmem:[%s7822_s17 + $0x78] sm:$0xff] %vm4375_vm2, %v4374_v40 }
 0xa0b PF: > { %s23_s21 = sadd.s32 1, %s5347_s21  }
 0xa0c   : > { %p20_p4 = scmp.ge.s32.totalorder %s23_s21, 4  }
 0xa0e   :  { %22 = sbr.rel (!%p20_p4) target bundleno = 1 (0x1), region = 112 }

</bundles_post_ra>
